<compile_context>
chip_gen: v6e
topology: v6e:2x2x1
jax: 0.10.0
libtpu: 0.0.40
codegen_flags: <defaults>
</compile_context>

<pallas_src>
import functools
import math

import jax
import jax.numpy as jnp
from jax.experimental import pallas as pl
from jax.experimental.pallas import tpu as pltpu


def _round_up(v, m):
    return (v + m - 1) // m * m


def _layer_norm(x, gamma, beta, eps):
    mu = jnp.mean(x, axis=-1, keepdims=True)
    xc = x - mu
    var = jnp.mean(xc * xc, axis=-1, keepdims=True)
    inv = jax.lax.rsqrt(var + eps)
    return xc * inv * gamma + beta


def _block_kernel(x_ref, ln1g_ref, ln1b_ref, wqkv_ref, bqkv_ref, relb_ref,
                  wproj_ref, bproj_ref, ln2g_ref, ln2b_ref,
                  wfc1_ref, bfc1_ref, wfc2_ref, bfc2_ref,
                  xo_ref, fco_ref, *, num_heads, head_dim, eps):
    """One chunk of Bt batch elements per grid step.

    x_ref:     (Bt, Np, C) f32     tokens (Np = padded token count)
    wqkv_ref:  (C, 3*AHD) bf16     qkv weight^T, scale folded into q columns
    bqkv_ref:  (1, 3*AHD) f32      cat(q_bias*scale, 0, v_bias)
    relb_ref:  (H, Np, Np) bf16    rel-pos bias (+ -1e9 mask on padded key cols)
    wproj_ref: (AHD, C) bf16       proj weight^T
    wfc1/wfc2: (C, Dh)/(Dh, C) bf16
    outputs:   (Bt, Np, C) f32     block output x and fc_feature
    """
    Bt, Np, C = x_ref.shape
    ahd = num_heads * head_dim
    M = Bt * Np

    x = x_ref[...]                                   # (Bt, Np, C) f32
    xf = x.reshape(M, C)                             # flatten batch+tokens -> MXU M dim

    # ---- LayerNorm 1 (f32) ----
    h = _layer_norm(xf, ln1g_ref[...], ln1b_ref[...], eps)

    # ---- QKV projection: bf16 x bf16 -> f32 accumulate on the MXU ----
    qkv = jnp.dot(h.astype(jnp.bfloat16), wqkv_ref[...],
                  preferred_element_type=jnp.float32)
    qkv = qkv + bqkv_ref[...]                        # (M, 3*AHD); scale pre-folded
    qkv = qkv.reshape(Bt, Np, 3 * ahd)

    relb = relb_ref[...].astype(jnp.float32)         # (H, Np, Np)

    # ---- attention: per-head, accumulate projected output (no concat) ----
    attn_out = jnp.zeros((M, C), jnp.float32)
    for hh in range(num_heads):                      # static unroll, bounded live set
        lo = hh * head_dim
        q = qkv[:, :, lo:lo + head_dim]                          # (Bt, Np, hd)
        k = qkv[:, :, ahd + lo:ahd + lo + head_dim]
        v = qkv[:, :, 2 * ahd + lo:2 * ahd + lo + head_dim]

        s = jnp.einsum('bqd,bkd->bqk',
                       q.astype(jnp.bfloat16), k.astype(jnp.bfloat16),
                       preferred_element_type=jnp.float32)       # (Bt, Np, Np)
        s = s + relb[hh][None]                                   # rel-pos bias + pad mask
        s = s - jnp.max(s, axis=-1, keepdims=True)               # stable softmax (f32)
        e = jnp.exp(s)
        p = e * pl.reciprocal(jnp.sum(e, axis=-1, keepdims=True), approx=True)

        ctx = jnp.einsum('bqk,bkd->bqd',
                         p.astype(jnp.bfloat16), v.astype(jnp.bfloat16),
                         preferred_element_type=jnp.float32)     # (Bt, Np, hd)
        ctx = ctx.reshape(M, head_dim)
        attn_out = attn_out + jnp.dot(
            ctx.astype(jnp.bfloat16), wproj_ref[lo:lo + head_dim, :],
            preferred_element_type=jnp.float32)                  # (M, C)

    attn_out = attn_out + bproj_ref[...]

    # ---- residual 1 (gamma_1 is None path) ----
    x1 = xf + attn_out

    # ---- LayerNorm 2 + MLP ----
    h2 = _layer_norm(x1, ln2g_ref[...], ln2b_ref[...], eps)
    hid = jnp.dot(h2.astype(jnp.bfloat16), wfc1_ref[...],
                  preferred_element_type=jnp.float32) + bfc1_ref[...]
    # TODO(synk): torch nn.GELU default is the exact erf form; erf has no Mosaic
    # lowering, so the tanh approximation is used here (max abs deviation <~1e-3).
    c = math.sqrt(2.0 / math.pi)
    hid = 0.5 * hid * (1.0 + jnp.tanh(c * (hid + 0.044715 * hid * hid * hid)))
    fc = jnp.dot(hid.astype(jnp.bfloat16), wfc2_ref[...],
                 preferred_element_type=jnp.float32) + bfc2_ref[...]

    x2 = x1 + fc                                     # residual 2

    xo_ref[...] = x2.reshape(Bt, Np, C).astype(xo_ref.dtype)
    fco_ref[...] = fc.reshape(Bt, Np, C).astype(fco_ref.dtype)


def make_relative_position_index(window_size):
    """Replicates the BEiT relative_position_index buffer (plain JAX glue)."""
    Wh, Ww = window_size
    num_rel_dist = (2 * Wh - 1) * (2 * Ww - 1) + 3
    coords = jnp.stack(jnp.meshgrid(jnp.arange(Wh), jnp.arange(Ww), indexing="ij"))
    coords_flat = coords.reshape(2, -1)
    rel = coords_flat[:, :, None] - coords_flat[:, None, :]
    rel = rel.transpose(1, 2, 0)
    rel = rel.at[:, :, 0].add(Wh - 1)
    rel = rel.at[:, :, 1].add(Ww - 1)
    rel = rel.at[:, :, 0].multiply(2 * Ww - 1)
    M = Wh * Ww
    rpi = jnp.zeros((M + 1, M + 1), jnp.int32)
    rpi = rpi.at[1:, 1:].set(rel.sum(-1))
    rpi = rpi.at[0, :].set(num_rel_dist - 3)
    rpi = rpi.at[:, 0].set(num_rel_dist - 2)
    rpi = rpi.at[0, 0].set(num_rel_dist - 1)
    return rpi, num_rel_dist


def prepare_block_params(raw, *, num_heads, head_dim, scale, window_size, n_pad):
    """One-time weight transform: transpose, fold qk scale, pad+mask rel bias, cast bf16."""
    ahd = num_heads * head_dim
    wqkv_t = raw['qkv_w'].T                                     # (C, 3*AHD)
    wqkv_t = wqkv_t.at[:, :ahd].multiply(scale)                 # fold scale into q cols
    qkv_b = jnp.concatenate([raw['q_bias'] * scale,
                             jnp.zeros_like(raw['v_bias']),
                             raw['v_bias']]).reshape(1, -1)

    N = window_size[0] * window_size[1] + 1
    rpi, _ = make_relative_position_index(window_size)
    rel = raw['rpb_table'][rpi.reshape(-1)].reshape(N, N, num_heads).transpose(2, 0, 1)
    relp = jnp.zeros((num_heads, n_pad, n_pad), jnp.float32)
    relp = relp.at[:, :N, :N].set(rel)
    relp = relp.at[:, :, N:].set(-1e9)                          # mask padded key columns
    # TODO(synk): the optional shared `rel_pos_bias` forward argument would be
    # added into `relp` here before casting; not exercised in this demo.

    return dict(
        ln1_g=raw['ln1_g'].reshape(1, -1), ln1_b=raw['ln1_b'].reshape(1, -1),
        wqkv_t=wqkv_t.astype(jnp.bfloat16), qkv_b=qkv_b,
        rel_bias=relp.astype(jnp.bfloat16),
        wproj_t=raw['proj_w'].T.astype(jnp.bfloat16),
        proj_b=raw['proj_b'].reshape(1, -1),
        ln2_g=raw['ln2_g'].reshape(1, -1), ln2_b=raw['ln2_b'].reshape(1, -1),
        wfc1_t=raw['fc1_w'].T.astype(jnp.bfloat16),
        fc1_b=raw['fc1_b'].reshape(1, -1),
        wfc2_t=raw['fc2_w'].T.astype(jnp.bfloat16),
        fc2_b=raw['fc2_b'].reshape(1, -1),
    )


def block_forward(x, p, *, num_heads, head_dim, eps=1e-5, block_batch=8):
    B, N, C = x.shape
    H, Np, _ = p['rel_bias'].shape
    ahd = num_heads * head_dim
    Dh = p['wfc1_t'].shape[1]

    Bt = min(block_batch, B)
    Bpad = _round_up(B, Bt)
    xp = jnp.zeros((Bpad, Np, C), x.dtype).at[:B, :N, :].set(x)   # pad tokens + batch

    kernel = functools.partial(_block_kernel, num_heads=num_heads,
                               head_dim=head_dim, eps=eps)
    const2 = lambda b: (0, 0)
    const3 = lambda b: (0, 0, 0)

    x_out, fc_out = pl.pallas_call(
        kernel,
        out_shape=(jax.ShapeDtypeStruct((Bpad, Np, C), x.dtype),
                   jax.ShapeDtypeStruct((Bpad, Np, C), x.dtype)),
        grid_spec=pltpu.PrefetchScalarGridSpec(
            num_scalar_prefetch=0,
            grid=(Bpad // Bt,),
            in_specs=[
                pl.BlockSpec((Bt, Np, C), lambda b: (b, 0, 0)),   # x
                pl.BlockSpec((1, C), const2),                     # ln1 gamma
                pl.BlockSpec((1, C), const2),                     # ln1 beta
                pl.BlockSpec((C, 3 * ahd), const2),               # Wqkv^T (bf16)
                pl.BlockSpec((1, 3 * ahd), const2),               # qkv bias
                pl.BlockSpec((H, Np, Np), const3),                # rel bias (bf16)
                pl.BlockSpec((ahd, C), const2),                   # Wproj^T (bf16)
                pl.BlockSpec((1, C), const2),                     # proj bias
                pl.BlockSpec((1, C), const2),                     # ln2 gamma
                pl.BlockSpec((1, C), const2),                     # ln2 beta
                pl.BlockSpec((C, Dh), const2),                    # Wfc1^T (bf16)
                pl.BlockSpec((1, Dh), const2),                    # fc1 bias
                pl.BlockSpec((Dh, C), const2),                    # Wfc2^T (bf16)
                pl.BlockSpec((1, C), const2),                     # fc2 bias
            ],
            out_specs=(pl.BlockSpec((Bt, Np, C), lambda b: (b, 0, 0)),
                       pl.BlockSpec((Bt, Np, C), lambda b: (b, 0, 0))),
        ),
        compiler_params=pltpu.CompilerParams(
            dimension_semantics=("parallel",)),
    )(xp, p['ln1_g'], p['ln1_b'], p['wqkv_t'], p['qkv_b'], p['rel_bias'],
      p['wproj_t'], p['proj_b'], p['ln2_g'], p['ln2_b'],
      p['wfc1_t'], p['fc1_b'], p['wfc2_t'], p['fc2_b'])

    return x_out[:B, :N, :], fc_out[:B, :N, :]


def reference_block(x, raw, *, num_heads, head_dim, scale, window_size, eps=1e-5):
    """Pure-JAX f32 reference mirroring the PyTorch Block forward (gamma=None path)."""
    B, N, C = x.shape
    ahd = num_heads * head_dim

    def ln(v, g, b):
        mu = v.mean(-1, keepdims=True)
        var = ((v - mu) ** 2).mean(-1, keepdims=True)
        return (v - mu) / jnp.sqrt(var + eps) * g + b

    h = ln(x, raw['ln1_g'], raw['ln1_b'])
    qkv_bias = jnp.concatenate([raw['q_bias'], jnp.zeros_like(raw['v_bias']),
                                raw['v_bias']])
    qkv = jnp.einsum('bnc,oc->bno', h, raw['qkv_w']) + qkv_bias
    qkv = qkv.reshape(B, N, 3, num_heads, head_dim).transpose(2, 0, 3, 1, 4)
    q, k, v = qkv[0] * scale, qkv[1], qkv[2]
    attn = q @ jnp.swapaxes(k, -2, -1)
    rpi, _ = make_relative_position_index(window_size)
    rel = raw['rpb_table'][rpi.reshape(-1)].reshape(N, N, num_heads).transpose(2, 0, 1)
    attn = jax.nn.softmax(attn + rel[None], axis=-1)
    out = (attn @ v).transpose(0, 2, 1, 3).reshape(B, N, ahd)
    attn_out = jnp.einsum('bna,ca->bnc', out, raw['proj_w']) + raw['proj_b']

    x1 = x + attn_out
    h2 = ln(x1, raw['ln2_g'], raw['ln2_b'])
    hid = jnp.einsum('bnc,dc->bnd', h2, raw['fc1_w']) + raw['fc1_b']
    hid = jax.nn.gelu(hid, approximate=False)        # torch nn.GELU (exact erf)
    fc = jnp.einsum('bnd,cd->bnc', hid, raw['fc2_w']) + raw['fc2_b']
    return x1 + fc, fc


if __name__ == "__main__":
    # Small config consistent with the module: window_size=(3,3) -> N = 10 tokens.
    B, dim, num_heads = 16, 32, 4
    window_size = (3, 3)
    mlp_ratio = 4.0
    head_dim = dim // num_heads
    ahd = head_dim * num_heads
    scale = head_dim ** (-0.5)
    N = window_size[0] * window_size[1] + 1
    Dh = int(dim * mlp_ratio)
    n_rel = (2 * window_size[0] - 1) * (2 * window_size[1] - 1) + 3

    key = jax.random.PRNGKey(0)
    ks = jax.random.split(key, 16)
    x = jax.random.normal(ks[0], (B, N, dim), jnp.float32)

    # Deterministic synthetic parameters in torch layout (not a checkpoint).
    raw = dict(
        ln1_g=1.0 + 0.1 * jax.random.normal(ks[1], (dim,), jnp.float32),
        ln1_b=0.1 * jax.random.normal(ks[2], (dim,), jnp.float32),
        qkv_w=0.05 * jax.random.normal(ks[3], (3 * ahd, dim), jnp.float32),
        q_bias=0.05 * jax.random.normal(ks[4], (ahd,), jnp.float32),
        v_bias=0.05 * jax.random.normal(ks[5], (ahd,), jnp.float32),
        rpb_table=0.05 * jax.random.normal(ks[6], (n_rel, num_heads), jnp.float32),
        proj_w=0.05 * jax.random.normal(ks[7], (dim, ahd), jnp.float32),
        proj_b=0.05 * jax.random.normal(ks[8], (dim,), jnp.float32),
        ln2_g=1.0 + 0.1 * jax.random.normal(ks[9], (dim,), jnp.float32),
        ln2_b=0.1 * jax.random.normal(ks[10], (dim,), jnp.float32),
        fc1_w=0.05 * jax.random.normal(ks[11], (Dh, dim), jnp.float32),
        fc1_b=0.05 * jax.random.normal(ks[12], (Dh,), jnp.float32),
        fc2_w=0.05 * jax.random.normal(ks[13], (dim, Dh), jnp.float32),
        fc2_b=0.05 * jax.random.normal(ks[14], (dim,), jnp.float32),
    )

    Np = _round_up(N, 16)   # sublane/bf16-aligned token count; key cols >= N masked
    params = prepare_block_params(raw, num_heads=num_heads, head_dim=head_dim,
                                  scale=scale, window_size=window_size, n_pad=Np)

    # TODO(synk): init_values (gamma_1/gamma_2) path not exercised; it would scale
    # attn_out / fc by per-channel gammas before the residual adds.
    x_out, fc_out = block_forward(x, params, num_heads=num_heads,
                                  head_dim=head_dim, block_batch=8)
    x_out, fc_out = jax.block_until_ready((x_out, fc_out))

    x_ref, fc_ref = reference_block(x, raw, num_heads=num_heads, head_dim=head_dim,
                                    scale=scale, window_size=window_size)

    err_x = float(jnp.max(jnp.abs(x_out - x_ref)))
    err_f = float(jnp.max(jnp.abs(fc_out - fc_ref)))
    assert jnp.allclose(x_out, x_ref, atol=3e-2, rtol=3e-2), ("x mismatch", err_x)
    assert jnp.allclose(fc_out, fc_ref, atol=3e-2, rtol=3e-2), ("fc mismatch", err_f)

    print("KERNEL_OK")
</pallas_src>

<mosaic_0001>
module attributes {stable_mosaic.version = 11 : i64} {
  func.func @_block_kernel(%arg0: i32, %arg1: memref<8x16x32xf32, #tpu.memory_space<vmem>>, %arg2: memref<1x32xf32, #tpu.memory_space<vmem>>, %arg3: memref<1x32xf32, #tpu.memory_space<vmem>>, %arg4: memref<32x96xbf16, #tpu.memory_space<vmem>>, %arg5: memref<1x96xf32, #tpu.memory_space<vmem>>, %arg6: memref<4x16x16xbf16, #tpu.memory_space<vmem>>, %arg7: memref<32x32xbf16, #tpu.memory_space<vmem>>, %arg8: memref<1x32xf32, #tpu.memory_space<vmem>>, %arg9: memref<1x32xf32, #tpu.memory_space<vmem>>, %arg10: memref<1x32xf32, #tpu.memory_space<vmem>>, %arg11: memref<32x128xbf16, #tpu.memory_space<vmem>>, %arg12: memref<1x128xf32, #tpu.memory_space<vmem>>, %arg13: memref<128x32xbf16, #tpu.memory_space<vmem>>, %arg14: memref<1x32xf32, #tpu.memory_space<vmem>>, %arg15: memref<8x16x32xf32, #tpu.memory_space<vmem>>, %arg16: memref<8x16x32xf32, #tpu.memory_space<vmem>>) attributes {dimension_semantics = [#tpu.dimension_semantics<parallel>], iteration_bounds = array<i64: 2>, scalar_prefetch = 0 : i64, scratch_operands = 0 : i64, tpu.core_type = #tpu.core_type<tc>, window_params = [{transform_indices = @transform_0, window_bounds = array<i64: 8, 16, 32>}, {pipeline_mode = #tpu.pipeline_mode<synchronous>, transform_indices = @transform_1, window_bounds = array<i64: 1, 32>}, {pipeline_mode = #tpu.pipeline_mode<synchronous>, transform_indices = @transform_2, window_bounds = array<i64: 1, 32>}, {pipeline_mode = #tpu.pipeline_mode<synchronous>, transform_indices = @transform_3, window_bounds = array<i64: 32, 96>}, {pipeline_mode = #tpu.pipeline_mode<synchronous>, transform_indices = @transform_4, window_bounds = array<i64: 1, 96>}, {pipeline_mode = #tpu.pipeline_mode<synchronous>, transform_indices = @transform_5, window_bounds = array<i64: 4, 16, 16>}, {pipeline_mode = #tpu.pipeline_mode<synchronous>, transform_indices = @transform_6, window_bounds = array<i64: 32, 32>}, {pipeline_mode = #tpu.pipeline_mode<synchronous>, transform_indices = @transform_7, window_bounds = array<i64: 1, 32>}, {pipeline_mode = #tpu.pipeline_mode<synchronous>, transform_indices = @transform_8, window_bounds = array<i64: 1, 32>}, {pipeline_mode = #tpu.pipeline_mode<synchronous>, transform_indices = @transform_9, window_bounds = array<i64: 1, 32>}, {pipeline_mode = #tpu.pipeline_mode<synchronous>, transform_indices = @transform_10, window_bounds = array<i64: 32, 128>}, {pipeline_mode = #tpu.pipeline_mode<synchronous>, transform_indices = @transform_11, window_bounds = array<i64: 1, 128>}, {pipeline_mode = #tpu.pipeline_mode<synchronous>, transform_indices = @transform_12, window_bounds = array<i64: 128, 32>}, {pipeline_mode = #tpu.pipeline_mode<synchronous>, transform_indices = @transform_13, window_bounds = array<i64: 1, 32>}, {transform_indices = @transform_14, window_bounds = array<i64: 8, 16, 32>}, {transform_indices = @transform_15, window_bounds = array<i64: 8, 16, 32>}]} {
    %c0 = arith.constant 0 : index
    %c0_0 = arith.constant 0 : index
    %c0_1 = arith.constant 0 : index
    %0 = vector.load %arg1[%c0, %c0_0, %c0_1] : memref<8x16x32xf32, #tpu.memory_space<vmem>>, vector<8x16x32xf32>
    %1 = vector.shape_cast %0 : vector<8x16x32xf32> to vector<128x32xf32>
    %c0_2 = arith.constant 0 : index
    %c0_3 = arith.constant 0 : index
    %2 = vector.load %arg2[%c0_2, %c0_3] : memref<1x32xf32, #tpu.memory_space<vmem>>, vector<1x32xf32>
    %c0_4 = arith.constant 0 : index
    %c0_5 = arith.constant 0 : index
    %3 = vector.load %arg3[%c0_4, %c0_5] : memref<1x32xf32, #tpu.memory_space<vmem>>, vector<1x32xf32>
    %cst = arith.constant dense<0.000000e+00> : vector<128xf32>
    %4 = vector.multi_reduction <add>, %1, %cst [1] : vector<128x32xf32> to vector<128xf32>
    %5 = vector.shape_cast %4 : vector<128xf32> to vector<128x1xf32>
    %cst_6 = arith.constant 3.200000e+01 : f32
    %6 = vector.broadcast %cst_6 : f32 to vector<128x1xf32>
    %7 = arith.divf %5, %6 : vector<128x1xf32>
    %8 = vector.broadcast %7 : vector<128x1xf32> to vector<128x32xf32>
    %9 = arith.subf %1, %8 : vector<128x32xf32>
    %10 = arith.mulf %9, %9 : vector<128x32xf32>
    %cst_7 = arith.constant dense<0.000000e+00> : vector<128xf32>
    %11 = vector.multi_reduction <add>, %10, %cst_7 [1] : vector<128x32xf32> to vector<128xf32>
    %12 = vector.shape_cast %11 : vector<128xf32> to vector<128x1xf32>
    %cst_8 = arith.constant 3.200000e+01 : f32
    %13 = vector.broadcast %cst_8 : f32 to vector<128x1xf32>
    %14 = arith.divf %12, %13 : vector<128x1xf32>
    %cst_9 = arith.constant 9.99999974E-6 : f32
    %15 = vector.broadcast %cst_9 : f32 to vector<128x1xf32>
    %16 = arith.addf %14, %15 : vector<128x1xf32>
    %17 = math.rsqrt %16 : vector<128x1xf32>
    %18 = vector.broadcast %17 : vector<128x1xf32> to vector<128x32xf32>
    %19 = arith.mulf %9, %18 : vector<128x32xf32>
    %20 = vector.broadcast %2 : vector<1x32xf32> to vector<128x32xf32>
    %21 = arith.mulf %19, %20 : vector<128x32xf32>
    %22 = vector.broadcast %3 : vector<1x32xf32> to vector<128x32xf32>
    %23 = arith.addf %21, %22 : vector<128x32xf32>
    %24 = arith.truncf %23 : vector<128x32xf32> to vector<128x32xbf16>
    %c0_10 = arith.constant 0 : index
    %c0_11 = arith.constant 0 : index
    %25 = vector.load %arg4[%c0_10, %c0_11] : memref<32x96xbf16, #tpu.memory_space<vmem>>, vector<32x96xbf16>
    %cst_12 = arith.constant dense<0.000000e+00> : vector<128x96xf32>
    %26 = tpu.matmul %24, %25, %cst_12 {dimension_numbers = #tpu.dot_dimension_numbers<[1], [0], [0], [1], [0, 0, 1, 1], [], []>} : vector<128x32xbf16>, vector<32x96xbf16>, vector<128x96xf32> -> vector<128x96xf32>
    %c0_13 = arith.constant 0 : index
    %c0_14 = arith.constant 0 : index
    %27 = vector.load %arg5[%c0_13, %c0_14] : memref<1x96xf32, #tpu.memory_space<vmem>>, vector<1x96xf32>
    %28 = vector.broadcast %27 : vector<1x96xf32> to vector<128x96xf32>
    %29 = arith.addf %26, %28 : vector<128x96xf32>
    %30 = vector.shape_cast %29 : vector<128x96xf32> to vector<8x16x96xf32>
    %c0_15 = arith.constant 0 : index
    %c0_16 = arith.constant 0 : index
    %c0_17 = arith.constant 0 : index
    %31 = vector.load %arg6[%c0_15, %c0_16, %c0_17] : memref<4x16x16xbf16, #tpu.memory_space<vmem>>, vector<4x16x16xbf16>
    %32 = arith.extf %31 : vector<4x16x16xbf16> to vector<4x16x16xf32>
    %cst_18 = arith.constant 0.000000e+00 : f32
    %33 = vector.broadcast %cst_18 : f32 to vector<128x32xf32>
    %34 = vector.extract_strided_slice %30 {offsets = [0, 0, 0], sizes = [8, 16, 8], strides = [1, 1, 1]} : vector<8x16x96xf32> to vector<8x16x8xf32>
    %35 = vector.extract_strided_slice %30 {offsets = [0, 0, 32], sizes = [8, 16, 8], strides = [1, 1, 1]} : vector<8x16x96xf32> to vector<8x16x8xf32>
    %36 = vector.extract_strided_slice %30 {offsets = [0, 0, 64], sizes = [8, 16, 8], strides = [1, 1, 1]} : vector<8x16x96xf32> to vector<8x16x8xf32>
    %37 = arith.truncf %34 : vector<8x16x8xf32> to vector<8x16x8xbf16>
    %38 = arith.truncf %35 : vector<8x16x8xf32> to vector<8x16x8xbf16>
    "tpu.trace_start"() <{level = 10 : i32, message = "bqd,bkd->bqk"}> : () -> ()
    %cst_19 = arith.constant dense<0.000000e+00> : vector<8x16x16xf32>
    %39 = tpu.matmul %37, %38, %cst_19 {dimension_numbers = #tpu.dot_dimension_numbers<[2], [2], [1], [1], [0, 0, 0, 1, 1, 1], [0], [0]>} : vector<8x16x8xbf16>, vector<8x16x8xbf16>, vector<8x16x16xf32> -> vector<8x16x16xf32>
    "tpu.trace_stop"() : () -> ()
    %40 = vector.extract_strided_slice %32 {offsets = [0, 0, 0], sizes = [1, 16, 16], strides = [1, 1, 1]} : vector<4x16x16xf32> to vector<1x16x16xf32>
    %41 = vector.shape_cast %40 : vector<1x16x16xf32> to vector<16x16xf32>
    %42 = vector.shape_cast %41 : vector<16x16xf32> to vector<1x16x16xf32>
    %43 = vector.broadcast %42 : vector<1x16x16xf32> to vector<8x16x16xf32>
    %44 = arith.addf %39, %43 : vector<8x16x16xf32>
    %cst_20 = arith.constant dense<0xFF800000> : vector<8x16xf32>
    %45 = vector.multi_reduction <maximumf>, %44, %cst_20 [2] : vector<8x16x16xf32> to vector<8x16xf32>
    %46 = vector.shape_cast %45 : vector<8x16xf32> to vector<8x16x1xf32>
    %47 = vector.broadcast %46 : vector<8x16x1xf32> to vector<8x16x16xf32>
    %48 = arith.subf %44, %47 : vector<8x16x16xf32>
    %49 = math.exp %48 : vector<8x16x16xf32>
    %cst_21 = arith.constant dense<0.000000e+00> : vector<8x16xf32>
    %50 = vector.multi_reduction <add>, %49, %cst_21 [2] : vector<8x16x16xf32> to vector<8x16xf32>
    %51 = vector.shape_cast %50 : vector<8x16xf32> to vector<8x16x1xf32>
    %52 = tpu.reciprocal %51 {approx = true} : vector<8x16x1xf32> -> vector<8x16x1xf32>
    %53 = vector.broadcast %52 : vector<8x16x1xf32> to vector<8x16x16xf32>
    %54 = arith.mulf %49, %53 : vector<8x16x16xf32>
    %55 = arith.truncf %54 : vector<8x16x16xf32> to vector<8x16x16xbf16>
    %56 = arith.truncf %36 : vector<8x16x8xf32> to vector<8x16x8xbf16>
    "tpu.trace_start"() <{level = 10 : i32, message = "bqk,bkd->bqd"}> : () -> ()
    %cst_22 = arith.constant dense<0.000000e+00> : vector<8x16x8xf32>
    %57 = tpu.matmul %55, %56, %cst_22 {dimension_numbers = #tpu.dot_dimension_numbers<[2], [1], [1], [2], [0, 0, 0, 1, 1, 2], [0], [0]>} : vector<8x16x16xbf16>, vector<8x16x8xbf16>, vector<8x16x8xf32> -> vector<8x16x8xf32>
    "tpu.trace_stop"() : () -> ()
    %58 = vector.shape_cast %57 : vector<8x16x8xf32> to vector<128x8xf32>
    %59 = arith.truncf %58 : vector<128x8xf32> to vector<128x8xbf16>
    %c0_23 = arith.constant 0 : index
    %c0_24 = arith.constant 0 : index
    %60 = vector.load %arg7[%c0_23, %c0_24] : memref<32x32xbf16, #tpu.memory_space<vmem>>, vector<8x32xbf16>
    %cst_25 = arith.constant dense<0.000000e+00> : vector<128x32xf32>
    %61 = tpu.matmul %59, %60, %cst_25 {dimension_numbers = #tpu.dot_dimension_numbers<[1], [0], [0], [1], [0, 0, 1, 1], [], []>} : vector<128x8xbf16>, vector<8x32xbf16>, vector<128x32xf32> -> vector<128x32xf32>
    %62 = arith.addf %33, %61 : vector<128x32xf32>
    %63 = vector.extract_strided_slice %30 {offsets = [0, 0, 8], sizes = [8, 16, 8], strides = [1, 1, 1]} : vector<8x16x96xf32> to vector<8x16x8xf32>
    %64 = vector.extract_strided_slice %30 {offsets = [0, 0, 40], sizes = [8, 16, 8], strides = [1, 1, 1]} : vector<8x16x96xf32> to vector<8x16x8xf32>
    %65 = vector.extract_strided_slice %30 {offsets = [0, 0, 72], sizes = [8, 16, 8], strides = [1, 1, 1]} : vector<8x16x96xf32> to vector<8x16x8xf32>
    %66 = arith.truncf %63 : vector<8x16x8xf32> to vector<8x16x8xbf16>
    %67 = arith.truncf %64 : vector<8x16x8xf32> to vector<8x16x8xbf16>
    "tpu.trace_start"() <{level = 10 : i32, message = "bqd,bkd->bqk"}> : () -> ()
    %cst_26 = arith.constant dense<0.000000e+00> : vector<8x16x16xf32>
    %68 = tpu.matmul %66, %67, %cst_26 {dimension_numbers = #tpu.dot_dimension_numbers<[2], [2], [1], [1], [0, 0, 0, 1, 1, 1], [0], [0]>} : vector<8x16x8xbf16>, vector<8x16x8xbf16>, vector<8x16x16xf32> -> vector<8x16x16xf32>
    "tpu.trace_stop"() : () -> ()
    %69 = vector.extract_strided_slice %32 {offsets = [1, 0, 0], sizes = [1, 16, 16], strides = [1, 1, 1]} : vector<4x16x16xf32> to vector<1x16x16xf32>
    %70 = vector.shape_cast %69 : vector<1x16x16xf32> to vector<16x16xf32>
    %71 = vector.shape_cast %70 : vector<16x16xf32> to vector<1x16x16xf32>
    %72 = vector.broadcast %71 : vector<1x16x16xf32> to vector<8x16x16xf32>
    %73 = arith.addf %68, %72 : vector<8x16x16xf32>
    %cst_27 = arith.constant dense<0xFF800000> : vector<8x16xf32>
    %74 = vector.multi_reduction <maximumf>, %73, %cst_27 [2] : vector<8x16x16xf32> to vector<8x16xf32>
    %75 = vector.shape_cast %74 : vector<8x16xf32> to vector<8x16x1xf32>
    %76 = vector.broadcast %75 : vector<8x16x1xf32> to vector<8x16x16xf32>
    %77 = arith.subf %73, %76 : vector<8x16x16xf32>
    %78 = math.exp %77 : vector<8x16x16xf32>
    %cst_28 = arith.constant dense<0.000000e+00> : vector<8x16xf32>
    %79 = vector.multi_reduction <add>, %78, %cst_28 [2] : vector<8x16x16xf32> to vector<8x16xf32>
    %80 = vector.shape_cast %79 : vector<8x16xf32> to vector<8x16x1xf32>
    %81 = tpu.reciprocal %80 {approx = true} : vector<8x16x1xf32> -> vector<8x16x1xf32>
    %82 = vector.broadcast %81 : vector<8x16x1xf32> to vector<8x16x16xf32>
    %83 = arith.mulf %78, %82 : vector<8x16x16xf32>
    %84 = arith.truncf %83 : vector<8x16x16xf32> to vector<8x16x16xbf16>
    %85 = arith.truncf %65 : vector<8x16x8xf32> to vector<8x16x8xbf16>
    "tpu.trace_start"() <{level = 10 : i32, message = "bqk,bkd->bqd"}> : () -> ()
    %cst_29 = arith.constant dense<0.000000e+00> : vector<8x16x8xf32>
    %86 = tpu.matmul %84, %85, %cst_29 {dimension_numbers = #tpu.dot_dimension_numbers<[2], [1], [1], [2], [0, 0, 0, 1, 1, 2], [0], [0]>} : vector<8x16x16xbf16>, vector<8x16x8xbf16>, vector<8x16x8xf32> -> vector<8x16x8xf32>
    "tpu.trace_stop"() : () -> ()
    %87 = vector.shape_cast %86 : vector<8x16x8xf32> to vector<128x8xf32>
    %88 = arith.truncf %87 : vector<128x8xf32> to vector<128x8xbf16>
    %c8 = arith.constant 8 : index
    %c0_30 = arith.constant 0 : index
    %89 = vector.load %arg7[%c8, %c0_30] : memref<32x32xbf16, #tpu.memory_space<vmem>>, vector<8x32xbf16>
    %cst_31 = arith.constant dense<0.000000e+00> : vector<128x32xf32>
    %90 = tpu.matmul %88, %89, %cst_31 {dimension_numbers = #tpu.dot_dimension_numbers<[1], [0], [0], [1], [0, 0, 1, 1], [], []>} : vector<128x8xbf16>, vector<8x32xbf16>, vector<128x32xf32> -> vector<128x32xf32>
    %91 = arith.addf %62, %90 : vector<128x32xf32>
    %92 = vector.extract_strided_slice %30 {offsets = [0, 0, 16], sizes = [8, 16, 8], strides = [1, 1, 1]} : vector<8x16x96xf32> to vector<8x16x8xf32>
    %93 = vector.extract_strided_slice %30 {offsets = [0, 0, 48], sizes = [8, 16, 8], strides = [1, 1, 1]} : vector<8x16x96xf32> to vector<8x16x8xf32>
    %94 = vector.extract_strided_slice %30 {offsets = [0, 0, 80], sizes = [8, 16, 8], strides = [1, 1, 1]} : vector<8x16x96xf32> to vector<8x16x8xf32>
    %95 = arith.truncf %92 : vector<8x16x8xf32> to vector<8x16x8xbf16>
    %96 = arith.truncf %93 : vector<8x16x8xf32> to vector<8x16x8xbf16>
    "tpu.trace_start"() <{level = 10 : i32, message = "bqd,bkd->bqk"}> : () -> ()
    %cst_32 = arith.constant dense<0.000000e+00> : vector<8x16x16xf32>
    %97 = tpu.matmul %95, %96, %cst_32 {dimension_numbers = #tpu.dot_dimension_numbers<[2], [2], [1], [1], [0, 0, 0, 1, 1, 1], [0], [0]>} : vector<8x16x8xbf16>, vector<8x16x8xbf16>, vector<8x16x16xf32> -> vector<8x16x16xf32>
    "tpu.trace_stop"() : () -> ()
    %98 = vector.extract_strided_slice %32 {offsets = [2, 0, 0], sizes = [1, 16, 16], strides = [1, 1, 1]} : vector<4x16x16xf32> to vector<1x16x16xf32>
    %99 = vector.shape_cast %98 : vector<1x16x16xf32> to vector<16x16xf32>
    %100 = vector.shape_cast %99 : vector<16x16xf32> to vector<1x16x16xf32>
    %101 = vector.broadcast %100 : vector<1x16x16xf32> to vector<8x16x16xf32>
    %102 = arith.addf %97, %101 : vector<8x16x16xf32>
    %cst_33 = arith.constant dense<0xFF800000> : vector<8x16xf32>
    %103 = vector.multi_reduction <maximumf>, %102, %cst_33 [2] : vector<8x16x16xf32> to vector<8x16xf32>
    %104 = vector.shape_cast %103 : vector<8x16xf32> to vector<8x16x1xf32>
    %105 = vector.broadcast %104 : vector<8x16x1xf32> to vector<8x16x16xf32>
    %106 = arith.subf %102, %105 : vector<8x16x16xf32>
    %107 = math.exp %106 : vector<8x16x16xf32>
    %cst_34 = arith.constant dense<0.000000e+00> : vector<8x16xf32>
    %108 = vector.multi_reduction <add>, %107, %cst_34 [2] : vector<8x16x16xf32> to vector<8x16xf32>
    %109 = vector.shape_cast %108 : vector<8x16xf32> to vector<8x16x1xf32>
    %110 = tpu.reciprocal %109 {approx = true} : vector<8x16x1xf32> -> vector<8x16x1xf32>
    %111 = vector.broadcast %110 : vector<8x16x1xf32> to vector<8x16x16xf32>
    %112 = arith.mulf %107, %111 : vector<8x16x16xf32>
    %113 = arith.truncf %112 : vector<8x16x16xf32> to vector<8x16x16xbf16>
    %114 = arith.truncf %94 : vector<8x16x8xf32> to vector<8x16x8xbf16>
    "tpu.trace_start"() <{level = 10 : i32, message = "bqk,bkd->bqd"}> : () -> ()
    %cst_35 = arith.constant dense<0.000000e+00> : vector<8x16x8xf32>
    %115 = tpu.matmul %113, %114, %cst_35 {dimension_numbers = #tpu.dot_dimension_numbers<[2], [1], [1], [2], [0, 0, 0, 1, 1, 2], [0], [0]>} : vector<8x16x16xbf16>, vector<8x16x8xbf16>, vector<8x16x8xf32> -> vector<8x16x8xf32>
    "tpu.trace_stop"() : () -> ()
    %116 = vector.shape_cast %115 : vector<8x16x8xf32> to vector<128x8xf32>
    %117 = arith.truncf %116 : vector<128x8xf32> to vector<128x8xbf16>
    %c16 = arith.constant 16 : index
    %c0_36 = arith.constant 0 : index
    %118 = vector.load %arg7[%c16, %c0_36] : memref<32x32xbf16, #tpu.memory_space<vmem>>, vector<8x32xbf16>
    %cst_37 = arith.constant dense<0.000000e+00> : vector<128x32xf32>
    %119 = tpu.matmul %117, %118, %cst_37 {dimension_numbers = #tpu.dot_dimension_numbers<[1], [0], [0], [1], [0, 0, 1, 1], [], []>} : vector<128x8xbf16>, vector<8x32xbf16>, vector<128x32xf32> -> vector<128x32xf32>
    %120 = arith.addf %91, %119 : vector<128x32xf32>
    %121 = vector.extract_strided_slice %30 {offsets = [0, 0, 24], sizes = [8, 16, 8], strides = [1, 1, 1]} : vector<8x16x96xf32> to vector<8x16x8xf32>
    %122 = vector.extract_strided_slice %30 {offsets = [0, 0, 56], sizes = [8, 16, 8], strides = [1, 1, 1]} : vector<8x16x96xf32> to vector<8x16x8xf32>
    %123 = vector.extract_strided_slice %30 {offsets = [0, 0, 88], sizes = [8, 16, 8], strides = [1, 1, 1]} : vector<8x16x96xf32> to vector<8x16x8xf32>
    %124 = arith.truncf %121 : vector<8x16x8xf32> to vector<8x16x8xbf16>
    %125 = arith.truncf %122 : vector<8x16x8xf32> to vector<8x16x8xbf16>
    "tpu.trace_start"() <{level = 10 : i32, message = "bqd,bkd->bqk"}> : () -> ()
    %cst_38 = arith.constant dense<0.000000e+00> : vector<8x16x16xf32>
    %126 = tpu.matmul %124, %125, %cst_38 {dimension_numbers = #tpu.dot_dimension_numbers<[2], [2], [1], [1], [0, 0, 0, 1, 1, 1], [0], [0]>} : vector<8x16x8xbf16>, vector<8x16x8xbf16>, vector<8x16x16xf32> -> vector<8x16x16xf32>
    "tpu.trace_stop"() : () -> ()
    %127 = vector.extract_strided_slice %32 {offsets = [3, 0, 0], sizes = [1, 16, 16], strides = [1, 1, 1]} : vector<4x16x16xf32> to vector<1x16x16xf32>
    %128 = vector.shape_cast %127 : vector<1x16x16xf32> to vector<16x16xf32>
    %129 = vector.shape_cast %128 : vector<16x16xf32> to vector<1x16x16xf32>
    %130 = vector.broadcast %129 : vector<1x16x16xf32> to vector<8x16x16xf32>
    %131 = arith.addf %126, %130 : vector<8x16x16xf32>
    %cst_39 = arith.constant dense<0xFF800000> : vector<8x16xf32>
    %132 = vector.multi_reduction <maximumf>, %131, %cst_39 [2] : vector<8x16x16xf32> to vector<8x16xf32>
    %133 = vector.shape_cast %132 : vector<8x16xf32> to vector<8x16x1xf32>
    %134 = vector.broadcast %133 : vector<8x16x1xf32> to vector<8x16x16xf32>
    %135 = arith.subf %131, %134 : vector<8x16x16xf32>
    %136 = math.exp %135 : vector<8x16x16xf32>
    %cst_40 = arith.constant dense<0.000000e+00> : vector<8x16xf32>
    %137 = vector.multi_reduction <add>, %136, %cst_40 [2] : vector<8x16x16xf32> to vector<8x16xf32>
    %138 = vector.shape_cast %137 : vector<8x16xf32> to vector<8x16x1xf32>
    %139 = tpu.reciprocal %138 {approx = true} : vector<8x16x1xf32> -> vector<8x16x1xf32>
    %140 = vector.broadcast %139 : vector<8x16x1xf32> to vector<8x16x16xf32>
    %141 = arith.mulf %136, %140 : vector<8x16x16xf32>
    %142 = arith.truncf %141 : vector<8x16x16xf32> to vector<8x16x16xbf16>
    %143 = arith.truncf %123 : vector<8x16x8xf32> to vector<8x16x8xbf16>
    "tpu.trace_start"() <{level = 10 : i32, message = "bqk,bkd->bqd"}> : () -> ()
    %cst_41 = arith.constant dense<0.000000e+00> : vector<8x16x8xf32>
    %144 = tpu.matmul %142, %143, %cst_41 {dimension_numbers = #tpu.dot_dimension_numbers<[2], [1], [1], [2], [0, 0, 0, 1, 1, 2], [0], [0]>} : vector<8x16x16xbf16>, vector<8x16x8xbf16>, vector<8x16x8xf32> -> vector<8x16x8xf32>
    "tpu.trace_stop"() : () -> ()
    %145 = vector.shape_cast %144 : vector<8x16x8xf32> to vector<128x8xf32>
    %146 = arith.truncf %145 : vector<128x8xf32> to vector<128x8xbf16>
    %c24 = arith.constant 24 : index
    %c0_42 = arith.constant 0 : index
    %147 = vector.load %arg7[%c24, %c0_42] : memref<32x32xbf16, #tpu.memory_space<vmem>>, vector<8x32xbf16>
    %cst_43 = arith.constant dense<0.000000e+00> : vector<128x32xf32>
    %148 = tpu.matmul %146, %147, %cst_43 {dimension_numbers = #tpu.dot_dimension_numbers<[1], [0], [0], [1], [0, 0, 1, 1], [], []>} : vector<128x8xbf16>, vector<8x32xbf16>, vector<128x32xf32> -> vector<128x32xf32>
    %149 = arith.addf %120, %148 : vector<128x32xf32>
    %c0_44 = arith.constant 0 : index
    %c0_45 = arith.constant 0 : index
    %150 = vector.load %arg8[%c0_44, %c0_45] : memref<1x32xf32, #tpu.memory_space<vmem>>, vector<1x32xf32>
    %151 = vector.broadcast %150 : vector<1x32xf32> to vector<128x32xf32>
    %152 = arith.addf %149, %151 : vector<128x32xf32>
    %153 = arith.addf %1, %152 : vector<128x32xf32>
    %c0_46 = arith.constant 0 : index
    %c0_47 = arith.constant 0 : index
    %154 = vector.load %arg9[%c0_46, %c0_47] : memref<1x32xf32, #tpu.memory_space<vmem>>, vector<1x32xf32>
    %c0_48 = arith.constant 0 : index
    %c0_49 = arith.constant 0 : index
    %155 = vector.load %arg10[%c0_48, %c0_49] : memref<1x32xf32, #tpu.memory_space<vmem>>, vector<1x32xf32>
    %cst_50 = arith.constant dense<0.000000e+00> : vector<128xf32>
    %156 = vector.multi_reduction <add>, %153, %cst_50 [1] : vector<128x32xf32> to vector<128xf32>
    %157 = vector.shape_cast %156 : vector<128xf32> to vector<128x1xf32>
    %cst_51 = arith.constant 3.200000e+01 : f32
    %158 = vector.broadcast %cst_51 : f32 to vector<128x1xf32>
    %159 = arith.divf %157, %158 : vector<128x1xf32>
    %160 = vector.broadcast %159 : vector<128x1xf32> to vector<128x32xf32>
    %161 = arith.subf %153, %160 : vector<128x32xf32>
    %162 = arith.mulf %161, %161 : vector<128x32xf32>
    %cst_52 = arith.constant dense<0.000000e+00> : vector<128xf32>
    %163 = vector.multi_reduction <add>, %162, %cst_52 [1] : vector<128x32xf32> to vector<128xf32>
    %164 = vector.shape_cast %163 : vector<128xf32> to vector<128x1xf32>
    %cst_53 = arith.constant 3.200000e+01 : f32
    %165 = vector.broadcast %cst_53 : f32 to vector<128x1xf32>
    %166 = arith.divf %164, %165 : vector<128x1xf32>
    %cst_54 = arith.constant 9.99999974E-6 : f32
    %167 = vector.broadcast %cst_54 : f32 to vector<128x1xf32>
    %168 = arith.addf %166, %167 : vector<128x1xf32>
    %169 = math.rsqrt %168 : vector<128x1xf32>
    %170 = vector.broadcast %169 : vector<128x1xf32> to vector<128x32xf32>
    %171 = arith.mulf %161, %170 : vector<128x32xf32>
    %172 = vector.broadcast %154 : vector<1x32xf32> to vector<128x32xf32>
    %173 = arith.mulf %171, %172 : vector<128x32xf32>
    %174 = vector.broadcast %155 : vector<1x32xf32> to vector<128x32xf32>
    %175 = arith.addf %173, %174 : vector<128x32xf32>
    %176 = arith.truncf %175 : vector<128x32xf32> to vector<128x32xbf16>
    %c0_55 = arith.constant 0 : index
    %c0_56 = arith.constant 0 : index
    %177 = vector.load %arg11[%c0_55, %c0_56] : memref<32x128xbf16, #tpu.memory_space<vmem>>, vector<32x128xbf16>
    %cst_57 = arith.constant dense<0.000000e+00> : vector<128x128xf32>
    %178 = tpu.matmul %176, %177, %cst_57 {dimension_numbers = #tpu.dot_dimension_numbers<[1], [0], [0], [1], [0, 0, 1, 1], [], []>} : vector<128x32xbf16>, vector<32x128xbf16>, vector<128x128xf32> -> vector<128x128xf32>
    %c0_58 = arith.constant 0 : index
    %c0_59 = arith.constant 0 : index
    %179 = vector.load %arg12[%c0_58, %c0_59] : memref<1x128xf32, #tpu.memory_space<vmem>>, vector<1x128xf32>
    %180 = vector.broadcast %179 : vector<1x128xf32> to vector<128x128xf32>
    %181 = arith.addf %178, %180 : vector<128x128xf32>
    %cst_60 = arith.constant 5.000000e-01 : f32
    %182 = vector.broadcast %cst_60 : f32 to vector<128x128xf32>
    %183 = arith.mulf %182, %181 : vector<128x128xf32>
    %cst_61 = arith.constant 4.471500e-02 : f32
    %184 = vector.broadcast %cst_61 : f32 to vector<128x128xf32>
    %185 = arith.mulf %184, %181 : vector<128x128xf32>
    %186 = arith.mulf %185, %181 : vector<128x128xf32>
    %187 = arith.mulf %186, %181 : vector<128x128xf32>
    %188 = arith.addf %181, %187 : vector<128x128xf32>
    %cst_62 = arith.constant 0.797884583 : f32
    %189 = vector.broadcast %cst_62 : f32 to vector<128x128xf32>
    %190 = arith.mulf %189, %188 : vector<128x128xf32>
    %191 = math.tanh %190 : vector<128x128xf32>
    %cst_63 = arith.constant 1.000000e+00 : f32
    %192 = vector.broadcast %cst_63 : f32 to vector<128x128xf32>
    %193 = arith.addf %192, %191 : vector<128x128xf32>
    %194 = arith.mulf %183, %193 : vector<128x128xf32>
    %195 = arith.truncf %194 : vector<128x128xf32> to vector<128x128xbf16>
    %c0_64 = arith.constant 0 : index
    %c0_65 = arith.constant 0 : index
    %196 = vector.load %arg13[%c0_64, %c0_65] : memref<128x32xbf16, #tpu.memory_space<vmem>>, vector<128x32xbf16>
    %cst_66 = arith.constant dense<0.000000e+00> : vector<128x32xf32>
    %197 = tpu.matmul %195, %196, %cst_66 {dimension_numbers = #tpu.dot_dimension_numbers<[1], [0], [0], [1], [0, 0, 1, 1], [], []>} : vector<128x128xbf16>, vector<128x32xbf16>, vector<128x32xf32> -> vector<128x32xf32>
    %c0_67 = arith.constant 0 : index
    %c0_68 = arith.constant 0 : index
    %198 = vector.load %arg14[%c0_67, %c0_68] : memref<1x32xf32, #tpu.memory_space<vmem>>, vector<1x32xf32>
    %199 = vector.broadcast %198 : vector<1x32xf32> to vector<128x32xf32>
    %200 = arith.addf %197, %199 : vector<128x32xf32>
    %201 = arith.addf %153, %200 : vector<128x32xf32>
    %202 = vector.shape_cast %201 : vector<128x32xf32> to vector<8x16x32xf32>
    %c0_69 = arith.constant 0 : index
    %c0_70 = arith.constant 0 : index
    %c0_71 = arith.constant 0 : index
    %203 = vector.load %arg15[%c0_69, %c0_70, %c0_71] : memref<8x16x32xf32, #tpu.memory_space<vmem>>, vector<8x16x32xf32>
    tpu.vector_store %arg15[%c0_69, %c0_70, %c0_71], %202 {strides = array<i32>} : memref<8x16x32xf32, #tpu.memory_space<vmem>>, vector<8x16x32xf32>,
    %204 = vector.shape_cast %200 : vector<128x32xf32> to vector<8x16x32xf32>
    %c0_72 = arith.constant 0 : index
    %c0_73 = arith.constant 0 : index
    %c0_74 = arith.constant 0 : index
    %205 = vector.load %arg16[%c0_72, %c0_73, %c0_74] : memref<8x16x32xf32, #tpu.memory_space<vmem>>, vector<8x16x32xf32>
    tpu.vector_store %arg16[%c0_72, %c0_73, %c0_74], %204 {strides = array<i32>} : memref<8x16x32xf32, #tpu.memory_space<vmem>>, vector<8x16x32xf32>,
    return
  }
  func.func @transform_0(%arg0: i32) -> (i32, i32, i32) {
    %c0_i32 = arith.constant 0 : i32
    %c0_i32_0 = arith.constant 0 : i32
    %c0_i32_1 = arith.constant 0 : i32
    return %arg0, %c0_i32, %c0_i32_0 : i32, i32, i32
  }
  func.func @transform_1(%arg0: i32) -> (i32, i32) {
    %c0_i32 = arith.constant 0 : i32
    %c0_i32_0 = arith.constant 0 : i32
    %c0_i32_1 = arith.constant 0 : i32
    return %c0_i32, %c0_i32_0 : i32, i32
  }
  func.func @transform_2(%arg0: i32) -> (i32, i32) {
    %c0_i32 = arith.constant 0 : i32
    %c0_i32_0 = arith.constant 0 : i32
    %c0_i32_1 = arith.constant 0 : i32
    return %c0_i32, %c0_i32_0 : i32, i32
  }
  func.func @transform_3(%arg0: i32) -> (i32, i32) {
    %c0_i32 = arith.constant 0 : i32
    %c0_i32_0 = arith.constant 0 : i32
    %c0_i32_1 = arith.constant 0 : i32
    return %c0_i32, %c0_i32_0 : i32, i32
  }
  func.func @transform_4(%arg0: i32) -> (i32, i32) {
    %c0_i32 = arith.constant 0 : i32
    %c0_i32_0 = arith.constant 0 : i32
    %c0_i32_1 = arith.constant 0 : i32
    return %c0_i32, %c0_i32_0 : i32, i32
  }
  func.func @transform_5(%arg0: i32) -> (i32, i32, i32) {
    %c0_i32 = arith.constant 0 : i32
    %c0_i32_0 = arith.constant 0 : i32
    %c0_i32_1 = arith.constant 0 : i32
    %c0_i32_2 = arith.constant 0 : i32
    return %c0_i32, %c0_i32_0, %c0_i32_1 : i32, i32, i32
  }
  func.func @transform_6(%arg0: i32) -> (i32, i32) {
    %c0_i32 = arith.constant 0 : i32
    %c0_i32_0 = arith.constant 0 : i32
    %c0_i32_1 = arith.constant 0 : i32
    return %c0_i32, %c0_i32_0 : i32, i32
  }
  func.func @transform_7(%arg0: i32) -> (i32, i32) {
    %c0_i32 = arith.constant 0 : i32
    %c0_i32_0 = arith.constant 0 : i32
    %c0_i32_1 = arith.constant 0 : i32
    return %c0_i32, %c0_i32_0 : i32, i32
  }
  func.func @transform_8(%arg0: i32) -> (i32, i32) {
    %c0_i32 = arith.constant 0 : i32
    %c0_i32_0 = arith.constant 0 : i32
    %c0_i32_1 = arith.constant 0 : i32
    return %c0_i32, %c0_i32_0 : i32, i32
  }
  func.func @transform_9(%arg0: i32) -> (i32, i32) {
    %c0_i32 = arith.constant 0 : i32
    %c0_i32_0 = arith.constant 0 : i32
    %c0_i32_1 = arith.constant 0 : i32
    return %c0_i32, %c0_i32_0 : i32, i32
  }
  func.func @transform_10(%arg0: i32) -> (i32, i32) {
    %c0_i32 = arith.constant 0 : i32
    %c0_i32_0 = arith.constant 0 : i32
    %c0_i32_1 = arith.constant 0 : i32
    return %c0_i32, %c0_i32_0 : i32, i32
  }
  func.func @transform_11(%arg0: i32) -> (i32, i32) {
    %c0_i32 = arith.constant 0 : i32
    %c0_i32_0 = arith.constant 0 : i32
    %c0_i32_1 = arith.constant 0 : i32
    return %c0_i32, %c0_i32_0 : i32, i32
  }
  func.func @transform_12(%arg0: i32) -> (i32, i32) {
    %c0_i32 = arith.constant 0 : i32
    %c0_i32_0 = arith.constant 0 : i32
    %c0_i32_1 = arith.constant 0 : i32
    return %c0_i32, %c0_i32_0 : i32, i32
  }
  func.func @transform_13(%arg0: i32) -> (i32, i32) {
    %c0_i32 = arith.constant 0 : i32
    %c0_i32_0 = arith.constant 0 : i32
    %c0_i32_1 = arith.constant 0 : i32
    return %c0_i32, %c0_i32_0 : i32, i32
  }
  func.func @transform_14(%arg0: i32) -> (i32, i32, i32) {
    %c0_i32 = arith.constant 0 : i32
    %c0_i32_0 = arith.constant 0 : i32
    %c0_i32_1 = arith.constant 0 : i32
    return %arg0, %c0_i32, %c0_i32_0 : i32, i32, i32
  }
  func.func @transform_15(%arg0: i32) -> (i32, i32, i32) {
    %c0_i32 = arith.constant 0 : i32
    %c0_i32_0 = arith.constant 0 : i32
    %c0_i32_1 = arith.constant 0 : i32
    return %arg0, %c0_i32, %c0_i32_0 : i32, i32, i32
  }
}

</mosaic_0001>

<bundles_post_ra>
// kernel: tpu_custom_call.1
= control target key start
LH: loop header
LB: loop body
LE: loop exit
PB: predicated region body
PF: predicated region fallthrough
CT: control target
= control target key end

     0   :  { %s10533_s0 = inlined_call_operand.hbm [shape: f32[16,16,32], index: 0, kind: input, shape index: {}]   ;;  %s10534_s1 = inlined_call_operand.vmem [shape: f32[1,32], index: 1, kind: input, shape index: {}]   ;;  %s10535_s2 = inlined_call_operand.vmem [shape: f32[1,32], index: 2, kind: input, shape index: {}]   ;;  %s10536_s3 = inlined_call_operand.vmem [shape: bf16[32,96], index: 3, kind: input, shape index: {}]   ;;  %s10537_s4 = inlined_call_operand.vmem [shape: f32[1,96], index: 4, kind: input, shape index: {}]   ;;  %s10538_s5 = inlined_call_operand.vmem [shape: bf16[4,16,16], index: 5, kind: input, shape index: {}]   ;;  %s10539_s6 = inlined_call_operand.vmem [shape: bf16[32,32], index: 6, kind: input, shape index: {}]   ;;  %s10540_s7 = inlined_call_operand.vmem [shape: f32[1,32], index: 7, kind: input, shape index: {}]   ;;  %s10541_s8 = inlined_call_operand.vmem [shape: f32[1,32], index: 8, kind: input, shape index: {}]   ;;  %s10542_s9 = inlined_call_operand.hbm [shape: f32[1,32], index: 9, kind: input, shape index: {}]   ;;  %s10543_s10 = inlined_call_operand.vmem [shape: bf16[32,128], index: 10, kind: input, shape index: {}]   ;;  %s10544_s11 = inlined_call_operand.hbm [shape: f32[1,128], index: 11, kind: input, shape index: {}]   ;;  %s10545_s12 = inlined_call_operand.vmem [shape: bf16[128,32], index: 12, kind: input, shape index: {}]   ;;  %s10546_s13 = inlined_call_operand.vmem [shape: f32[1,32], index: 13, kind: input, shape index: {}]   ;;  %s10547_s14 = inlined_call_operand.hbm [shape: f32[16,16,32], index: 14, kind: output, shape index: {0}]   ;;  %s10548_s15 = inlined_call_operand.hbm [shape: f32[16,16,32], index: 15, kind: output, shape index: {1}]  }
   0x1   :  { %10564 = sst [smem:[#allocation33_spill]] %s10533_s0 }
   0x2   :  { %10565 = sst [smem:[#allocation34_spill]] %s10534_s1 }
   0x3   :  { %10566 = sst [smem:[#allocation35_spill]] %s10542_s9 }
   0x4   :  { %10567 = sst [smem:[#allocation36_spill]] %s10547_s14 }
   0x5   :  { %10568 = sst [smem:[#allocation37_spill]] %s10548_s15 }
   0x6   :  { %21 = vsyncpa [#allocation3], 0 }
   0x7   :  { %23 = vsyncpa [#allocation3 + $0x1], 0 }
   0x8   :  { %24 = vsyncpa [#allocation6], 0 }
   0x9   :  { %25 = vsyncpa [#allocation4], 0 }
   0xa   :  { %27 = vsyncpa [#allocation4 + $0x1], 0 }
   0xb   :  { %28 = vsyncpa [#allocation10], 0 }
   0xc   :  { %30 = vsyncpa [#allocation10 + $0x1], 0  ;;  %s8076_s18 = smov 0   ;;  %s8078_s19 = smov 0  }
   0xd   :  { %s8080_s20 = smov 0   ;;  %s8082_s21 = smov 0  }
   0xe LB: > { %10569 = sst [smem:[#allocation15_spill]] %s7960_s18  ;;  %s8097_s22 = sadd.s32 4294967295, %s7972_s21   ;;  %s7972_s21 = sphi %s8082_s21, %s10624_s21   ;;  %s7968_s20 = sphi %s8080_s20, %s10626_s20   ;;  %s7964_s19 = sphi %s8078_s19, %s10628_s19   ;;  %s7960_s18 = sphi %s8076_s18, %s10627_s18  }
   0xf   : > { %10570 = sst [smem:[#allocation16_spill]] %s7968_s20  ;;  %s6407_s23 = sadd.s32 4294967294, %s7972_s21  }
  0x10   : > { %s8101_s24 = sadd.s32 1, %s7972_s21   ;;  %s43_s25 = sadd.s32 1, %s7968_s20 }
  0x11   : > { %10571 = sst [smem:[#allocation17_spill]] %s8101_s24  ;;  %s40_s26 = ssub.s32 %s7972_s21, %s8101_s24 }
  0x12   : > { %p50_p0 = scmp.ne.s32.totalorder %s7968_s20, %s7964_s19  ;;  %p41_p1 = scmp.eq.s32.totalorder %s40_s26, 0 }
  0x13   : > { %p51_p2 = scmp.eq.s32.totalorder %s7972_s21, 0  ;;  %p56_p3 = scmp.ne.s32.totalorder %s7964_s19, %s7960_s18 }
  0x14   : > { %p10549_p4 = scmp.eq.s32.totalorder %s8097_s22, 0  ;;  %p353_p7 = scmp.eq.s32.totalorder %s8097_s22, 1 }
  0x15   : > { %s8113_s27 = scalar_select %p41_p1, %s7968_s20, %s43_s25  }
  0x16   : > { %p8115_p5 = por %p51_p2, %p50_p0  ;;  %p8121_p6 = por %p10549_p4, %p56_p3 }
  0x17   : > { %10572 = sst [smem:[#allocation18_spill]] %s8113_s27  ;;  %p359_p8 = scmp.eq.s32.totalorder %s6407_s23, 1 }
  0x18   : > { %s10574_s29 = scalar_select %p8121_p6, 1, 0 }
  0x19   : > { %p6408_p9 = scmp.ge.s32.totalorder %s7972_s21, 1  ;;  %p392_p10 = scmp.lt.s32.totalorder %s7972_s21, 3 }
  0x1a   : > { %p8128_p11 = por %p353_p7, %p50_p0  ;;  %p8132_p12 = por %p359_p8, %p56_p3 }
  0x1b   : > { %p8136_p13 = pnand %p6408_p9, %p392_p10  ;;  %s7974_s25 = smov [#allocation5]  }
  0x1c   : > { %s10575_s30 = scalar_select %p8128_p11, 1, 0 }
  0x1d   : > { %s10577_s16 = scalar_select %p8132_p12, 1, 0 }
  0x1e   : > { %10576 = sst [smem:[#allocation19_spill]] %s10575_s30  ;;  %p7339_p2 = pneg %p8136_p13 }
  0x1f   : > { %10578 = sst [smem:[#allocation20_spill]] %s10577_s16  ;;  %s429_s23 = sshll.u32 %s7974_s25, 4  ;;  %s430_s23 = int_to_ptr.vmem [resolvable:$true] %s429_s23 }
  0x20   : > { %s10579_s17 = scalar_select %p8136_p13, 1, 0 }
  0x21   : > { %p7359_p4 = scmp.lt.s32.totalorder %s7972_s21, 2  ;;  %p10580_p0 = scmp.eq.s32.totalorder %s8097_s22, 0 }
  0x22   : > { %s7975_s24 = smov [#allocation7]   ;;  %s7805_s25 = scalar_lea.vmem %s430_s23, 16 }
  0x23   : > { %p8146_p7 = pnand %p7339_p2, %p10580_p0  ;;  %p8152_p3 = pnand %p7359_p4, %p8115_p5 }
  0x24   : > { %s443_s16 = sshll.u32 %s7975_s24, 4  ;;  %p7806_p9 = scmp.ne.s32.totalorder %s430_s23, %s7805_s25  ;;  %s444_s16 = int_to_ptr.vmem [resolvable:$true] %s443_s16 }
  0x25   : > { %p7796_p8 = pneg %p8146_p7  ;;  %s7812_s18 = scalar_lea.vmem %s430_s23, 32 }
  0x26   : > { %p7813_p0 = scmp.lt.s32.totalorder %s430_s23, %s430_s23  ;;  %p7814_p1 = scmp.lt.s32.totalorder %s7812_s18, %s7805_s25 }
  0x27   : > { %p7808_p10 = pnand %p7806_p9, %p7796_p8 }
  0x28   : > { %p7815_p12 = por %p7814_p1, %p7813_p0 }
  0x29   : > { %p7809_p2 = pneg %p7808_p10 }
  0x2b   : > { %p7816_p11 = pnand %p7815_p12, %p7809_p2 }
  0x2d   : > { %7819 = shalt.err (!%p7816_p11)
}
  0x2e   : > { %s10583_s9 = sld [smem:[#allocation35_spill]]  ;;  %s460_s24 = sand.u32 1, %s7968_s20  }
  0x2f   : > { %s7831_s15 = scalar_lea.vmem %s444_s16, 16  ;;  %s7838_s30 = scalar_lea.vmem %s444_s16, 32 }
  0x30   : > { %p7832_p4 = scmp.ne.s32.totalorder %s444_s16, %s7831_s15  ;;  %p7839_p10 = scmp.lt.s32.totalorder %s444_s16, %s444_s16 }
  0x31   : > { %p7840_p1 = scmp.lt.s32.totalorder %s7838_s30, %s7831_s15 }
  0x32   : > { %p7834_p5 = pnand %p7832_p4, %p7796_p8 }
  0x33   : > { %p7841_p12 = por %p7840_p1, %p7839_p10 }
  0x34   : > { %7342 = dma.hbm_to_vmem [thread:$0]  (!%p8146_p7), %s10583_s9, 16, %s430_s23, [#allocation6]  }
  0x35   : > { %p7835_p9 = pneg %p7834_p5 }
  0x37   : > { %p7842_p11 = pnand %p7841_p12, %p7835_p9 }
  0x39   : > { %7845 = shalt.err (!%p7842_p11)
}
  0x3a   : > { %7345 = dma.hbm_to_vmem [thread:$0]  (!%p8146_p7), %s10544_s11, 16, %s444_s16, [#allocation6]  }
  0x3b   : > { %s6412_s23 = sshll.u32 %s460_s24, 7  ;;  %s6565_s25 = sshll.u32 %s7972_s21, 11 }
  0x3c   : > { %s10584_s0 = sld [smem:[#allocation33_spill]]  ;;  %s464_s15 = scalar_lea.vmem [#allocation2], %s6412_s23 }
  0x3d   : > { %s472_s30 = sshll.u32 %s464_s15, 4  ;;  %s8183_s26 = scalar_lea.sflag [#allocation3], %s460_s24  ;;  %s8181_s30 = int_to_ptr.vmem [resolvable:$true] %s472_s30 }
  0x3e   : > { %p7848_p7 = pneg %p8152_p3 }
  0x42   : > { %s8179_s20 = scalar_lea.hbm %s10584_s0, %s6565_s25  ;;  %s7851_s9 = scalar_lea.hbm %s10584_s0, 4096 }
  0x43   : > { %s7846_s18 = scalar_lea.hbm %s8179_s20, 2048  ;;  %p7852_p4 = scmp.lt.s32.totalorder %s8179_s20, %s10584_s0 }
  0x44   : > { %p7847_p8 = scmp.ne.s32.totalorder %s8179_s20, %s7846_s18  ;;  %p7853_p5 = scmp.lt.s32.totalorder %s7851_s9, %s7846_s18 }
  0x46   : > { %p7849_p2 = pnand %p7848_p7, %p7847_p8  ;;  %p7854_p9 = por %p7853_p5, %p7852_p4 }
  0x48   : > { %p7850_p0 = pneg %p7849_p2 }
  0x4a   : > { %p7855_p10 = pnand %p7854_p9, %p7850_p0 }
  0x4c   : > { %7858 = shalt.err (!%p7855_p10)
}
  0x4d   : > { %s7859_s24 = scalar_lea.vmem %s8181_s30, 2048  ;;  %s7976_s23 = smov [#allocation2]  }
  0x4e   : > { %p7860_p1 = scmp.ne.s32.totalorder %s8181_s30, %s7859_s24  ;;  %s7864_s15 = sshll.u32 %s7976_s23, 4  ;;  %s7865_s15 = int_to_ptr.vmem [resolvable:$false] %s7864_s15 }
  0x4f   : > { %s7866_s16 = scalar_lea.vmem %s7865_s15, 4096  ;;  %p7867_p8 = scmp.lt.s32.totalorder %s8181_s30, %s7865_s15 }
  0x50   : > { %p7862_p12 = pnand %p7860_p1, %p7848_p7  ;;  %p7868_p2 = scmp.lt.s32.totalorder %s7866_s16, %s7859_s24 }
  0x52   : > { %p7863_p11 = pneg %p7862_p12  ;;  %p7869_p6 = por %p7868_p2, %p7867_p8 }
  0x54   : > { %p7870_p13 = pnand %p7869_p6, %p7863_p11 }
  0x56   : > { %7873 = shalt.err (!%p7870_p13)
}
  0x57   : > { %s7977_s18 = smov 128   ;;  %s7978_s14 = smov 8  }
  0x58   : > { %7349 = dma.hbm_to_vmem [thread:$0]  (!%p8152_p3), %s8179_s20, 2048, %s8181_s30, %s8183_s26, %s7977_s18, %s7977_s18, %s7978_s14  }
  0x59   : > { %p10585_p7 = scmp.ne.s32.totalorder %s10579_s17, 0 }
  0x5b   : > { %484 = sbr.rel (%p10585_p7) target bundleno = 4776 (0x12a8), region = 76 }
  0x60   : > { %s8207_s9 = sand.u32 1, %s7964_s19   ;;  %p10586_p6 = scmp.ne.s32.totalorder %s10574_s29, 0 }
  0x61   : > { %s8210_s25 = sshll.u32 %s8207_s9, 7  ;;  %s487_s28 = scalar_lea.sflag [#allocation3], %s8207_s9 }
  0x62   : > { %s8214_s24 = scalar_lea.vmem [#allocation2], %s8210_s25 }
  0x63   : > { %7943 = dma.done.wait (%p10586_p6), %s487_s28, 2048  }
  0x64   : > { %7945 = vsyncadd (%p10586_p6), %s487_s28, 4294965248  ;;  %p10587_p13 = scmp.eq.s32.totalorder %s8097_s22, 0 }
  0x66   : > { %7947 = dma.done.wait (%p10587_p13), [#allocation6], 32   ;;  %p10588_p3 = pmov %p10587_p13 }
  0x67   : > { %vm572_vm0 = vcmask 261120   ;;  %v554_v0 = vld [vmem:[%s8214_s24] sm:$0xff]  ;;  %v556_v1 = vld [vmem:[%s8214_s24 + $0x10] sm:$0xff]  ;;  %v555_v2 = vld [vmem:[%s8214_s24 + $0x8] sm:$0xff]  ;;  %s10589_s1 = sld [smem:[#allocation34_spill]]  ;;  %vm7980_vm1 = vmmov 0  }
  0x68   : > { %7949 = vsyncadd (%p10588_p3), [#allocation6], 4294967264  ;;  %v573_v3 = vsel %vm572_vm0, %v554_v0, 0.0  ;;  %v579_v4 = vsel %vm572_vm0, %v556_v1, 0.0  ;;  %v557_v5 = vld [vmem:[%s8214_s24 + $0x18] sm:$0xff]  ;;  %v8231_v6 = vld [vmem:[%s8214_s24 + $0x20] sm:$0xff] }
  0x69   : > { %574 = vadd.xlane.f32.xlu0 %v573_v3  ;;  %580 = vadd.xlane.f32.xlu1 %v579_v4  ;;  %v8234_v7 = vld [vmem:[%s8214_s24 + $0x28] sm:$0xff]  ;;  %v576_v8 = vsel %vm572_vm0, %v555_v2, 0.0  ;;  %v582_v9 = vsel %vm572_vm0, %v557_v5, 0.0  ;;  %v8239_v10 = vld [vmem:[%s8214_s24 + $0x30] sm:$0xff]  ;;  %v8242_v11 = vld [vmem:[%s8214_s24 + $0x38] sm:$0xff]  ;;  %v585_v12 = vsel %vm572_vm0, %v8231_v6, 0.0 }
  0x6a   : > { %v588_v13 = vsel %vm572_vm0, %v8234_v7, 0.0  ;;  %v591_v14 = vsel %vm572_vm0, %v8239_v10, 0.0  ;;  %v594_v15 = vsel %vm572_vm0, %v8242_v11, 0.0  ;;  %v8253_v16 = vld [vmem:[%s8214_s24 + $0x40] sm:$0xff]  ;;  %v8256_v17 = vld [vmem:[%s8214_s24 + $0x48] sm:$0xff]  ;;  %v8263_v20 = vld [vmem:[%s8214_s24 + $0x50] sm:$0xff] }
  0x6b   : > { %v597_v18 = vsel %vm572_vm0, %v8253_v16, 0.0  ;;  %v600_v19 = vsel %vm572_vm0, %v8256_v17, 0.0  ;;  %v8266_v21 = vld [vmem:[%s8214_s24 + $0x58] sm:$0xff]  ;;  %v603_v22 = vsel %vm572_vm0, %v8263_v20, 0.0  ;;  %v8273_v24 = vld [vmem:[%s8214_s24 + $0x60] sm:$0xff]  ;;  %v8276_v25 = vld [vmem:[%s8214_s24 + $0x68] sm:$0xff] }
  0x6c   : > { %v606_v23 = vsel %vm572_vm0, %v8266_v21, 0.0  ;;  %v609_v26 = vsel %vm572_vm0, %v8273_v24, 0.0  ;;  %v612_v27 = vsel %vm572_vm0, %v8276_v25, 0.0  ;;  %v8283_v28 = vld [vmem:[%s8214_s24 + $0x70] sm:$0xff]  ;;  %v8286_v29 = vld [vmem:[%s8214_s24 + $0x78] sm:$0xff]  ;;  %s7981_s14 = smov 96  }
  0x6d   : > { %577 = vadd.xlane.f32.xlu0 %v576_v8  ;;  %583 = vadd.xlane.f32.xlu1 %v582_v9  ;;  %v615_v30 = vsel %vm572_vm0, %v8283_v28, 0.0  ;;  %v618_v31 = vsel %vm572_vm0, %v8286_v29, 0.0  ;;  %s7982_s28 = smov 64   ;;  %vm1005_vm2 = vcmask 64512   ;;  %vm1403_vm3 = vcmask 130048   ;;  %s7983_s29 = smov 88  }
  0x6e   : > { %s7984_s17 = smov 120   ;;  %s7985_s23 = smov 56   ;;  %vm2974_vm4 = vcmask 1043456  }
  0x6f   : > { %s7986_s15 = smov 80   ;;  %s7987_s16 = smov 112  }
  0x70   : > { %s7989_s30 = smov 72   ;;  %s7990_s26 = smov 104  }
  0x71   : > { %586 = vadd.xlane.f32.xlu0 %v585_v12  ;;  %589 = vadd.xlane.f32.xlu1 %v588_v13  ;;  %s10349_s27 = scalar_lea.vmem [#allocation9], %s8210_s25 }
  0x75   : > { %592 = vadd.xlane.f32.xlu0 %v591_v14  ;;  %595 = vadd.xlane.f32.xlu1 %v594_v15 }
  0x79   : > { %598 = vadd.xlane.f32.xlu0 %v597_v18  ;;  %601 = vadd.xlane.f32.xlu1 %v600_v19 }
  0x7d   : > { %604 = vadd.xlane.f32.xlu0 %v603_v22  ;;  %607 = vadd.xlane.f32.xlu1 %v606_v23 }
  0x81   : > { %610 = vadd.xlane.f32.xlu0 %v609_v26  ;;  %613 = vadd.xlane.f32.xlu1 %v612_v27 }
  0x85   : > { %616 = vadd.xlane.f32.xlu0 %v615_v30  ;;  %619 = vadd.xlane.f32.xlu1 %v618_v31 }
  0xf2   : > { %v575_v32 = vpop.xlane.xlu0 %574  ;;  %v581_v33 = vpop.xlane.xlu1 %580 }
  0xf3   : > { %v622_v34 = vmul.f32 0.03125, %v575_v32  ;;  %v624_v35 = vmul.f32 0.03125, %v581_v33 }
  0xf5   : > { %v8292_v36 = vsub.f32 %v554_v0, %v622_v34  ;;  %v8294_v37 = vsub.f32 %v556_v1, %v624_v35 }
  0xf6   : > { %v578_v38 = vpop.xlane.xlu0 %577  ;;  %v584_v39 = vpop.xlane.xlu1 %583 }
  0xf7   : > { %v623_v40 = vmul.f32 0.03125, %v578_v38  ;;  %v625_v41 = vmul.f32 0.03125, %v584_v39  ;;  %v654_v42 = vmul.f32 %v8292_v36, %v8292_v36  ;;  %v656_v43 = vmul.f32 %v8294_v37, %v8294_v37 }
  0xf9   : > { %v8300_v44 = vsub.f32 %v555_v2, %v623_v40  ;;  %v8302_v45 = vsub.f32 %v557_v5, %v625_v41  ;;  %v670_v46 = vsel %vm572_vm0, %v654_v42, 0.0  ;;  %v676_v49 = vsel %vm572_vm0, %v656_v43, 0.0 }
  0xfa   : > { %671 = vadd.xlane.f32.xlu0 %v670_v46  ;;  %v587_v47 = vpop.xlane.xlu0 %586  ;;  %v590_v48 = vpop.xlane.xlu1 %589 }
  0xfb   : > { %v626_v50 = vmul.f32 0.03125, %v587_v47  ;;  %v627_v51 = vmul.f32 0.03125, %v590_v48  ;;  %v655_v52 = vmul.f32 %v8300_v44, %v8300_v44  ;;  %v657_v53 = vmul.f32 %v8302_v45, %v8302_v45 }
  0xfd   : > { %v8311_v54 = vsub.f32 %v8231_v6, %v626_v50  ;;  %v8314_v55 = vsub.f32 %v8234_v7, %v627_v51  ;;  %v673_v56 = vsel %vm572_vm0, %v655_v52, 0.0  ;;  %v679_v59 = vsel %vm572_vm0, %v657_v53, 0.0  ;;  %v7415_v53 = vld [vmem:[%s10536_s3] sm:$0xff]  }
  0xfe   : > { %677 = vadd.xlane.f32.xlu0 %v676_v49  ;;  %674 = vadd.xlane.f32.xlu1 %v673_v56  ;;  %v593_v57 = vpop.xlane.xlu0 %592  ;;  %v596_v58 = vpop.xlane.xlu1 %595 }
  0xff   : > { %v628_v60 = vmul.f32 0.03125, %v593_v57  ;;  %v629_v61 = vmul.f32 0.03125, %v596_v58  ;;  %v658_v62 = vmul.f32 %v8311_v54, %v8311_v54  ;;  %v659_v63 = vmul.f32 %v8314_v55, %v8314_v55 }
 0x101   : > { %v8323_v0 = vsub.f32 %v8239_v10, %v628_v60  ;;  %v8326_v1 = vsub.f32 %v8242_v11, %v629_v61  ;;  %v682_v2 = vsel %vm572_vm0, %v658_v62, 0.0  ;;  %v685_v5 = vsel %vm572_vm0, %v659_v63, 0.0 }
 0x102   : > { %680 = vadd.xlane.f32.xlu1 %v679_v59  ;;  %683 = vadd.xlane.f32.xlu0 %v682_v2  ;;  %v599_v3 = vpop.xlane.xlu0 %598  ;;  %v602_v4 = vpop.xlane.xlu1 %601 }
 0x103   : > { %v630_v6 = vmul.f32 0.03125, %v599_v3  ;;  %v631_v7 = vmul.f32 0.03125, %v602_v4  ;;  %v660_v8 = vmul.f32 %v8323_v0, %v8323_v0  ;;  %v661_v9 = vmul.f32 %v8326_v1, %v8326_v1 }
 0x105   : > { %v8335_v10 = vsub.f32 %v8253_v16, %v630_v6  ;;  %v8338_v11 = vsub.f32 %v8256_v17, %v631_v7  ;;  %v688_v12 = vsel %vm572_vm0, %v660_v8, 0.0  ;;  %v691_v15 = vsel %vm572_vm0, %v661_v9, 0.0 }
 0x106   : > { %686 = vadd.xlane.f32.xlu1 %v685_v5  ;;  %689 = vadd.xlane.f32.xlu0 %v688_v12  ;;  %v605_v13 = vpop.xlane.xlu0 %604  ;;  %v608_v14 = vpop.xlane.xlu1 %607 }
 0x107   : > { %v632_v18 = vmul.f32 0.03125, %v605_v13  ;;  %v633_v19 = vmul.f32 0.03125, %v608_v14  ;;  %v662_v22 = vmul.f32 %v8335_v10, %v8335_v10  ;;  %v663_v16 = vmul.f32 %v8338_v11, %v8338_v11 }
 0x109   : > { %v8347_v23 = vsub.f32 %v8263_v20, %v632_v18  ;;  %v8350_v17 = vsub.f32 %v8266_v21, %v633_v19  ;;  %v694_v26 = vsel %vm572_vm0, %v662_v22, 0.0  ;;  %v697_v31 = vsel %vm572_vm0, %v663_v16, 0.0 }
 0x10a   : > { %692 = vadd.xlane.f32.xlu1 %v691_v15  ;;  %695 = vadd.xlane.f32.xlu0 %v694_v26  ;;  %v611_v27 = vpop.xlane.xlu0 %610  ;;  %v614_v30 = vpop.xlane.xlu1 %613 }
 0x10b   : > { %v634_v32 = vmul.f32 0.03125, %v611_v27  ;;  %v635_v33 = vmul.f32 0.03125, %v614_v30  ;;  %v664_v34 = vmul.f32 %v8347_v23, %v8347_v23  ;;  %v665_v20 = vmul.f32 %v8350_v17, %v8350_v17 }
 0x10d   : > { %v8359_v35 = vsub.f32 %v8273_v24, %v634_v32  ;;  %v8362_v21 = vsub.f32 %v8276_v25, %v635_v33  ;;  %v700_v38 = vsel %vm572_vm0, %v664_v34, 0.0  ;;  %v703_v41 = vsel %vm572_vm0, %v665_v20, 0.0  ;;  %v8393_v32 = vld [vmem:[%s10589_s1] ss:$0 sm:$0xff] }
 0x10e   : > { %698 = vadd.xlane.f32.xlu1 %v697_v31  ;;  %701 = vadd.xlane.f32.xlu0 %v700_v38  ;;  %v617_v39 = vpop.xlane.xlu0 %616  ;;  %v620_v40 = vpop.xlane.xlu1 %619 }
 0x10f   : > { %v636_v42 = vmul.f32 0.03125, %v617_v39  ;;  %v637_v43 = vmul.f32 0.03125, %v620_v40  ;;  %v666_v46 = vmul.f32 %v8359_v35, %v8359_v35  ;;  %v667_v24 = vmul.f32 %v8362_v21, %v8362_v21 }
 0x111   : > { %v8371_v47 = vsub.f32 %v8283_v28, %v636_v42  ;;  %v8374_v25 = vsub.f32 %v8286_v29, %v637_v43  ;;  %v706_v48 = vsel %vm572_vm0, %v666_v46, 0.0  ;;  %v709_v49 = vsel %vm572_vm0, %v667_v24, 0.0  ;;  %v7414_v29 = vld [vmem:[%s10536_s3 + $0x8] sm:$0xff]   ;;  %v8400_v24 = vld [vmem:[%s10535_s2] ss:$0 sm:$0xff] }
 0x112   : > { %704 = vadd.xlane.f32.xlu1 %v703_v41  ;;  %707 = vadd.xlane.f32.xlu0 %v706_v48 }
 0x113   : > { %v668_v50 = vmul.f32 %v8371_v47, %v8371_v47  ;;  %v669_v51 = vmul.f32 %v8374_v25, %v8374_v25  ;;  %6789 = vmatprep.subr.bf16.mxu0 %v7414_v29  ;;  %7317 = vmatprep.subr.bf16.mxu1 %v7414_v29 }
 0x114   : > { %6790 = vmatpush3.bf16.msra.mxu0 %v7414_v29  ;;  %7319 = vmatpush3.bf16.msra.mxu1 %v7414_v29 }
 0x115   : > { %v712_v52 = vsel %vm572_vm0, %v668_v50, 0.0  ;;  %v715_v28 = vsel %vm572_vm0, %v669_v51, 0.0  ;;  %6791 = vmatprep.subr.bf16.mxu0 %v7415_v53  ;;  %7318 = vmatprep.subr.bf16.mxu1 %v7415_v53 }
 0x116   : > { %710 = vadd.xlane.f32.xlu1 %v709_v49  ;;  %713 = vadd.xlane.f32.xlu0 %v712_v52 }
 0x118   : > { %6792 = vmatpush3.bf16.msra.mxu0 %v7415_v53  ;;  %7320 = vmatpush3.bf16.msra.mxu1 %v7415_v53 }
 0x11a   : > { %716 = vadd.xlane.f32.xlu1 %v715_v28 }
 0x183   : > { %v672_v56 = vpop.xlane.xlu0 %671 }
 0x184   : > { %v718_v57 = vmul.f32 0.03125, %v672_v56 }
 0x186   : > { %v734_v58 = vadd.f32 1e-05, %v718_v57 }
 0x187   : > { %v675_v59 = vpop.xlane.xlu1 %674  ;;  %v678_v60 = vpop.xlane.xlu0 %677 }
 0x188   : > { %7426 = vrsqrt.f32 %v734_v58  ;;  %v719_v61 = vmul.f32 0.03125, %v675_v59  ;;  %v720_v62 = vmul.f32 0.03125, %v678_v60 }
 0x18a   : > { %v735_v63 = vadd.f32 1e-05, %v719_v61  ;;  %v736_v2 = vadd.f32 1e-05, %v720_v62 }
 0x18b   : > { %v681_v3 = vpop.xlane.xlu1 %680  ;;  %v684_v4 = vpop.xlane.xlu0 %683 }
 0x18c   : > { %7428 = vrsqrt.f32 %v735_v63  ;;  %v721_v5 = vmul.f32 0.03125, %v681_v3  ;;  %v722_v6 = vmul.f32 0.03125, %v684_v4 }
 0x18d   : > { %7430 = vrsqrt.f32 %v736_v2 }
 0x18e   : > { %v737_v7 = vadd.f32 1e-05, %v721_v5  ;;  %v738_v8 = vadd.f32 1e-05, %v722_v6 }
 0x18f   : > { %v687_v9 = vpop.xlane.xlu1 %686  ;;  %v690_v12 = vpop.xlane.xlu0 %689 }
 0x190   : > { %7432 = vrsqrt.f32 %v737_v7  ;;  %v723_v13 = vmul.f32 0.03125, %v687_v9  ;;  %v724_v14 = vmul.f32 0.03125, %v690_v12 }
 0x191   : > { %7434 = vrsqrt.f32 %v738_v8 }
 0x192   : > { %v739_v15 = vadd.f32 1e-05, %v723_v13  ;;  %v740_v18 = vadd.f32 1e-05, %v724_v14 }
 0x193   : > { %v693_v19 = vpop.xlane.xlu1 %692  ;;  %v696_v22 = vpop.xlane.xlu0 %695 }
 0x194   : > { %7436 = vrsqrt.f32 %v739_v15  ;;  %v725_v16 = vmul.f32 0.03125, %v693_v19  ;;  %v726_v26 = vmul.f32 0.03125, %v696_v22 }
 0x195   : > { %v7427_v27 = vpop.eup %7426  ;;  %7438 = vrsqrt.f32 %v740_v18 }
 0x196   : > { %v741_v30 = vadd.f32 1e-05, %v725_v16  ;;  %v742_v31 = vadd.f32 1e-05, %v726_v26  ;;  %v766_v33 = vmul.f32 %v7427_v27, %v8292_v36 }
 0x197   : > { %v699_v34 = vpop.xlane.xlu1 %698  ;;  %v702_v20 = vpop.xlane.xlu0 %701 }
 0x198   : > { %7440 = vrsqrt.f32 %v741_v30  ;;  %v727_v38 = vmul.f32 0.03125, %v699_v34  ;;  %v728_v39 = vmul.f32 0.03125, %v702_v20  ;;  %v788_v41 = vmul.f32 %v8393_v32, %v766_v33 }
 0x199   : > { %v7429_v40 = vpop.eup %7428  ;;  %7442 = vrsqrt.f32 %v742_v31 }
 0x19a   : > { %v7431_v42 = vpop.eup %7430  ;;  %v743_v43 = vadd.f32 1e-05, %v727_v38  ;;  %v744_v46 = vadd.f32 1e-05, %v728_v39  ;;  %v767_v48 = vmul.f32 %v7429_v40, %v8300_v44  ;;  %v810_v53 = vadd.f32 %v8400_v24, %v788_v41 }
 0x19b   : > { %v705_v36 = vpop.xlane.xlu1 %704  ;;  %v708_v49 = vpop.xlane.xlu0 %707  ;;  %v768_v50 = vmul.f32 %v7431_v42, %v8294_v37 }
 0x19c   : > { %7444 = vrsqrt.f32 %v743_v43  ;;  %v729_v51 = vmul.f32 0.03125, %v705_v36  ;;  %v730_v52 = vmul.f32 0.03125, %v708_v49  ;;  %v789_v28 = vmul.f32 %v8393_v32, %v767_v48 }
 0x19d   : > { %v7433_v29 = vpop.eup %7432  ;;  %7446 = vrsqrt.f32 %v744_v46  ;;  %v790_v37 = vmul.f32 %v8393_v32, %v768_v50 }
 0x19e   : > { %v7435_v56 = vpop.eup %7434  ;;  %v745_v57 = vadd.f32 1e-05, %v729_v51  ;;  %v746_v58 = vadd.f32 1e-05, %v730_v52  ;;  %v811_v59 = vadd.f32 %v8400_v24, %v789_v28  ;;  %v769_v44 = vmul.f32 %v7433_v29, %v8302_v45 }
 0x19f   : > { %v711_v60 = vpop.xlane.xlu1 %710  ;;  %v714_v61 = vpop.xlane.xlu0 %713  ;;  %v770_v62 = vmul.f32 %v7435_v56, %v8311_v54  ;;  %v812_v54 = vadd.f32 %v8400_v24, %v790_v37 }
 0x1a0   : > { %7448 = vrsqrt.f32 %v745_v57  ;;  %v731_v63 = vmul.f32 0.03125, %v711_v60  ;;  %v732_v2 = vmul.f32 0.03125, %v714_v61  ;;  %v826_v3 = vpack.c.bf16 %v811_v59, %v810_v53 }
 0x1a1   : > { %v7437_v4 = vpop.eup %7436  ;;  %7450 = vrsqrt.f32 %v746_v58  ;;  %v791_v5 = vmul.f32 %v8393_v32, %v769_v44  ;;  %v792_v6 = vmul.f32 %v8393_v32, %v770_v62 }
 0x1a2   : > { %v7439_v7 = vpop.eup %7438  ;;  %v747_v8 = vadd.f32 1e-05, %v731_v63  ;;  %v748_v9 = vadd.f32 1e-05, %v732_v2  ;;  %6793 = vmatprep.mubr.msk.bf16.mxu0 %vm572_vm0, %v826_v3  ;;  %v771_v45 = vmul.f32 %v7437_v4, %v8314_v55  ;;  %v10562_v4 = vmov 0.0  }
 0x1a3   : > { %v717_v12 = vpop.xlane.xlu1 %716  ;;  %v813_v13 = vadd.f32 %v8400_v24, %v791_v5  ;;  %v772_v14 = vmul.f32 %v7439_v7, %v8323_v0  ;;  %v814_v16 = vadd.f32 %v8400_v24, %v792_v6  ;;  %6809 = vmatprep.subr.bf16.mxu1 %v10562_v4  ;;  %6833 = vmatprep.subr.bf16.mxu0 %v10562_v4  ;;  %v6424_v5 = vld [vmem:[%s10537_s4] ss:$0 sm:$0xff] }
 0x1a4   : > { %7452 = vrsqrt.f32 %v747_v8  ;;  %v733_v15 = vmul.f32 0.03125, %v717_v12  ;;  %v793_v18 = vmul.f32 %v8393_v32, %v771_v45 }
 0x1a5   : > { %v7441_v19 = vpop.eup %7440  ;;  %7454 = vrsqrt.f32 %v748_v9  ;;  %v827_v22 = vpack.c.bf16 %v813_v13, %v812_v54  ;;  %v794_v31 = vmul.f32 %v8393_v32, %v772_v14 }
 0x1a6   : > { %v7443_v26 = vpop.eup %7442  ;;  %v749_v27 = vadd.f32 1e-05, %v733_v15  ;;  %v815_v55 = vadd.f32 %v8400_v24, %v793_v18  ;;  %v773_v30 = vmul.f32 %v7441_v19, %v8326_v1 }
 0x1a7   : > { %6794 = vmatmul.mubr.msk.bf16.vlgmr.msra.gmra.mxu0 %vm572_vm0, %v827_v22  ;;  %v774_v0 = vmul.f32 %v7443_v26, %v8335_v10  ;;  %v816_v39 = vadd.f32 %v8400_v24, %v794_v31 }
 0x1a8   : > { %7456 = vrsqrt.f32 %v749_v27  ;;  %v828_v33 = vpack.c.bf16 %v815_v55, %v814_v16  ;;  %v795_v34 = vmul.f32 %v8393_v32, %v773_v30 }
 0x1a9   : > { %v7445_v20 = vpop.eup %7444  ;;  %v796_v41 = vmul.f32 %v8393_v32, %v774_v0 }
 0x1aa   : > { %v7447_v38 = vpop.eup %7446  ;;  %6797 = vmatprep.mubr.msk.bf16.mxu0 %vm572_vm0, %v828_v33  ;;  %v817_v40 = vadd.f32 %v8400_v24, %v795_v34  ;;  %v775_v1 = vmul.f32 %v7445_v20, %v8338_v11 }
 0x1ab   : > { %v776_v42 = vmul.f32 %v7447_v38, %v8347_v23  ;;  %v818_v36 = vadd.f32 %v8400_v24, %v796_v41 }
 0x1ac   : > { %v829_v43 = vpack.c.bf16 %v817_v40, %v816_v39  ;;  %v797_v10 = vmul.f32 %v8393_v32, %v775_v1 }
 0x1ad   : > { %v7449_v46 = vpop.eup %7448  ;;  %v798_v51 = vmul.f32 %v8393_v32, %v776_v42 }
 0x1ae   : > { %v7451_v48 = vpop.eup %7450  ;;  %v819_v49 = vadd.f32 %v8400_v24, %v797_v10  ;;  %v777_v50 = vmul.f32 %v7449_v46, %v8350_v17 }
 0x1af   : > { %6798 = vmatmul.mubr.msk.bf16.gmra.mxu0 %vm572_vm0, %v829_v43  ;;  %v778_v11 = vmul.f32 %v7451_v48, %v8359_v35  ;;  %v820_v53 = vadd.f32 %v8400_v24, %v798_v51 }
 0x1b0   : > { %v830_v52 = vpack.c.bf16 %v819_v49, %v818_v36  ;;  %v799_v23 = vmul.f32 %v8393_v32, %v777_v50  ;;  %6835 = vmatprep.mubr.msk.bf16.mxu0 %vm7980_vm1, %v10562_v4 }
 0x1b1   : > { %v7453_v28 = vpop.eup %7452  ;;  %v800_v17 = vmul.f32 %v8393_v32, %v778_v11 }
 0x1b2   : > { %v7455_v29 = vpop.eup %7454  ;;  %6801 = vmatprep.mubr.msk.bf16.mxu1 %vm572_vm0, %v830_v52  ;;  %v821_v56 = vadd.f32 %v8400_v24, %v799_v23  ;;  %v779_v57 = vmul.f32 %v7453_v28, %v8362_v21 }
 0x1b3   : > { %v780_v58 = vmul.f32 %v7455_v29, %v8371_v47  ;;  %v822_v60 = vadd.f32 %v8400_v24, %v800_v17 }
 0x1b4   : > { %v831_v59 = vpack.c.bf16 %v821_v56, %v820_v53  ;;  %v801_v35 = vmul.f32 %v8393_v32, %v779_v57 }
 0x1b5   : > { %v7457_v44 = vpop.eup %7456  ;;  %v802_v62 = vmul.f32 %v8393_v32, %v780_v58 }
 0x1b6   : > { %6802 = vmatmul.mubr.msk.bf16.vlgmr.msra.gmra.mxu1 %vm572_vm0, %v831_v59  ;;  %v823_v61 = vadd.f32 %v8400_v24, %v801_v35  ;;  %v781_v37 = vmul.f32 %v7457_v44, %v8374_v25 }
 0x1b7   : > { %v824_v47 = vadd.f32 %v8400_v24, %v802_v62 }
 0x1b8   : > { %v832_v63 = vpack.c.bf16 %v823_v61, %v822_v60  ;;  %v803_v21 = vmul.f32 %v8393_v32, %v781_v37 }
 0x1ba   : > { %6805 = vmatprep.mubr.msk.bf16.mxu1 %vm572_vm0, %v832_v63  ;;  %v825_v2 = vadd.f32 %v8400_v24, %v803_v21  ;;  %v6571_v21 = vld [vmem:[%s10538_s5] sm:$0xff]  }
 0x1bc   : > { %v833_v3 = vpack.c.bf16 %v825_v2, %v824_v47  ;;  %v8558_v47 = vunpack.c.l.bf16 %v6571_v21 }
 0x1be   : > { %6806 = vmatmul.mubr.msk.bf16.gmra.mxu1 %vm572_vm0, %v833_v3 }
 0x1bf   : > { %6811 = vmatprep.mubr.msk.bf16.mxu1 %vm7980_vm1, %v10562_v4 }
 0x267   : > { %v6795_v25 = vpop.f32.mrf.mxu0 }
 0x268   : > { %v924_v7 = vadd.f32 %v6795_v25, %v6424_v5  ;;  %v8563_v25 = vunpack.c.h.bf16 %v6571_v21 }
 0x269   : > { %v915_v32 = vpop.f32.mrf.mxu0 }
 0x26a   : > { %v916_v9 = vadd.f32 %v6424_v5, %v915_v32 }
 0x26b   : > { %v6796_v6 = vpop.f32.mrf.mxu0 }
 0x26c   : > { %v927_v8 = vadd.f32 %v6796_v6, %v6424_v5 }
 0x26d   : > { %v918_v24 = vpop.f32.mrf.mxu0 }
 0x26e   : > { %v8465_v45 = vpack.c.bf16 %v927_v8, %v924_v7  ;;  %v919_v12 = vadd.f32 %v6424_v5, %v918_v24 }
 0x26f   : > { %v6799_v54 = vpop.f32.mrf.mxu0 }
 0x270   : > { %v8467_v13 = vpack.c.bf16 %v919_v12, %v916_v9  ;;  %1054 = vrot.lane.b32.xlu1 %v8465_v45, %s7981_s14  ;;  %v940_v30 = vadd.f32 %v6799_v54, %v6424_v5 }
 0x271   : > { %v931_v14 = vpop.f32.mrf.mxu0 }
 0x272   : > { %1003 = vrot.lane.b32.xlu0 %v8467_v13, %s7981_s14  ;;  %v932_v19 = vadd.f32 %v6424_v5, %v931_v14 }
 0x273   : > { %v6800_v15 = vpop.f32.mrf.mxu0 }
 0x274   : > { %v943_v26 = vadd.f32 %v6800_v15, %v6424_v5 }
 0x275   : > { %v934_v18 = vpop.f32.mrf.mxu0 }
 0x276   : > { %v935_v22 = vadd.f32 %v6424_v5, %v934_v18  ;;  %v6803_v16 = vpop.f32.mrf.mxu1  ;;  %v8477_v0 = vpack.c.bf16 %v943_v26, %v940_v30 }
 0x277   : > { %v956_v39 = vadd.f32 %v6803_v16, %v6424_v5 }
 0x278   : > { %v8473_v27 = vpack.c.bf16 %v935_v22, %v932_v19  ;;  %v947_v55 = vpop.f32.mrf.mxu1 }
 0x279   : > { %v948_v20 = vadd.f32 %v6424_v5, %v947_v55 }
 0x27a   : > { %1104 = vrot.lane.b32.xlu1 %v8473_v27, %s7981_s14  ;;  %v6804_v31 = vpop.f32.mrf.mxu1 }
 0x27b   : > { %v959_v33 = vadd.f32 %v6804_v31, %v6424_v5 }
 0x27c   : > { %v950_v34 = vpop.f32.mrf.mxu1 }
 0x27d   : > { %v951_v38 = vadd.f32 %v6424_v5, %v950_v34  ;;  %v8483_v41 = vpack.c.bf16 %v959_v33, %v956_v39 }
 0x27e   : > { %1154 = vrot.lane.b32.xlu1 %v8477_v0, %s7981_s14  ;;  %v6807_v40 = vpop.f32.mrf.mxu1 }
 0x27f   : > { %v8481_v1 = vpack.c.bf16 %v951_v38, %v948_v20  ;;  %v972_v10 = vadd.f32 %v6807_v40, %v6424_v5 }
 0x280   : > { %v963_v42 = vpop.f32.mrf.mxu1 }
 0x281   : > { %1204 = vrot.lane.b32.xlu0 %v8481_v1, %s7981_s14  ;;  %v964_v36 = vadd.f32 %v6424_v5, %v963_v42 }
 0x282   : > { %1254 = vrot.lane.b32.xlu1 %v8483_v41, %s7981_s14  ;;  %v6808_v43 = vpop.f32.mrf.mxu1 }
 0x283   : > { %v975_v46 = vadd.f32 %v6808_v43, %v6424_v5 }
 0x284   : > { %v966_v48 = vpop.f32.mrf.mxu1 }
 0x285   : > { %v8489_v49 = vpack.c.bf16 %v975_v46, %v972_v10  ;;  %v967_v50 = vadd.f32 %v6424_v5, %v966_v48 }
 0x287   : > { %v8491_v51 = vpack.c.bf16 %v967_v50, %v964_v36  ;;  %1354 = vrot.lane.b32.xlu1 %v8489_v49, %s7981_s14 }
 0x289   : > { %1304 = vrot.lane.b32.xlu0 %v8491_v51, %s7981_s14  ;;  %s7991_s14 = smov 40  }
 0x28b   : > { %1635 = vrot.lane.b32.xlu1 %v8465_v45, %s7982_s28 }
 0x28d   : > { %1588 = vrot.lane.b32.xlu0 %v8467_v13, %s7982_s28 }
 0x28f   : > { %1729 = vrot.lane.b32.xlu1 %v8477_v0, %s7982_s28 }
 0x293   : > { %1682 = vrot.lane.b32.xlu1 %v8473_v27, %s7982_s28 }
 0x2e2   : > { %v1055_v23 = vpop.permute.xlu1 %1054 }
 0x2e3   : > { %v1060_v28 = vsel %vm1005_vm2, %v1055_v23, 0 }
 0x2e4   : > { %v1004_v11 = vpop.permute.xlu0 %1003 }
 0x2e5   : > { %v1010_v52 = vsel %vm1005_vm2, %v1004_v11, 0 }
 0x2e6   : > { %6810 = vmatpush3.bf16.xpose.msra.mxu1 %v1010_v52 }
 0x2e7   : > { %6815 = vmatprep.subr.bf16.mxu1 %v10562_v4 }
 0x2ec   : > { %v1105_v29 = vpop.permute.xlu1 %1104 }
 0x2ed   : > { %6812 = vmatmul.mubr.msk.bf16.vlgmr.msra.gmra.mxu1 %vm1005_vm2, %v8467_v13  ;;  %v1110_v57 = vsel %vm1005_vm2, %v1105_v29, 0 }
 0x2ee   : > { %6816 = vmatpush3.bf16.xpose.msra.mxu1 %v1060_v28  ;;  %6817 = vmatprep.mubr.msk.bf16.mxu1 %vm7980_vm1, %v10562_v4 }
 0x2ef   : > { %6821 = vmatprep.subr.bf16.mxu1 %v10562_v4 }
 0x2f0   : > { %v1155_v17 = vpop.permute.xlu1 %1154 }
 0x2f1   : > { %v1160_v35 = vsel %vm1005_vm2, %v1155_v17, 0 }
 0x2f3   : > { %v1205_v53 = vpop.permute.xlu0 %1204 }
 0x2f4   : > { %v1210_v56 = vsel %vm1005_vm2, %v1205_v53, 0  ;;  %v1255_v44 = vpop.permute.xlu1 %1254 }
 0x2f5   : > { %6818 = vmatmul.mubr.msk.bf16.vlgmr.msra.gmra.mxu1 %vm1005_vm2, %v8465_v45  ;;  %6834 = vmatpush3.bf16.xpose.msra.mxu0 %v1210_v56  ;;  %v1260_v61 = vsel %vm1005_vm2, %v1255_v44, 0 }
 0x2f6   : > { %6822 = vmatpush3.bf16.xpose.msra.mxu1 %v1110_v57  ;;  %6823 = vmatprep.mubr.msk.bf16.mxu1 %vm7980_vm1, %v10562_v4 }
 0x2f7   : > { %6827 = vmatprep.subr.bf16.mxu1 %v10562_v4  ;;  %6845 = vmatprep.subr.bf16.mxu0 %v10562_v4 }
 0x2f9   : > { %v1355_v37 = vpop.permute.xlu1 %1354 }
 0x2fa   : > { %v1360_v62 = vsel %vm1005_vm2, %v1355_v37, 0 }
 0x2fb   : > { %v1305_v58 = vpop.permute.xlu0 %1304 }
 0x2fc   : > { %v1310_v59 = vsel %vm1005_vm2, %v1305_v58, 0  ;;  %6836 = vmatmul.mubr.msk.bf16.vlgmr.msra.gmra.mxu0 %vm1005_vm2, %v8481_v1 }
 0x2fd   : > { %6824 = vmatmul.mubr.msk.bf16.vlgmr.msra.gmra.mxu1 %vm1005_vm2, %v8473_v27  ;;  %6846 = vmatpush3.bf16.xpose.msra.mxu0 %v1310_v59  ;;  %v1636_v63 = vpop.permute.xlu1 %1635 }
 0x2fe   : > { %6828 = vmatpush3.bf16.xpose.msra.mxu1 %v1160_v35  ;;  %6829 = vmatprep.mubr.msk.bf16.mxu1 %vm7980_vm1, %v10562_v4 }
 0x2ff   : > { %6847 = vmatprep.mubr.msk.bf16.mxu0 %vm7980_vm1, %v10562_v4  ;;  %6839 = vmatprep.subr.bf16.mxu1 %v10562_v4  ;;  %v1589_v60 = vpop.permute.xlu0 %1588 }
 0x300   : > { %6857 = vmatprep.subr.bf16.mxu0 %v10562_v4 }
 0x304   : > { %6848 = vmatmul.mubr.msk.bf16.vlgmr.msra.gmra.mxu0 %vm1005_vm2, %v8491_v51 }
 0x305   : > { %6830 = vmatmul.mubr.msk.bf16.vlgmr.msra.gmra.mxu1 %vm1005_vm2, %v8477_v0  ;;  %6858 = vmatpush3.bf16.msra.mxu0 %v1589_v60 }
 0x306   : > { %6840 = vmatpush3.bf16.xpose.msra.mxu1 %v1260_v61  ;;  %6841 = vmatprep.mubr.msk.bf16.mxu1 %vm7980_vm1, %v10562_v4 }
 0x307   : > { %6851 = vmatprep.subr.bf16.mxu1 %v10562_v4  ;;  %6859 = vmatprep.mubr.msk.bf16.mxu0 %vm7980_vm1, %v10562_v4 }
 0x308   : > { %6869 = vmatprep.subr.bf16.mxu0 %v10562_v4 }
 0x30d   : > { %6842 = vmatmul.mubr.msk.bf16.vlgmr.msra.gmra.mxu1 %vm1005_vm2, %v8483_v41 }
 0x30e   : > { %6852 = vmatpush3.bf16.xpose.msra.mxu1 %v1360_v62  ;;  %6853 = vmatprep.mubr.msk.bf16.mxu1 %vm7980_vm1, %v10562_v4 }
 0x30f   : > { %6863 = vmatprep.subr.bf16.mxu1 %v10562_v4 }
 0x315   : > { %6854 = vmatmul.mubr.msk.bf16.vlgmr.msra.gmra.mxu1 %vm1005_vm2, %v8489_v49 }
 0x316   : > { %6864 = vmatpush3.bf16.msra.mxu1 %v1636_v63  ;;  %6865 = vmatprep.mubr.msk.bf16.mxu1 %vm7980_vm1, %v10562_v4 }
 0x317   : > { %6875 = vmatprep.subr.bf16.mxu1 %v10562_v4 }
 0x3ad   : > { %v1046_v2 = vpop.f32.mrf.mxu1 }
 0x3ae   : > { %v8561_v3 = vadd.f32 %v8558_v47, %v1046_v2 }
 0x3af   : > { %v6813_v5 = vpop.f32.mrf.mxu1 }
 0x3b0   : > { %v1404_v32 = vsel %vm1403_vm3, %v8561_v3, -inf }
 0x3b1   : > { %1405 = vmax.xlane.f32.xlu0 %v1404_v32  ;;  %v1049_v6 = vpop.f32.mrf.mxu1 }
 0x3b2   : > { %v8568_v7 = vadd.f32 %v8563_v25, %v1049_v6 }
 0x3b3   : > { %v6814_v8 = vpop.f32.mrf.mxu1 }
 0x3b4   : > { %v1407_v24 = vsel %vm1403_vm3, %v8568_v7, -inf }
 0x3b5   : > { %1408 = vmax.xlane.f32.xlu1 %v1407_v24  ;;  %v1096_v9 = vpop.f32.mrf.mxu1 }
 0x3b6   : > { %v8576_v16 = vadd.f32 %v8558_v47, %v1096_v9 }
 0x3b7   : > { %v6819_v12 = vpop.f32.mrf.mxu1 }
 0x3b8   : > { %v1410_v38 = vsel %vm1403_vm3, %v8576_v16, -inf }
 0x3b9   : > { %v1099_v54 = vpop.f32.mrf.mxu1 }
 0x3ba   : > { %v8591_v46 = vadd.f32 %v8563_v25, %v1099_v54 }
 0x3bb   : > { %v6820_v14 = vpop.f32.mrf.mxu1 }
 0x3bc   : > { %v1246_v15 = vpop.f32.mrf.mxu0  ;;  %v1413_v56 = vsel %vm1403_vm3, %v8591_v46, -inf }
 0x3bd   : > { %v1146_v18 = vpop.f32.mrf.mxu1  ;;  %v8573_v19 = vadd.f32 %v8558_v47, %v1246_v15  ;;  %v8646_v15 = vpop.permute.xlu1 %1729 }
 0x3be   : > { %v6837_v22 = vpop.f32.mrf.mxu0  ;;  %v8599_v28 = vadd.f32 %v8558_v47, %v1146_v18 }
 0x3bf   : > { %v6825_v26 = vpop.f32.mrf.mxu1  ;;  %v1428_v55 = vsel %vm1403_vm3, %v8573_v19, -inf }
 0x3c0   : > { %1429 = vmax.xlane.f32.xlu0 %v1428_v55  ;;  %v1249_v30 = vpop.f32.mrf.mxu0  ;;  %v1416_v44 = vsel %vm1403_vm3, %v8599_v28, -inf }
 0x3c1   : > { %v1149_v31 = vpop.f32.mrf.mxu1  ;;  %v8581_v33 = vadd.f32 %v8563_v25, %v1249_v30  ;;  %v8648_v18 = vpop.permute.xlu1 %1682 }
 0x3c2   : > { %v6838_v34 = vpop.f32.mrf.mxu0  ;;  %v8602_v29 = vadd.f32 %v8563_v25, %v1149_v31 }
 0x3c3   : > { %v6826_v20 = vpop.f32.mrf.mxu1  ;;  %v1431_v39 = vsel %vm1403_vm3, %v8581_v33, -inf }
 0x3c4   : > { %1411 = vmax.xlane.f32.xlu0 %v1410_v38  ;;  %1432 = vmax.xlane.f32.xlu1 %v1431_v39  ;;  %v1346_v40 = vpop.f32.mrf.mxu0  ;;  %v1419_v60 = vsel %vm1403_vm3, %v8602_v29, -inf }
 0x3c5   : > { %v1196_v42 = vpop.f32.mrf.mxu1  ;;  %v8588_v43 = vadd.f32 %v8558_v47, %v1346_v40 }
 0x3c6   : > { %v6849_v10 = vpop.f32.mrf.mxu0  ;;  %v8609_v58 = vadd.f32 %v8558_v47, %v1196_v42 }
 0x3c7   : > { %v6831_v48 = vpop.f32.mrf.mxu1  ;;  %v1440_v36 = vsel %vm1403_vm3, %v8588_v43, -inf }
 0x3c8   : > { %1441 = vmax.xlane.f32.xlu0 %v1440_v36  ;;  %v1349_v50 = vpop.f32.mrf.mxu0  ;;  %v1422_v21 = vsel %vm1403_vm3, %v8609_v58, -inf }
 0x3c9   : > { %v1199_v11 = vpop.f32.mrf.mxu1  ;;  %v8596_v52 = vadd.f32 %v8563_v25, %v1349_v50 }
 0x3ca   : > { %v6850_v23 = vpop.f32.mrf.mxu0  ;;  %v8612_v59 = vadd.f32 %v8563_v25, %v1199_v11 }
 0x3cb   : > { %v6832_v53 = vpop.f32.mrf.mxu1  ;;  %v1443_v57 = vsel %vm1403_vm3, %v8596_v52, -inf }
 0x3cc   : > { %1414 = vmax.xlane.f32.xlu0 %v1413_v56  ;;  %1444 = vmax.xlane.f32.xlu1 %v1443_v57  ;;  %v1425_v2 = vsel %vm1403_vm3, %v8612_v59, -inf }
 0x3cd   : > { %v1296_v17 = vpop.f32.mrf.mxu1 }
 0x3ce   : > { %v8619_v37 = vadd.f32 %v8558_v47, %v1296_v17 }
 0x3cf   : > { %v6843_v35 = vpop.f32.mrf.mxu1 }
 0x3d0   : > { %1417 = vmax.xlane.f32.xlu0 %v1416_v44  ;;  %1420 = vmax.xlane.f32.xlu1 %v1419_v60  ;;  %v1434_v8 = vsel %vm1403_vm3, %v8619_v37, -inf }
 0x3d1   : > { %v1299_v61 = vpop.f32.mrf.mxu1 }
 0x3d2   : > { %v8622_v62 = vadd.f32 %v8563_v25, %v1299_v61 }
 0x3d3   : > { %v6844_v63 = vpop.f32.mrf.mxu1 }
 0x3d4   : > { %1423 = vmax.xlane.f32.xlu0 %v1422_v21  ;;  %1426 = vmax.xlane.f32.xlu1 %v1425_v2  ;;  %v1437_v24 = vsel %vm1403_vm3, %v8622_v62, -inf }
 0x3d5   : > { %v1396_v5 = vpop.f32.mrf.mxu1 }
 0x3d6   : > { %v8629_v32 = vadd.f32 %v8558_v47, %v1396_v5 }
 0x3d7   : > { %v6855_v6 = vpop.f32.mrf.mxu1 }
 0x3d8   : > { %1435 = vmax.xlane.f32.xlu0 %v1434_v8  ;;  %1438 = vmax.xlane.f32.xlu1 %v1437_v24  ;;  %v1446_v54 = vsel %vm1403_vm3, %v8629_v32, -inf }
 0x3d9   : > { %v1399_v9 = vpop.f32.mrf.mxu1 }
 0x3da   : > { %v8642_v47 = vadd.f32 %v8563_v25, %v1399_v9 }
 0x3db   : > { %v6856_v12 = vpop.f32.mrf.mxu1 }
 0x3dc   : > { %1447 = vmax.xlane.f32.xlu0 %v1446_v54  ;;  %v1449_v14 = vsel %vm1403_vm3, %v8642_v47, -inf }
 0x3e9   : > { %1823 = vrot.lane.b32.xlu1 %v8483_v41, %s7982_s28 }
 0x3f2   : > { %1776 = vrot.lane.b32.xlu0 %v8481_v1, %s7982_s28 }
 0x40d   : > { %1450 = vmax.xlane.f32.xlu1 %v1449_v14 }
 0x43a   : > { %v1406_v22 = vpop.xlane.xlu0 %1405 }
 0x43b   : > { %v1452_v26 = vsub.f32 %v8561_v3, %v1406_v22 }
 0x43d   : > { %v1468_v55 = vmul.f32 1.442695, %v1452_v26 }
 0x43e   : > { %v1409_v30 = vpop.xlane.xlu1 %1408 }
 0x43f   : > { %7458 = vpow2.f32 %v1468_v55  ;;  %v1453_v31 = vsub.f32 %v8568_v7, %v1409_v30 }
 0x441   : > { %v1470_v34 = vmul.f32 1.442695, %v1453_v31 }
 0x443   : > { %7460 = vpow2.f32 %v1470_v34 }
 0x449   : > { %v1430_v25 = vpop.xlane.xlu0 %1429 }
 0x44a   : > { %v1460_v20 = vsub.f32 %v8573_v19, %v1430_v25 }
 0x44c   : > { %v8653_v38 = vpop.eup %7458  ;;  %v1484_v39 = vmul.f32 1.442695, %v1460_v20 }
 0x44d   : > { %v1433_v40 = vpop.xlane.xlu1 %1432  ;;  %v1500_v42 = vsel %vm1403_vm3, %v8653_v38, 0.0  ;;  %v1412_v10 = vpop.xlane.xlu0 %1411 }
 0x44e   : > { %7462 = vpow2.f32 %v1484_v39  ;;  %v1461_v3 = vsub.f32 %v8581_v33, %v1433_v40  ;;  %1501 = vadd.xlane.f32.xlu0 %v1500_v42  ;;  %v1454_v48 = vsub.f32 %v8576_v16, %v1412_v10 }
 0x450   : > { %v8659_v7 = vpop.eup %7460  ;;  %v1486_v36 = vmul.f32 1.442695, %v1461_v3  ;;  %v1472_v50 = vmul.f32 1.442695, %v1454_v48 }
 0x451   : > { %v1503_v19 = vsel %vm1403_vm3, %v8659_v7, 0.0  ;;  %v1442_v11 = vpop.xlane.xlu0 %1441 }
 0x452   : > { %7464 = vpow2.f32 %v1486_v36  ;;  %1504 = vadd.xlane.f32.xlu1 %v1503_v19  ;;  %v1464_v23 = vsub.f32 %v8588_v43, %v1442_v11 }
 0x453   : > { %7466 = vpow2.f32 %v1472_v50 }
 0x454   : > { %v1492_v53 = vmul.f32 1.442695, %v1464_v23 }
 0x455   : > { %v1445_v56 = vpop.xlane.xlu1 %1444  ;;  %v1415_v57 = vpop.xlane.xlu0 %1414 }
 0x456   : > { %7468 = vpow2.f32 %v1492_v53  ;;  %v1465_v33 = vsub.f32 %v8596_v52, %v1445_v56  ;;  %v1455_v16 = vsub.f32 %v8591_v46, %v1415_v57 }
 0x458   : > { %v1474_v17 = vmul.f32 1.442695, %v1455_v16  ;;  %v1494_v35 = vmul.f32 1.442695, %v1465_v33 }
 0x459   : > { %v1421_v44 = vpop.xlane.xlu1 %1420  ;;  %v1418_v60 = vpop.xlane.xlu0 %1417 }
 0x45a   : > { %v1457_v61 = vsub.f32 %v8602_v29, %v1421_v44  ;;  %v1456_v63 = vsub.f32 %v8599_v28, %v1418_v60  ;;  %7470 = vpow2.f32 %v1474_v17 }
 0x45b   : > { %v8668_v21 = vpop.eup %7462  ;;  %7472 = vpow2.f32 %v1494_v35 }
 0x45c   : > { %v1476_v43 = vmul.f32 1.442695, %v1456_v63  ;;  %v1524_v2 = vsel %vm1403_vm3, %v8668_v21, 0.0  ;;  %v1478_v5 = vmul.f32 1.442695, %v1457_v61 }
 0x45d   : > { %v1427_v52 = vpop.xlane.xlu1 %1426  ;;  %1525 = vadd.xlane.f32.xlu0 %v1524_v2  ;;  %v1424_v46 = vpop.xlane.xlu0 %1423 }
 0x45e   : > { %v1459_v6 = vsub.f32 %v8612_v59, %v1427_v52  ;;  %v1458_v8 = vsub.f32 %v8609_v58, %v1424_v46  ;;  %7474 = vpow2.f32 %v1476_v43 }
 0x45f   : > { %v8674_v24 = vpop.eup %7464  ;;  %7476 = vpow2.f32 %v1478_v5 }
 0x460   : > { %v8676_v28 = vpop.eup %7466  ;;  %v1480_v29 = vmul.f32 1.442695, %v1458_v8  ;;  %v1527_v9 = vsel %vm1403_vm3, %v8674_v24, 0.0  ;;  %v1482_v12 = vmul.f32 1.442695, %v1459_v6 }
 0x461   : > { %1528 = vadd.xlane.f32.xlu1 %v1527_v9  ;;  %v1506_v54 = vsel %vm1403_vm3, %v8676_v28, 0.0  ;;  %v1436_v14 = vpop.xlane.xlu0 %1435  ;;  %v1439_v50 = vpop.xlane.xlu1 %1438 }
 0x462   : > { %1507 = vadd.xlane.f32.xlu0 %v1506_v54  ;;  %v1462_v59 = vsub.f32 %v8619_v37, %v1436_v14  ;;  %7478 = vpow2.f32 %v1480_v29  ;;  %v1463_v11 = vsub.f32 %v8622_v62, %v1439_v50 }
 0x463   : > { %v8683_v58 = vpop.eup %7468  ;;  %7480 = vpow2.f32 %v1482_v12 }
 0x464   : > { %v1488_v22 = vmul.f32 1.442695, %v1462_v59  ;;  %v1536_v26 = vsel %vm1403_vm3, %v8683_v58, 0.0  ;;  %v1490_v53 = vmul.f32 1.442695, %v1463_v11 }
 0x465   : > { %v1448_v19 = vpop.xlane.xlu0 %1447  ;;  %v8731_v62 = vpop.permute.xlu1 %1823 }
 0x466   : > { %1537 = vadd.xlane.f32.xlu0 %v1536_v26  ;;  %7482 = vpow2.f32 %v1488_v22  ;;  %v1466_v23 = vsub.f32 %v8629_v32, %v1448_v19 }
 0x467   : > { %v8687_v55 = vpop.eup %7470  ;;  %7484 = vpow2.f32 %v1490_v53 }
 0x468   : > { %v1509_v30 = vsel %vm1403_vm3, %v8687_v55, 0.0  ;;  %v8691_v31 = vpop.eup %7472  ;;  %v1496_v56 = vmul.f32 1.442695, %v1466_v23 }
 0x469   : > { %1510 = vadd.xlane.f32.xlu1 %v1509_v30  ;;  %v1539_v37 = vsel %vm1403_vm3, %v8691_v31, 0.0  ;;  %v8744_v60 = vpop.permute.xlu0 %1776 }
 0x46a   : > { %7486 = vpow2.f32 %v1496_v56 }
 0x46b   : > { %v8693_v34 = vpop.eup %7474 }
 0x46c   : > { %v1512_v25 = vsel %vm1403_vm3, %v8693_v34, 0.0  ;;  %v8699_v20 = vpop.eup %7476 }
 0x46d   : > { %1540 = vadd.xlane.f32.xlu1 %v1539_v37  ;;  %1513 = vadd.xlane.f32.xlu0 %v1512_v25  ;;  %v1515_v40 = vsel %vm1403_vm3, %v8699_v20, 0.0 }
 0x46f   : > { %v8701_v39 = vpop.eup %7478 }
 0x470   : > { %v1518_v42 = vsel %vm1403_vm3, %v8701_v39, 0.0  ;;  %v8707_v10 = vpop.eup %7480 }
 0x471   : > { %1516 = vadd.xlane.f32.xlu1 %v1515_v40  ;;  %1519 = vadd.xlane.f32.xlu0 %v1518_v42  ;;  %v1521_v48 = vsel %vm1403_vm3, %v8707_v10, 0.0 }
 0x473   : > { %v8709_v3 = vpop.eup %7482 }
 0x474   : > { %v1530_v36 = vsel %vm1403_vm3, %v8709_v3, 0.0  ;;  %v8721_v57 = vpop.eup %7484 }
 0x475   : > { %1522 = vadd.xlane.f32.xlu1 %v1521_v48  ;;  %1531 = vadd.xlane.f32.xlu0 %v1530_v36  ;;  %v1533_v16 = vsel %vm1403_vm3, %v8721_v57, 0.0 }
 0x477   : > { %v8723_v33 = vpop.eup %7486 }
 0x478   : > { %v1542_v17 = vsel %vm1403_vm3, %v8723_v33, 0.0 }
 0x486   : > { %1917 = vrot.lane.b32.xlu1 %v8489_v49, %s7982_s28 }
 0x48b   : > { %1870 = vrot.lane.b32.xlu0 %v8491_v51, %s7982_s28 }
 0x496   : > { %v1451_v32 = vpop.xlane.xlu1 %1450 }
 0x497   : > { %v1467_v35 = vsub.f32 %v8642_v47, %v1451_v32 }
 0x499   : > { %v1498_v44 = vmul.f32 1.442695, %v1467_v35 }
 0x49b   : > { %7488 = vpow2.f32 %v1498_v44 }
 0x4a8   : > { %v8750_v63 = vpop.eup %7488 }
 0x4a9   : > { %v1545_v43 = vsel %vm1403_vm3, %v8750_v63, 0.0 }
 0x4aa   : > { %1534 = vadd.xlane.f32.xlu1 %v1533_v16  ;;  %1543 = vadd.xlane.f32.xlu0 %v1542_v17 }
 0x4bb   : > { %2026 = vrot.lane.b32.xlu1 %v8465_v45, %s7983_s29 }
 0x4c0   : > { %1975 = vrot.lane.b32.xlu0 %v8467_v13, %s7983_s29 }
 0x4c4   : > { %1973 = vrot.lane.b32.xlu0 %v8467_v13, %s7984_s17 }
 0x4c8   : > { %2024 = vrot.lane.b32.xlu0 %v8465_v45, %s7984_s17 }
 0x4cc   : > { %2075 = vrot.lane.b32.xlu0 %v8473_v27, %s7984_s17 }
 0x4d0   : > { %2126 = vrot.lane.b32.xlu0 %v8477_v0, %s7984_s17 }
 0x4d4   : > { %2177 = vrot.lane.b32.xlu0 %v8481_v1, %s7984_s17 }
 0x4d7   : > { %v1502_v61 = vpop.xlane.xlu0 %1501 }
 0x4d8   : > { %2228 = vrot.lane.b32.xlu0 %v8483_v41, %s7984_s17  ;;  %7490 = vrcp.f32 %v1502_v61 }
 0x4db   : > { %v1505_v47 = vpop.xlane.xlu1 %1504 }
 0x4dc   : > { %7492 = vrcp.f32 %v1505_v47  ;;  %2279 = vrot.lane.b32.xlu0 %v8491_v51, %s7984_s17 }
 0x4df   : > { %1546 = vadd.xlane.f32.xlu1 %v1545_v43 }
 0x4e5   : > { %v7491_v2 = vpop.eup %7490 }
 0x4e6   : > { %v1526_v5 = vpop.xlane.xlu0 %1525  ;;  %v1564_v46 = vmul.f32 %v7491_v2, %v8653_v38 }
 0x4e9   : > { %v7493_v52 = vpop.eup %7492 }
 0x4ea   : > { %v1565_v6 = vmul.f32 %v7493_v52, %v8659_v7  ;;  %v1529_v9 = vpop.xlane.xlu1 %1528 }
 0x4eb   : > { %v1508_v29 = vpop.xlane.xlu0 %1507 }
 0x4ec   : > { %v1580_v8 = vpack.c.bf16 %v1565_v6, %v1564_v46  ;;  %7494 = vrcp.f32 %v1508_v29 }
 0x4ee   : > { %6860 = vmatmul.mubr.msk.bf16.vlgmr.msra.gmra.mxu0 %vm1403_vm3, %v1580_v8 }
 0x4ef   : > { %6870 = vmatpush3.bf16.msra.mxu0 %v8648_v18  ;;  %6871 = vmatprep.mubr.msk.bf16.mxu0 %vm7980_vm1, %v10562_v4  ;;  %v1538_v12 = vpop.xlane.xlu0 %1537 }
 0x4f0   : > { %6881 = vmatprep.subr.bf16.mxu0 %v10562_v4  ;;  %2077 = vrot.lane.b32.xlu1 %v8473_v27, %s7983_s29 }
 0x4f2   : > { %v1511_v38 = vpop.xlane.xlu1 %1510 }
 0x4f3   : > { %7496 = vrcp.f32 %v1511_v38 }
 0x4f4   : > { %2128 = vrot.lane.b32.xlu1 %v8477_v0, %s7983_s29 }
 0x4f6   : > { %v1541_v7 = vpop.xlane.xlu1 %1540  ;;  %v1514_v54 = vpop.xlane.xlu0 %1513 }
 0x4f7   : > { %7498 = vrcp.f32 %v1514_v54 }
 0x4f8   : > { %2179 = vrot.lane.b32.xlu1 %v8481_v1, %s7983_s29 }
 0x4f9   : > { %v7495_v59 = vpop.eup %7494 }
 0x4fa   : > { %v1517_v18 = vpop.xlane.xlu1 %1516  ;;  %v1520_v14 = vpop.xlane.xlu0 %1519  ;;  %v1566_v30 = vmul.f32 %v7495_v59, %v8676_v28 }
 0x4fb   : > { %7500 = vrcp.f32 %v1517_v18 }
 0x4fc   : > { %2230 = vrot.lane.b32.xlu1 %v8483_v41, %s7983_s29  ;;  %7502 = vrcp.f32 %v1520_v14 }
 0x4fd   : > { %7504 = vrcp.f32 %v1529_v9 }
 0x4fe   : > { %v1523_v22 = vpop.xlane.xlu1 %1522  ;;  %v1532_v53 = vpop.xlane.xlu0 %1531 }
 0x4ff   : > { %7506 = vrcp.f32 %v1523_v22 }
 0x500   : > { %v7497_v26 = vpop.eup %7496  ;;  %2281 = vrot.lane.b32.xlu1 %v8491_v51, %s7983_s29  ;;  %7508 = vrcp.f32 %v1526_v5 }
 0x501   : > { %v1567_v37 = vmul.f32 %v7497_v26, %v8687_v55  ;;  %7510 = vrcp.f32 %v1541_v7 }
 0x502   : > { %7512 = vrcp.f32 %v1538_v12  ;;  %v1871_v16 = vpop.permute.xlu0 %1870  ;;  %v1918_v32 = vpop.permute.xlu1 %1917 }
 0x503   : > { %v1581_v25 = vpack.c.bf16 %v1567_v37, %v1566_v30  ;;  %7514 = vrcp.f32 %v1532_v53 }
 0x504   : > { %2332 = vrot.lane.b32.xlu1 %v8489_v49, %s7983_s29  ;;  %v7499_v40 = vpop.eup %7498  ;;  %s10355_s29 = scalar_lea.vmem [#allocation8], %s8210_s25  ;;  %s6567_s25 = sshll.u32 %s8097_s22, 11 }
 0x505   : > { %6866 = vmatmul.mubr.msk.bf16.vlgmr.msra.gmra.mxu1 %vm1403_vm3, %v1581_v25  ;;  %v1568_v28 = vmul.f32 %v7499_v40, %v8693_v34 }
 0x506   : > { %6876 = vmatpush3.bf16.msra.mxu1 %v8646_v15  ;;  %6877 = vmatprep.mubr.msk.bf16.mxu1 %vm7980_vm1, %v10562_v4 }
 0x507   : > { %6887 = vmatprep.subr.bf16.mxu1 %v10562_v4 }
 0x508   : > { %v7501_v42 = vpop.eup %7500  ;;  %2330 = vrot.lane.b32.xlu1 %v8489_v49, %s7984_s17  ;;  %s7988_s17 = smov 48  }
 0x509   : > { %v1569_v55 = vmul.f32 %v7501_v42, %v8699_v20  ;;  %v7503_v48 = vpop.eup %7502 }
 0x50a   : > { %v7505_v36 = vpop.eup %7504  ;;  %v1570_v15 = vmul.f32 %v7503_v48, %v8701_v39 }
 0x50b   : > { %v1582_v50 = vpack.c.bf16 %v1569_v55, %v1568_v28  ;;  %v1573_v20 = vmul.f32 %v7505_v36, %v8674_v24 }
 0x50c   : > { %v7507_v19 = vpop.eup %7506 }
 0x50d   : > { %6872 = vmatmul.mubr.msk.bf16.vlgmr.msra.gmra.mxu0 %vm1403_vm3, %v1582_v50  ;;  %v1571_v11 = vmul.f32 %v7507_v19, %v8707_v10  ;;  %v7509_v23 = vpop.eup %7508 }
 0x50e   : > { %6882 = vmatpush3.bf16.msra.mxu0 %v8744_v60  ;;  %6883 = vmatprep.mubr.msk.bf16.mxu0 %vm7980_vm1, %v10562_v4  ;;  %v1572_v56 = vmul.f32 %v7509_v23, %v8668_v21  ;;  %v7511_v10 = vpop.eup %7510 }
 0x50f   : > { %v1583_v34 = vpack.c.bf16 %v1571_v11, %v1570_v15  ;;  %6893 = vmatprep.subr.bf16.mxu0 %v10562_v4  ;;  %v7513_v17 = vpop.eup %7512  ;;  %v1577_v24 = vmul.f32 %v7511_v10, %v8691_v31 }
 0x510   : > { %v1584_v39 = vpack.c.bf16 %v1573_v20, %v1572_v56  ;;  %v1576_v21 = vmul.f32 %v7513_v17, %v8683_v58  ;;  %v7515_v31 = vpop.eup %7514 }
 0x511   : > { %6878 = vmatmul.mubr.msk.bf16.vlgmr.msra.gmra.mxu1 %vm1403_vm3, %v1583_v34  ;;  %v1574_v43 = vmul.f32 %v7515_v31, %v8709_v3 }
 0x512   : > { %6888 = vmatpush3.bf16.msra.mxu1 %v8731_v62  ;;  %6889 = vmatprep.mubr.msk.bf16.mxu1 %vm7980_vm1, %v10562_v4  ;;  %v1586_v62 = vpack.c.bf16 %v1577_v24, %v1576_v21 }
 0x513   : > { %6899 = vmatprep.subr.bf16.mxu1 %v10562_v4 }
 0x515   : > { %6884 = vmatmul.mubr.msk.bf16.vlgmr.msra.gmra.mxu0 %vm1403_vm3, %v1584_v39 }
 0x516   : > { %6894 = vmatpush3.bf16.msra.mxu0 %v1871_v16  ;;  %6895 = vmatprep.mubr.msk.bf16.mxu0 %vm7980_vm1, %v10562_v4 }
 0x517   : > { %6905 = vmatprep.subr.bf16.mxu0 %v10562_v4 }
 0x51d   : > { %6896 = vmatmul.mubr.msk.bf16.vlgmr.msra.gmra.mxu0 %vm1403_vm3, %v1586_v62 }
 0x51e   : > { %6907 = vmatprep.mubr.msk.bf16.mxu0 %vm7980_vm1, %v10562_v4 }
 0x533   : > { %v1535_v35 = vpop.xlane.xlu1 %1534  ;;  %v1544_v44 = vpop.xlane.xlu0 %1543 }
 0x534   : > { %7516 = vrcp.f32 %v1535_v35 }
 0x535   : > { %7518 = vrcp.f32 %v1544_v44 }
 0x537   : > { %v1976_v60 = vpop.permute.xlu0 %1975  ;;  %v2027_v52 = vpop.permute.xlu1 %2026 }
 0x538   : > { %v1981_v61 = vsel %vm1005_vm2, %v1976_v60, 0  ;;  %v2032_v30 = vsel %vm1005_vm2, %v2027_v52, 0 }
 0x539   : > { %6906 = vmatpush3.bf16.xpose.msra.mxu0 %v1981_v61 }
 0x53a   : > { %6917 = vmatprep.subr.bf16.mxu0 %v10562_v4 }
 0x53b   : > { %v1974_v47 = vpop.permute.xlu0 %1973 }
 0x53f   : > { %v2025_v46 = vpop.permute.xlu0 %2024 }
 0x540   : > { %6908 = vmatmul.mubr.msk.bf16.vlgmr.msra.gmra.mxu0 %vm1005_vm2, %v1974_v47 }
 0x541   : > { %v7517_v58 = vpop.eup %7516  ;;  %6919 = vmatprep.mubr.msk.bf16.mxu0 %vm7980_vm1, %v10562_v4 }
 0x542   : > { %v1575_v2 = vmul.f32 %v7517_v58, %v8721_v57  ;;  %v7519_v12 = vpop.eup %7518 }
 0x543   : > { %v2076_v8 = vpop.permute.xlu0 %2075  ;;  %v1578_v18 = vmul.f32 %v7519_v12, %v8723_v33 }
 0x544   : > { %v1585_v5 = vpack.c.bf16 %v1575_v2, %v1574_v43 }
 0x546   : > { %6890 = vmatmul.mubr.msk.bf16.vlgmr.msra.gmra.mxu1 %vm1403_vm3, %v1585_v5 }
 0x547   : > { %6900 = vmatpush3.bf16.msra.mxu1 %v1918_v32  ;;  %6901 = vmatprep.mubr.msk.bf16.mxu1 %vm7980_vm1, %v10562_v4  ;;  %v2127_v9 = vpop.permute.xlu0 %2126 }
 0x548   : > { %6911 = vmatprep.subr.bf16.mxu1 %v10562_v4 }
 0x54b   : > { %v2178_v59 = vpop.permute.xlu0 %2177 }
 0x54f   : > { %v2229_v33 = vpop.permute.xlu0 %2228 }
 0x553   : > { %v2280_v40 = vpop.permute.xlu0 %2279 }
 0x568   : > { %v1547_v6 = vpop.xlane.xlu1 %1546 }
 0x569   : > { %7520 = vrcp.f32 %v1547_v6  ;;  %v6586_v6 = vld [vmem:[%s10538_s5 + $0x8] sm:$0xff]  }
 0x56c   : > { %v2078_v29 = vpop.permute.xlu1 %2077 }
 0x56d   : > { %v2083_v3 = vsel %vm1005_vm2, %v2078_v29, 0 }
 0x56e   : > { %6918 = vmatpush3.bf16.xpose.msra.mxu0 %v2083_v3 }
 0x56f   : > { %6929 = vmatprep.subr.bf16.mxu0 %v10562_v4 }
 0x570   : > { %v2129_v57 = vpop.permute.xlu1 %2128 }
 0x574   : > { %v2180_v38 = vpop.permute.xlu1 %2179 }
 0x575   : > { %v2185_v7 = vsel %vm1005_vm2, %v2180_v38, 0  ;;  %6920 = vmatmul.mubr.msk.bf16.vlgmr.msra.gmra.mxu0 %vm1005_vm2, %v2076_v8  ;;  %v8899_v8 = vunpack.c.l.bf16 %v6586_v6 }
 0x576   : > { %v7521_v54 = vpop.eup %7520  ;;  %6930 = vmatpush3.bf16.xpose.msra.mxu0 %v2185_v7  ;;  %6931 = vmatprep.mubr.msk.bf16.mxu0 %vm7980_vm1, %v10562_v4 }
 0x577   : > { %v1579_v14 = vmul.f32 %v7521_v54, %v8750_v63  ;;  %6941 = vmatprep.subr.bf16.mxu0 %v10562_v4  ;;  %v2134_v63 = vsel %vm1005_vm2, %v2129_v57, 0  ;;  %v8904_v57 = vunpack.c.h.bf16 %v6586_v6 }
 0x578   : > { %v2231_v22 = vpop.permute.xlu1 %2230 }
 0x579   : > { %v1587_v26 = vpack.c.bf16 %v1579_v14, %v1578_v18  ;;  %v2236_v42 = vsel %vm1005_vm2, %v2231_v22, 0 }
 0x57b   : > { %6902 = vmatmul.mubr.msk.bf16.vlgmr.msra.gmra.mxu1 %vm1403_vm3, %v1587_v26 }
 0x57c   : > { %6912 = vmatpush3.bf16.xpose.msra.mxu1 %v2032_v30  ;;  %v2282_v37 = vpop.permute.xlu1 %2281  ;;  %6913 = vmatprep.mubr.msk.bf16.mxu1 %vm7980_vm1, %v10562_v4 }
 0x57d   : > { %v2287_v25 = vsel %vm1005_vm2, %v2282_v37, 0  ;;  %6932 = vmatmul.mubr.msk.bf16.vlgmr.msra.gmra.mxu0 %vm1005_vm2, %v2178_v59  ;;  %6923 = vmatprep.subr.bf16.mxu1 %v10562_v4 }
 0x57e   : > { %6942 = vmatpush3.bf16.xpose.msra.mxu0 %v2287_v25  ;;  %6943 = vmatprep.mubr.msk.bf16.mxu0 %vm7980_vm1, %v10562_v4 }
 0x57f   : > { %6953 = vmatprep.subr.bf16.mxu0 %v10562_v4 }
 0x580   : > { %v2333_v28 = vpop.permute.xlu1 %2332 }
 0x581   : > { %v2338_v55 = vsel %vm1005_vm2, %v2333_v28, 0 }
 0x583   : > { %6914 = vmatmul.mubr.msk.bf16.vlgmr.msra.gmra.mxu1 %vm1005_vm2, %v2025_v46 }
 0x584   : > { %6924 = vmatpush3.bf16.xpose.msra.mxu1 %v2134_v63  ;;  %6925 = vmatprep.mubr.msk.bf16.mxu1 %vm7980_vm1, %v10562_v4  ;;  %v2331_v48 = vpop.permute.xlu1 %2330 }
 0x585   : > { %6944 = vmatmul.mubr.msk.bf16.vlgmr.msra.gmra.mxu0 %vm1005_vm2, %v2280_v40  ;;  %6935 = vmatprep.subr.bf16.mxu1 %v10562_v4 }
 0x586   : > { %6955 = vmatprep.mubr.msk.bf16.mxu0 %vm7980_vm1, %v10562_v4 }
 0x58b   : > { %6926 = vmatmul.mubr.msk.bf16.vlgmr.msra.gmra.mxu1 %vm1005_vm2, %v2127_v9 }
 0x58c   : > { %6936 = vmatpush3.bf16.xpose.msra.mxu1 %v2236_v42  ;;  %6937 = vmatprep.mubr.msk.bf16.mxu1 %vm7980_vm1, %v10562_v4 }
 0x58d   : > { %6947 = vmatprep.subr.bf16.mxu1 %v10562_v4 }
 0x593   : > { %6938 = vmatmul.mubr.msk.bf16.vlgmr.msra.gmra.mxu1 %vm1005_vm2, %v2229_v33 }
 0x594   : > { %6948 = vmatpush3.bf16.xpose.msra.mxu1 %v2338_v55  ;;  %6949 = vmatprep.mubr.msk.bf16.mxu1 %vm7980_vm1, %v10562_v4 }
 0x595   : > { %6959 = vmatprep.subr.bf16.mxu1 %v10562_v4 }
 0x59b   : > { %6950 = vmatmul.mubr.msk.bf16.vlgmr.msra.gmra.mxu1 %vm1005_vm2, %v2331_v48 }
 0x59c   : > { %6961 = vmatprep.mubr.msk.bf16.mxu1 %vm7980_vm1, %v10562_v4 }
 0x5ae   : > { %v8860_v36 = vpop.f32.mrf.mxu0 }
 0x5b0   : > { %v6861_v50 = vpop.f32.mrf.mxu0 }
 0x5b2   : > { %v8862_v19 = vpop.f32.mrf.mxu0 }
 0x5b3   : > { %v1964_v15 = vpack.c.bf16 %v8862_v19, %v8860_v36 }
 0x5b4   : > { %v6862_v11 = vpop.f32.mrf.mxu0 }
 0x5c5   : > { %v8866_v23 = vpop.f32.mrf.mxu1 }
 0x5c7   : > { %v6867_v53 = vpop.f32.mrf.mxu1 }
 0x5c9   : > { %v8868_v34 = vpop.f32.mrf.mxu1 }
 0x5ca   : > { %v1965_v20 = vpack.c.bf16 %v8868_v34, %v8866_v23 }
 0x5cb   : > { %v6868_v56 = vpop.f32.mrf.mxu1 }
 0x5cd   : > { %v8872_v39 = vpop.f32.mrf.mxu0 }
 0x5cf   : > { %v6873_v10 = vpop.f32.mrf.mxu0 }
 0x5d1   : > { %v8874_v16 = vpop.f32.mrf.mxu0  ;;  %v8876_v17 = vpop.f32.mrf.mxu1 }
 0x5d2   : > { %v1966_v24 = vpack.c.bf16 %v8874_v16, %v8872_v39 }
 0x5d3   : > { %v6874_v21 = vpop.f32.mrf.mxu0  ;;  %v6879_v62 = vpop.f32.mrf.mxu1 }
 0x5d5   : > { %v8880_v32 = vpop.f32.mrf.mxu1  ;;  %v8882_v35 = vpop.f32.mrf.mxu0 }
 0x5d6   : > { %v1967_v44 = vpack.c.bf16 %v8880_v32, %v8876_v17 }
 0x5d7   : > { %v6880_v60 = vpop.f32.mrf.mxu1  ;;  %v6885_v61 = vpop.f32.mrf.mxu0 }
 0x5d9   : > { %v8886_v31 = vpop.f32.mrf.mxu0 }
 0x5da   : > { %v1968_v47 = vpack.c.bf16 %v8886_v31, %v8882_v35 }
 0x5db   : > { %v6886_v58 = vpop.f32.mrf.mxu0 }
 0x5dd   : > { %v8890_v43 = vpop.f32.mrf.mxu0 }
 0x5df   : > { %v6897_v2 = vpop.f32.mrf.mxu0 }
 0x5e1   : > { %v8892_v5 = vpop.f32.mrf.mxu0 }
 0x5e2   : > { %v1970_v52 = vpack.c.bf16 %v8892_v5, %v8890_v43 }
 0x5e3   : > { %v6898_v46 = vpop.f32.mrf.mxu0 }
 0x600   : > { %v2017_v29 = vpop.f32.mrf.mxu0 }
 0x601   : > { %v8902_v3 = vadd.f32 %v8899_v8, %v2017_v29 }
 0x602   : > { %v6909_v9 = vpop.f32.mrf.mxu0 }
 0x603   : > { %v2381_v12 = vsel %vm1403_vm3, %v8902_v3, -inf }
 0x604   : > { %2382 = vmax.xlane.f32.xlu0 %v2381_v12  ;;  %v2020_v38 = vpop.f32.mrf.mxu0 }
 0x605   : > { %v8909_v7 = vadd.f32 %v8904_v57, %v2020_v38 }
 0x606   : > { %v8911_v54 = vpop.f32.mrf.mxu1  ;;  %v6910_v18 = vpop.f32.mrf.mxu0 }
 0x607   : > { %v2384_v14 = vsel %vm1403_vm3, %v8909_v7, -inf }
 0x608   : > { %v6891_v59 = vpop.f32.mrf.mxu1  ;;  %2385 = vmax.xlane.f32.xlu1 %v2384_v14 }
 0x60a   : > { %v8915_v22 = vpop.f32.mrf.mxu1 }
 0x60b   : > { %v1969_v26 = vpack.c.bf16 %v8915_v22, %v8911_v54 }
 0x60c   : > { %v6892_v30 = vpop.f32.mrf.mxu1 }
 0x635   : > { %v2119_v37 = vpop.f32.mrf.mxu0 }
 0x636   : > { %v8939_v38 = vadd.f32 %v8899_v8, %v2119_v37 }
 0x637   : > { %v6921_v25 = vpop.f32.mrf.mxu0 }
 0x639   : > { %v2122_v33 = vpop.f32.mrf.mxu0 }
 0x63a   : > { %v8920_v63 = vadd.f32 %v8904_v57, %v2122_v33  ;;  %v2393_v33 = vsel %vm1403_vm3, %v8939_v38, -inf }
 0x63b   : > { %v8922_v40 = vpop.f32.mrf.mxu1  ;;  %v6922_v42 = vpop.f32.mrf.mxu0 }
 0x63c   : > { %v2396_v28 = vsel %vm1403_vm3, %v8920_v63, -inf }
 0x63d   : > { %v6903_v55 = vpop.f32.mrf.mxu1  ;;  %2397 = vmax.xlane.f32.xlu1 %v2396_v28  ;;  %v2221_v48 = vpop.f32.mrf.mxu0 }
 0x63e   : > { %v8952_v55 = vadd.f32 %v8899_v8, %v2221_v48 }
 0x63f   : > { %v8926_v50 = vpop.f32.mrf.mxu1  ;;  %v6933_v11 = vpop.f32.mrf.mxu0 }
 0x640   : > { %v1971_v53 = vpack.c.bf16 %v8926_v50, %v8922_v40  ;;  %v2405_v48 = vsel %vm1403_vm3, %v8952_v55, -inf }
 0x641   : > { %v6904_v56 = vpop.f32.mrf.mxu1  ;;  %v2224_v10 = vpop.f32.mrf.mxu0 }
 0x642   : > { %v8955_v11 = vadd.f32 %v8904_v57, %v2224_v10 }
 0x643   : > { %v2068_v21 = vpop.f32.mrf.mxu1  ;;  %v6934_v62 = vpop.f32.mrf.mxu0 }
 0x644   : > { %v8931_v60 = vadd.f32 %v8899_v8, %v2068_v21  ;;  %v2408_v10 = vsel %vm1403_vm3, %v8955_v11, -inf }
 0x645   : > { %v6915_v61 = vpop.f32.mrf.mxu1  ;;  %v2323_v58 = vpop.f32.mrf.mxu0 }
 0x646   : > { %v2387_v2 = vsel %vm1403_vm3, %v8931_v60, -inf }
 0x647   : > { %2388 = vmax.xlane.f32.xlu0 %v2387_v2  ;;  %v2071_v46 = vpop.f32.mrf.mxu1  ;;  %v6945_v6 = vpop.f32.mrf.mxu0 }
 0x648   : > { %v8936_v29 = vadd.f32 %v8904_v57, %v2071_v46 }
 0x649   : > { %v6916_v9 = vpop.f32.mrf.mxu1  ;;  %v2326_v12 = vpop.f32.mrf.mxu0 }
 0x64a   : > { %v2390_v18 = vsel %vm1403_vm3, %v8936_v29, -inf }
 0x64b   : > { %2391 = vmax.xlane.f32.xlu0 %v2390_v18  ;;  %v2170_v14 = vpop.f32.mrf.mxu1  ;;  %v6946_v59 = vpop.f32.mrf.mxu0  ;;  %v8972_v18 = vadd.f32 %v8899_v8, %v2323_v58 }
 0x64c   : > { %v8944_v25 = vadd.f32 %v8899_v8, %v2170_v14  ;;  %v8975_v14 = vadd.f32 %v8904_v57, %v2326_v12 }
 0x64d   : > { %v6927_v30 = vpop.f32.mrf.mxu1  ;;  %v2417_v58 = vsel %vm1403_vm3, %v8972_v18, -inf }
 0x64e   : > { %v2399_v56 = vsel %vm1403_vm3, %v8944_v25, -inf  ;;  %v2420_v12 = vsel %vm1403_vm3, %v8975_v14, -inf }
 0x64f   : > { %2394 = vmax.xlane.f32.xlu0 %v2393_v33  ;;  %v2173_v42 = vpop.f32.mrf.mxu1 }
 0x650   : > { %v8949_v28 = vadd.f32 %v8904_v57, %v2173_v42 }
 0x651   : > { %v6928_v37 = vpop.f32.mrf.mxu1 }
 0x652   : > { %v2402_v21 = vsel %vm1403_vm3, %v8949_v28, -inf }
 0x653   : > { %2400 = vmax.xlane.f32.xlu0 %v2399_v56  ;;  %2403 = vmax.xlane.f32.xlu1 %v2402_v21  ;;  %v2272_v62 = vpop.f32.mrf.mxu1 }
 0x654   : > { %v8962_v2 = vadd.f32 %v8899_v8, %v2272_v62 }
 0x655   : > { %v6939_v61 = vpop.f32.mrf.mxu1 }
 0x656   : > { %v2411_v59 = vsel %vm1403_vm3, %v8962_v2, -inf }
 0x657   : > { %2406 = vmax.xlane.f32.xlu0 %v2405_v48  ;;  %2409 = vmax.xlane.f32.xlu1 %v2408_v10  ;;  %v2275_v46 = vpop.f32.mrf.mxu1 }
 0x658   : > { %v8969_v6 = vadd.f32 %v8904_v57, %v2275_v46 }
 0x659   : > { %v6940_v9 = vpop.f32.mrf.mxu1 }
 0x65a   : > { %v2414_v30 = vsel %vm1403_vm3, %v8969_v6, -inf }
 0x65b   : > { %2412 = vmax.xlane.f32.xlu0 %v2411_v59  ;;  %2415 = vmax.xlane.f32.xlu1 %v2414_v30  ;;  %v2374_v33 = vpop.f32.mrf.mxu1 }
 0x65c   : > { %v8982_v37 = vadd.f32 %v8899_v8, %v2374_v33 }
 0x65d   : > { %v6951_v42 = vpop.f32.mrf.mxu1 }
 0x65e   : > { %v2423_v62 = vsel %vm1403_vm3, %v8982_v37, -inf }
 0x65f   : > { %v2377_v56 = vpop.f32.mrf.mxu1  ;;  %2418 = vmax.xlane.f32.xlu0 %v2417_v58  ;;  %2421 = vmax.xlane.f32.xlu1 %v2420_v12 }
 0x660   : > { %v9002_v10 = vadd.f32 %v8904_v57, %v2377_v56 }
 0x661   : > { %v6952_v21 = vpop.f32.mrf.mxu1 }
 0x662   : > { %v2426_v46 = vsel %vm1403_vm3, %v9002_v10, -inf }
 0x663   : > { %2424 = vmax.xlane.f32.xlu0 %v2423_v62 }
 0x670   : > { %2612 = vrot.lane.b32.xlu1 %v8465_v45, %s7985_s23 }
 0x674   : > { %2659 = vrot.lane.b32.xlu1 %v8473_v27, %s7985_s23 }
 0x678   : > { %2706 = vrot.lane.b32.xlu1 %v8477_v0, %s7985_s23 }
 0x679   : > { %2565 = vrot.lane.b32.xlu0 %v8467_v13, %s7985_s23 }
 0x67d   : > { %2753 = vrot.lane.b32.xlu0 %v8481_v1, %s7985_s23 }
 0x68d   : > { %v2383_v8 = vpop.xlane.xlu0 %2382 }
 0x68e   : > { %v2429_v61 = vsub.f32 %v8902_v3, %v2383_v8 }
 0x690   : > { %v2445_v48 = vmul.f32 1.442695, %v2429_v61 }
 0x691   : > { %v2386_v30 = vpop.xlane.xlu1 %2385 }
 0x692   : > { %7522 = vpow2.f32 %v2445_v48  ;;  %v2430_v3 = vsub.f32 %v8909_v7, %v2386_v30 }
 0x694   : > { %v2447_v33 = vmul.f32 1.442695, %v2430_v3 }
 0x696   : > { %7524 = vpow2.f32 %v2447_v33 }
 0x69c   : > { %2427 = vmax.xlane.f32.xlu1 %v2426_v46 }
 0x69f   : > { %v9006_v9 = vpop.eup %7522 }
 0x6a0   : > { %v2477_v59 = vsel %vm1403_vm3, %v9006_v9, 0.0 }
 0x6a1   : > { %2478 = vadd.xlane.f32.xlu0 %v2477_v59 }
 0x6a3   : > { %v9013_v57 = vpop.eup %7524 }
 0x6a4   : > { %v2480_v12 = vsel %vm1403_vm3, %v9013_v57, 0.0 }
 0x6ad   : > { %2800 = vrot.lane.b32.xlu1 %v8483_v41, %s7985_s23 }
 0x6c6   : > { %v2398_v42 = vpop.xlane.xlu1 %2397 }
 0x6c7   : > { %v2434_v21 = vsub.f32 %v8920_v63, %v2398_v42 }
 0x6c9   : > { %v2455_v7 = vmul.f32 1.442695, %v2434_v21 }
 0x6d0   : > { %v2389_v58 = vpop.xlane.xlu0 %2388 }
 0x6d1   : > { %v2431_v56 = vsub.f32 %v8931_v60, %v2389_v58  ;;  %2481 = vadd.xlane.f32.xlu1 %v2480_v12 }
 0x6d3   : > { %v2449_v62 = vmul.f32 1.442695, %v2431_v56 }
 0x6d4   : > { %v2392_v8 = vpop.xlane.xlu0 %2391 }
 0x6d5   : > { %7526 = vpow2.f32 %v2449_v62  ;;  %v2432_v61 = vsub.f32 %v8936_v29, %v2392_v8 }
 0x6d7   : > { %v2451_v48 = vmul.f32 1.442695, %v2432_v61 }
 0x6d8   : > { %v2395_v46 = vpop.xlane.xlu0 %2394 }
 0x6d9   : > { %7528 = vpow2.f32 %v2451_v48  ;;  %v2433_v59 = vsub.f32 %v8939_v38, %v2395_v46 }
 0x6da   : > { %7530 = vpow2.f32 %v2455_v7 }
 0x6db   : > { %v2453_v30 = vmul.f32 1.442695, %v2433_v59 }
 0x6dc   : > { %v2404_v3 = vpop.xlane.xlu1 %2403  ;;  %v2401_v33 = vpop.xlane.xlu0 %2400 }
 0x6dd   : > { %7532 = vpow2.f32 %v2453_v30  ;;  %v2436_v60 = vsub.f32 %v8949_v28, %v2404_v3  ;;  %v2435_v63 = vsub.f32 %v8944_v25, %v2401_v33 }
 0x6df   : > { %v2459_v42 = vmul.f32 1.442695, %v2436_v60  ;;  %v2457_v58 = vmul.f32 1.442695, %v2435_v63 }
 0x6e0   : > { %v2410_v12 = vpop.xlane.xlu1 %2409  ;;  %v2407_v56 = vpop.xlane.xlu0 %2406 }
 0x6e1   : > { %7534 = vpow2.f32 %v2459_v42  ;;  %v2438_v29 = vsub.f32 %v8955_v11, %v2410_v12  ;;  %v2437_v21 = vsub.f32 %v8952_v55, %v2407_v56 }
 0x6e2   : > { %v9025_v62 = vpop.eup %7526  ;;  %7536 = vpow2.f32 %v2457_v58 }
 0x6e3   : > { %v2463_v38 = vmul.f32 1.442695, %v2438_v29  ;;  %v2461_v8 = vmul.f32 1.442695, %v2437_v21  ;;  %v2483_v61 = vsel %vm1403_vm3, %v9025_v62, 0.0 }
 0x6e4   : > { %v2416_v28 = vpop.xlane.xlu1 %2415  ;;  %2484 = vadd.xlane.f32.xlu0 %v2483_v61  ;;  %v2413_v25 = vpop.xlane.xlu0 %2412 }
 0x6e5   : > { %7538 = vpow2.f32 %v2463_v38  ;;  %v2440_v7 = vsub.f32 %v8969_v6, %v2416_v28  ;;  %v2439_v48 = vsub.f32 %v8962_v2, %v2413_v25 }
 0x6e6   : > { %v9031_v46 = vpop.eup %7528  ;;  %7540 = vpow2.f32 %v2461_v8 }
 0x6e7   : > { %v2467_v55 = vmul.f32 1.442695, %v2440_v7  ;;  %v2465_v11 = vmul.f32 1.442695, %v2439_v48  ;;  %v2486_v59 = vsel %vm1403_vm3, %v9031_v46, 0.0  ;;  %v9035_v30 = vpop.eup %7530 }
 0x6e8   : > { %v2422_v3 = vpop.xlane.xlu1 %2421  ;;  %2487 = vadd.xlane.f32.xlu1 %v2486_v59  ;;  %v2419_v33 = vpop.xlane.xlu0 %2418  ;;  %v2492_v58 = vsel %vm1403_vm3, %v9035_v30, 0.0 }
 0x6e9   : > { %7542 = vpow2.f32 %v2467_v55  ;;  %v2442_v60 = vsub.f32 %v8975_v14, %v2422_v3  ;;  %v2441_v6 = vsub.f32 %v8972_v18, %v2419_v33 }
 0x6ea   : > { %v9039_v63 = vpop.eup %7532  ;;  %7544 = vpow2.f32 %v2465_v11 }
 0x6eb   : > { %v2471_v2 = vmul.f32 1.442695, %v2442_v60  ;;  %v2469_v42 = vmul.f32 1.442695, %v2441_v6  ;;  %v2489_v12 = vsel %vm1403_vm3, %v9039_v63, 0.0 }
 0x6ec   : > { %v2613_v56 = vpop.permute.xlu1 %2612  ;;  %2493 = vadd.xlane.f32.xlu1 %v2492_v58  ;;  %2490 = vadd.xlane.f32.xlu0 %v2489_v12  ;;  %v2425_v29 = vpop.xlane.xlu0 %2424 }
 0x6ed   : > { %7546 = vpow2.f32 %v2471_v2  ;;  %v2443_v14 = vsub.f32 %v8982_v37, %v2425_v29  ;;  %6960 = vmatpush3.bf16.msra.mxu1 %v2613_v56 }
 0x6ee   : > { %v9046_v18 = vpop.eup %7534  ;;  %7548 = vpow2.f32 %v2469_v42  ;;  %6971 = vmatprep.subr.bf16.mxu1 %v10562_v4 }
 0x6ef   : > { %v9049_v21 = vpop.eup %7536  ;;  %v2473_v38 = vmul.f32 1.442695, %v2443_v14  ;;  %v2498_v8 = vsel %vm1403_vm3, %v9046_v18, 0.0 }
 0x6f0   : > { %2499 = vadd.xlane.f32.xlu1 %v2498_v8  ;;  %v2495_v61 = vsel %vm1403_vm3, %v9049_v21, 0.0  ;;  %v2566_v28 = vpop.permute.xlu0 %2565  ;;  %v2660_v12 = vpop.permute.xlu1 %2659 }
 0x6f1   : > { %7550 = vpow2.f32 %v2473_v38  ;;  %2496 = vadd.xlane.f32.xlu0 %v2495_v61  ;;  %6954 = vmatpush3.bf16.msra.mxu0 %v2566_v28 }
 0x6f2   : > { %v9055_v37 = vpop.eup %7538  ;;  %6965 = vmatprep.subr.bf16.mxu0 %v10562_v4 }
 0x6f3   : > { %v9058_v25 = vpop.eup %7540  ;;  %v2504_v7 = vsel %vm1403_vm3, %v9055_v37, 0.0 }
 0x6f4   : > { %2505 = vadd.xlane.f32.xlu1 %v2504_v7  ;;  %v2501_v48 = vsel %vm1403_vm3, %v9058_v25, 0.0  ;;  %v9090_v56 = vpop.permute.xlu1 %2706  ;;  %v9113_v61 = vpop.permute.xlu0 %2753 }
 0x6f5   : > { %2502 = vadd.xlane.f32.xlu0 %v2501_v48 }
 0x6f6   : > { %v9064_v55 = vpop.eup %7542 }
 0x6f7   : > { %v9066_v11 = vpop.eup %7544  ;;  %v2510_v59 = vsel %vm1403_vm3, %v9064_v55, 0.0 }
 0x6f8   : > { %2511 = vadd.xlane.f32.xlu1 %v2510_v59  ;;  %v2507_v3 = vsel %vm1403_vm3, %v9066_v11, 0.0 }
 0x6f9   : > { %2508 = vadd.xlane.f32.xlu0 %v2507_v3 }
 0x6fa   : > { %v9072_v33 = vpop.eup %7546 }
 0x6fb   : > { %v9074_v60 = vpop.eup %7548  ;;  %v2516_v6 = vsel %vm1403_vm3, %v9072_v33, 0.0 }
 0x6fc   : > { %2517 = vadd.xlane.f32.xlu1 %v2516_v6  ;;  %v2513_v2 = vsel %vm1403_vm3, %v9074_v60, 0.0 }
 0x6fd   : > { %2514 = vadd.xlane.f32.xlu0 %v2513_v2 }
 0x6fe   : > { %v9080_v42 = vpop.eup %7550 }
 0x6ff   : > { %v2519_v58 = vsel %vm1403_vm3, %v9080_v42, 0.0 }
 0x701   : > { %2520 = vadd.xlane.f32.xlu0 %v2519_v58 }
 0x717   : > { %2847 = vrot.lane.b32.xlu0 %v8491_v51, %s7985_s23 }
 0x71b   : > { %3201 = vrot.lane.b32.xlu0 %v8467_v13, %s7986_s15 }
 0x71f   : > { %3199 = vrot.lane.b32.xlu0 %v8467_v13, %s7987_s16 }
 0x723   : > { %3250 = vrot.lane.b32.xlu0 %v8465_v45, %s7987_s16 }
 0x725   : > { %v2428_v29 = vpop.xlane.xlu1 %2427 }
 0x726   : > { %v2444_v14 = vsub.f32 %v9002_v10, %v2428_v29 }
 0x727   : > { %3301 = vrot.lane.b32.xlu0 %v8473_v27, %s7987_s16 }
 0x728   : > { %v2475_v38 = vmul.f32 1.442695, %v2444_v14 }
 0x729   : > { %v9117_v28 = vpop.permute.xlu1 %2800 }
 0x72a   : > { %7552 = vpow2.f32 %v2475_v38  ;;  %v2479_v7 = vpop.xlane.xlu0 %2478 }
 0x72b   : > { %3352 = vrot.lane.b32.xlu0 %v8477_v0, %s7987_s16  ;;  %7554 = vrcp.f32 %v2479_v7 }
 0x72f   : > { %3403 = vrot.lane.b32.xlu0 %v8481_v1, %s7987_s16 }
 0x733   : > { %3454 = vrot.lane.b32.xlu0 %v8483_v41, %s7987_s16 }
 0x737   : > { %v9103_v8 = vpop.eup %7552  ;;  %3505 = vrot.lane.b32.xlu0 %v8491_v51, %s7987_s16 }
 0x738   : > { %v2522_v10 = vsel %vm1403_vm3, %v9103_v8, 0.0  ;;  %v7555_v59 = vpop.eup %7554 }
 0x739   : > { %2523 = vadd.xlane.f32.xlu1 %v2522_v10  ;;  %v2541_v6 = vmul.f32 %v7555_v59, %v9006_v9 }
 0x74a   : > { %2894 = vrot.lane.b32.xlu1 %v8489_v49, %s7985_s23  ;;  %s10616_s23 = sld [smem:[#allocation37_spill]] }
 0x74e   : > { %3252 = vrot.lane.b32.xlu1 %v8465_v45, %s7986_s15 }
 0x752   : > { %3303 = vrot.lane.b32.xlu1 %v8473_v27, %s7986_s15 }
 0x756   : > { %3354 = vrot.lane.b32.xlu1 %v8477_v0, %s7986_s15 }
 0x75a   : > { %v2482_v48 = vpop.xlane.xlu1 %2481  ;;  %3405 = vrot.lane.b32.xlu1 %v8481_v1, %s7986_s15 }
 0x75b   : > { %7556 = vrcp.f32 %v2482_v48 }
 0x75e   : > { %3456 = vrot.lane.b32.xlu1 %v8483_v41, %s7986_s15 }
 0x762   : > { %3507 = vrot.lane.b32.xlu1 %v8491_v51, %s7986_s15 }
 0x766   : > { %3558 = vrot.lane.b32.xlu1 %v8489_v49, %s7986_s15  ;;  %s10447_s15 = scalar_lea.hbm %s10616_s23, %s6567_s25 }
 0x768   : > { %v7557_v3 = vpop.eup %7556 }
 0x769   : > { %v2542_v2 = vmul.f32 %v7557_v3, %v9013_v57 }
 0x76a   : > { %3556 = vrot.lane.b32.xlu1 %v8489_v49, %s7987_s16 }
 0x76b   : > { %v2557_v58 = vpack.c.bf16 %v2542_v2, %v2541_v6 }
 0x76d   : > { %6956 = vmatmul.mubr.msk.bf16.vlgmr.msra.gmra.mxu0 %vm1403_vm3, %v2557_v58  ;;  %v2485_v29 = vpop.xlane.xlu0 %2484 }
 0x76e   : > { %6966 = vmatpush3.bf16.msra.mxu0 %v2660_v12  ;;  %6967 = vmatprep.mubr.msk.bf16.mxu0 %vm7980_vm1, %v10562_v4  ;;  %7558 = vrcp.f32 %v2485_v29 }
 0x76f   : > { %6977 = vmatprep.subr.bf16.mxu0 %v10562_v4 }
 0x771   : > { %v2488_v14 = vpop.xlane.xlu1 %2487 }
 0x772   : > { %7560 = vrcp.f32 %v2488_v14 }
 0x775   : > { %v2494_v38 = vpop.xlane.xlu1 %2493  ;;  %v2491_v9 = vpop.xlane.xlu0 %2490 }
 0x776   : > { %7562 = vrcp.f32 %v2494_v38 }
 0x777   : > { %7564 = vrcp.f32 %v2491_v9 }
 0x779   : > { %v2500_v57 = vpop.xlane.xlu1 %2499 }
 0x77a   : > { %7566 = vrcp.f32 %v2500_v57  ;;  %v2497_v10 = vpop.xlane.xlu0 %2496 }
 0x77b   : > { %7568 = vrcp.f32 %v2497_v10  ;;  %v7559_v7 = vpop.eup %7558 }
 0x77c   : > { %v2543_v3 = vmul.f32 %v7559_v7, %v9025_v62 }
 0x77d   : > { %v2506_v48 = vpop.xlane.xlu1 %2505 }
 0x77e   : > { %7570 = vrcp.f32 %v2506_v48  ;;  %v2503_v12 = vpop.xlane.xlu0 %2502 }
 0x77f   : > { %v7561_v59 = vpop.eup %7560  ;;  %7572 = vrcp.f32 %v2503_v12 }
 0x780   : > { %v2544_v6 = vmul.f32 %v7561_v59, %v9031_v46 }
 0x781   : > { %v2512_v2 = vpop.xlane.xlu1 %2511 }
 0x782   : > { %7574 = vrcp.f32 %v2512_v2  ;;  %v2509_v58 = vpop.xlane.xlu0 %2508  ;;  %v2558_v29 = vpack.c.bf16 %v2544_v6, %v2543_v3 }
 0x783   : > { %v7563_v14 = vpop.eup %7562  ;;  %7576 = vrcp.f32 %v2509_v58 }
 0x784   : > { %v7565_v38 = vpop.eup %7564  ;;  %6962 = vmatmul.mubr.msk.bf16.vlgmr.msra.gmra.mxu1 %vm1403_vm3, %v2558_v29  ;;  %v2546_v9 = vmul.f32 %v7563_v14, %v9035_v30 }
 0x785   : > { %6972 = vmatpush3.bf16.msra.mxu1 %v9090_v56  ;;  %v2518_v57 = vpop.xlane.xlu1 %2517  ;;  %v2545_v10 = vmul.f32 %v7565_v38, %v9039_v63  ;;  %6973 = vmatprep.mubr.msk.bf16.mxu1 %vm7980_vm1, %v10562_v4 }
 0x786   : > { %7578 = vrcp.f32 %v2518_v57  ;;  %v2515_v62 = vpop.xlane.xlu0 %2514  ;;  %6983 = vmatprep.subr.bf16.mxu1 %v10562_v4  ;;  %v1972_v57 = vld [vmem:[%s10539_s6] sm:$0xf] }
 0x787   : > { %v7567_v46 = vpop.eup %7566  ;;  %7580 = vrcp.f32 %v2515_v62  ;;  %v2559_v7 = vpack.c.bf16 %v2546_v9, %v2545_v10 }
 0x788   : > { %v7569_v48 = vpop.eup %7568  ;;  %v2548_v12 = vmul.f32 %v7567_v46, %v9046_v18 }
 0x789   : > { %6968 = vmatmul.mubr.msk.bf16.vlgmr.msra.gmra.mxu0 %vm1403_vm3, %v2559_v7  ;;  %v2547_v30 = vmul.f32 %v7569_v48, %v9049_v21 }
 0x78a   : > { %6978 = vmatpush3.bf16.msra.mxu0 %v9113_v61  ;;  %6979 = vmatprep.mubr.msk.bf16.mxu0 %vm7980_vm1, %v10562_v4  ;;  %v2521_v56 = vpop.xlane.xlu0 %2520 }
 0x78b   : > { %v7571_v63 = vpop.eup %7570  ;;  %v2560_v59 = vpack.c.bf16 %v2548_v12, %v2547_v30  ;;  %6989 = vmatprep.subr.bf16.mxu0 %v10562_v4  ;;  %7582 = vrcp.f32 %v2521_v56  ;;  %v3100_v30 = vsel %vm2974_vm4, %v1972_v57, 0 }
 0x78c   : > { %v7573_v3 = vpop.eup %7572  ;;  %v2550_v6 = vmul.f32 %v7571_v63, %v9055_v37 }
 0x78d   : > { %6974 = vmatmul.mubr.msk.bf16.vlgmr.msra.gmra.mxu1 %vm1403_vm3, %v2560_v59  ;;  %v2549_v18 = vmul.f32 %v7573_v3, %v9058_v25 }
 0x78e   : > { %6984 = vmatpush3.bf16.msra.mxu1 %v9117_v28  ;;  %6985 = vmatprep.mubr.msk.bf16.mxu1 %vm7980_vm1, %v10562_v4  ;;  %v2848_v29 = vpop.permute.xlu0 %2847 }
 0x78f   : > { %v7575_v21 = vpop.eup %7574  ;;  %v2561_v61 = vpack.c.bf16 %v2550_v6, %v2549_v18  ;;  %6995 = vmatprep.subr.bf16.mxu1 %v10562_v4 }
 0x790   : > { %v7577_v2 = vpop.eup %7576  ;;  %v2552_v58 = vmul.f32 %v7575_v21, %v9064_v55 }
 0x791   : > { %6980 = vmatmul.mubr.msk.bf16.vlgmr.msra.gmra.mxu0 %vm1403_vm3, %v2561_v61  ;;  %v2551_v37 = vmul.f32 %v7577_v2, %v9066_v11 }
 0x792   : > { %6990 = vmatpush3.bf16.msra.mxu0 %v2848_v29  ;;  %6991 = vmatprep.mubr.msk.bf16.mxu0 %vm7980_vm1, %v10562_v4  ;;  %v3202_v36 = vpop.permute.xlu0 %3201 }
 0x793   : > { %v7579_v25 = vpop.eup %7578  ;;  %v2562_v28 = vpack.c.bf16 %v2552_v58, %v2551_v37  ;;  %v3207_v6 = vsel %vm1005_vm2, %v3202_v36, 0 }
 0x794   : > { %v7581_v14 = vpop.eup %7580  ;;  %v2554_v38 = vmul.f32 %v7579_v25, %v9072_v33  ;;  %v2949_v33 = vld [vmem:[%s10539_s6 + $0x4] sm:$0xf] }
 0x795   : > { %6986 = vmatmul.mubr.msk.bf16.vlgmr.msra.gmra.mxu1 %vm1403_vm3, %v2562_v28  ;;  %v2553_v9 = vmul.f32 %v7581_v14, %v9074_v60  ;;  %7321 = vmatprep.subr.msk.bf16.mxu0 %vm2974_vm4, %v2949_v33  ;;  %v2976_v60 = vsel %vm2974_vm4, %v2949_v33, 0 }
 0x796   : > { %6997 = vmatprep.mubr.msk.bf16.mxu1 %vm7980_vm1, %v10562_v4 }
 0x797   : > { %v2563_v55 = vpack.c.bf16 %v2554_v38, %v2553_v9 }
 0x798   : > { %v7583_v62 = vpop.eup %7582 }
 0x799   : > { %6992 = vmatmul.mubr.msk.bf16.vlgmr.msra.gmra.mxu0 %vm1403_vm3, %v2563_v55  ;;  %v2555_v7 = vmul.f32 %v7583_v62, %v9080_v42 }
 0x79a   : > { %7002 = vmatpush3.bf16.msra.mxu0 %v2976_v60 }
 0x79b   : > { %7037 = vmatprep.subr.bf16.mxu0 %v10562_v4 }
 0x7c2   : > { %v2524_v11 = vpop.xlane.xlu1 %2523 }
 0x7c3   : > { %7584 = vrcp.f32 %v2524_v11 }
 0x7c6   : > { %v2895_v10 = vpop.permute.xlu1 %2894 }
 0x7c7   : > { %6996 = vmatpush3.bf16.msra.mxu1 %v2895_v10 }
 0x7c8   : > { %7322 = vmatprep.subr.msk.bf16.mxu1 %vm2974_vm4, %v1972_v57 }
 0x7ca   : > { %v3253_v63 = vpop.permute.xlu1 %3252 }
 0x7cb   : > { %v3258_v56 = vsel %vm1005_vm2, %v3253_v63, 0 }
 0x7ce   : > { %v9208_v19 = vpop.permute.xlu1 %3303 }
 0x7d0   : > { %v7585_v46 = vpop.eup %7584 }
 0x7d1   : > { %v2556_v48 = vmul.f32 %v7585_v46, %v9103_v8 }
 0x7d2   : > { %v3355_v23 = vpop.permute.xlu1 %3354 }
 0x7d3   : > { %v2564_v12 = vpack.c.bf16 %v2556_v48, %v2555_v7  ;;  %v3360_v16 = vsel %vm1005_vm2, %v3355_v23, 0 }
 0x7d5   : > { %6998 = vmatmul.mubr.msk.bf16.vlgmr.msra.gmra.mxu1 %vm1403_vm3, %v2564_v12 }
 0x7d6   : > { %7021 = vmatprep.mubr.msk.bf16.mxu1 %vm1005_vm2, %v1964_v15  ;;  %7020 = vmatpush3.bf16.msra.mxu1 %v3100_v30  ;;  %v9214_v15 = vpop.permute.xlu0 %3199 }
 0x7d7   : > { %7043 = vmatprep.subr.bf16.mxu1 %v10562_v4 }
 0x7da   : > { %v3251_v34 = vpop.permute.xlu0 %3250 }
 0x7dd   : > { %7022 = vmatmul.mubr.msk.bf16.vlgmr.msra.gmra.mxu1 %vm1005_vm2, %v1965_v20  ;;  %v9226_v20 = vpop.permute.xlu1 %3405 }
 0x7de   : > { %7044 = vmatpush3.bf16.xpose.msra.mxu1 %v3258_v56  ;;  %7025 = vmatprep.mubr.msk.bf16.mxu1 %vm1005_vm2, %v1966_v24  ;;  %v9228_v39 = vpop.permute.xlu0 %3301 }
 0x7df   : > { %7055 = vmatprep.subr.bf16.mxu1 %v10562_v4 }
 0x7e1   : > { %v3457_v17 = vpop.permute.xlu1 %3456 }
 0x7e2   : > { %v3353_v24 = vpop.permute.xlu0 %3352  ;;  %v3462_v35 = vsel %vm1005_vm2, %v3457_v17, 0 }
 0x7e5   : > { %7026 = vmatmul.mubr.msk.bf16.gmra.mxu1 %vm1005_vm2, %v1967_v44  ;;  %v9235_v32 = vpop.permute.xlu1 %3507 }
 0x7e6   : > { %7029 = vmatprep.mubr.msk.bf16.mxu1 %vm1005_vm2, %v1968_v47  ;;  %v9239_v44 = vpop.permute.xlu0 %3403 }
 0x7e9   : > { %v3559_v31 = vpop.permute.xlu1 %3558 }
 0x7ea   : > { %v3455_v47 = vpop.permute.xlu0 %3454  ;;  %v3564_v43 = vsel %vm1005_vm2, %v3559_v31, 0  ;;  %v3309_v31 = vsel %vm1005_vm2, %v9208_v19, 0  ;;  %v3411_v19 = vsel %vm1005_vm2, %v9226_v20, 0  ;;  %v3513_v20 = vsel %vm1005_vm2, %v9235_v32, 0 }
 0x7ed   : > { %7030 = vmatmul.mubr.msk.bf16.gmra.mxu1 %vm1005_vm2, %v1969_v26  ;;  %v3557_v5 = vpop.permute.xlu1 %3556 }
 0x7ee   : > { %7033 = vmatprep.mubr.msk.bf16.mxu1 %vm1005_vm2, %v1970_v52 }
 0x7f5   : > { %7034 = vmatmul.mubr.msk.bf16.gmra.mxu1 %vm1005_vm2, %v1971_v53 }
 0x7f6   : > { %7045 = vmatprep.mubr.msk.bf16.mxu1 %vm7980_vm1, %v10562_v4 }
 0x7fd   : > { %7046 = vmatmul.mubr.msk.bf16.vlgmr.msra.gmra.mxu1 %vm1005_vm2, %v3251_v34 }
 0x7fe   : > { %7056 = vmatpush3.bf16.xpose.msra.mxu1 %v3360_v16  ;;  %7057 = vmatprep.mubr.msk.bf16.mxu1 %vm7980_vm1, %v10562_v4 }
 0x7ff   : > { %7067 = vmatprep.subr.bf16.mxu1 %v10562_v4 }
 0x805   : > { %7058 = vmatmul.mubr.msk.bf16.vlgmr.msra.gmra.mxu1 %vm1005_vm2, %v3353_v24 }
 0x806   : > { %7068 = vmatpush3.bf16.xpose.msra.mxu1 %v3462_v35  ;;  %7069 = vmatprep.mubr.msk.bf16.mxu1 %vm7980_vm1, %v10562_v4 }
 0x807   : > { %7079 = vmatprep.subr.bf16.mxu1 %v10562_v4 }
 0x80d   : > { %7070 = vmatmul.mubr.msk.bf16.vlgmr.msra.gmra.mxu1 %vm1005_vm2, %v3455_v47 }
 0x80e   : > { %7080 = vmatpush3.bf16.xpose.msra.mxu1 %v3564_v43  ;;  %7081 = vmatprep.mubr.msk.bf16.mxu1 %vm7980_vm1, %v10562_v4 }
 0x80f   : > { %7091 = vmatprep.subr.bf16.mxu1 %v10562_v4 }
 0x815   : > { %7082 = vmatmul.mubr.msk.bf16.vlgmr.msra.gmra.mxu1 %vm1005_vm2, %v3557_v5 }
 0x816   : > { %7093 = vmatprep.mubr.msk.bf16.mxu1 %vm7980_vm1, %v10562_v4 }
 0x82d   : > { %v2605_v52 = vpop.f32.mrf.mxu0 }
 0x82f   : > { %v6957_v54 = vpop.f32.mrf.mxu0 }
 0x831   : > { %v2608_v22 = vpop.f32.mrf.mxu0 }
 0x832   : > { %v2941_v26 = vpack.c.bf16 %v2608_v22, %v2605_v52 }
 0x833   : > { %v6958_v40 = vpop.f32.mrf.mxu0 }
 0x834   : > { %7003 = vmatprep.mubr.msk.bf16.mxu0 %vm1005_vm2, %v2941_v26 }
 0x844   : > { %v2652_v50 = vpop.f32.mrf.mxu1 }
 0x846   : > { %v6963_v53 = vpop.f32.mrf.mxu1 }
 0x848   : > { %v2655_v42 = vpop.f32.mrf.mxu1 }
 0x849   : > { %v2942_v8 = vpack.c.bf16 %v2655_v42, %v2652_v50  ;;  %v2699_v59 = vpop.f32.mrf.mxu0  ;;  %v6587_v50 = vld [vmem:[%s10538_s5 + $0x10] sm:$0xff]   ;;  %v3506_v42 = vpop.permute.xlu0 %3505 }
 0x84a   : > { %v6964_v3 = vpop.f32.mrf.mxu1  ;;  %v9318_v32 = vunpack.c.l.bf16 %v6587_v50 }
 0x84b   : > { %v6969_v18 = vpop.f32.mrf.mxu0  ;;  %7004 = vmatmul.mubr.msk.bf16.vlgmr.msra.gmra.mxu0 %vm1005_vm2, %v2942_v8  ;;  %v9326_v3 = vunpack.c.h.bf16 %v6587_v50 }
 0x84c   : > { %7038 = vmatpush3.bf16.xpose.msra.mxu0 %v3207_v6 }
 0x84d   : > { %v2702_v21 = vpop.f32.mrf.mxu0  ;;  %v2746_v61 = vpop.f32.mrf.mxu1  ;;  %7049 = vmatprep.subr.bf16.mxu0 %v10562_v4 }
 0x84e   : > { %v2943_v2 = vpack.c.bf16 %v2702_v21, %v2699_v59 }
 0x84f   : > { %v6970_v58 = vpop.f32.mrf.mxu0  ;;  %v6975_v29 = vpop.f32.mrf.mxu1 }
 0x850   : > { %7007 = vmatprep.mubr.msk.bf16.mxu0 %vm1005_vm2, %v2943_v2 }
 0x851   : > { %v2749_v37 = vpop.f32.mrf.mxu1  ;;  %v2793_v25 = vpop.f32.mrf.mxu0 }
 0x852   : > { %v2944_v28 = vpack.c.bf16 %v2749_v37, %v2746_v61 }
 0x853   : > { %v6976_v14 = vpop.f32.mrf.mxu1  ;;  %v6981_v38 = vpop.f32.mrf.mxu0 }
 0x854   : > { %7008 = vmatmul.mubr.msk.bf16.gmra.mxu0 %vm1005_vm2, %v2944_v28 }
 0x855   : > { %v2796_v9 = vpop.f32.mrf.mxu0  ;;  %v2840_v55 = vpop.f32.mrf.mxu1 }
 0x856   : > { %v2945_v11 = vpack.c.bf16 %v2796_v9, %v2793_v25 }
 0x857   : > { %v6982_v57 = vpop.f32.mrf.mxu0  ;;  %v6987_v10 = vpop.f32.mrf.mxu1 }
 0x858   : > { %7011 = vmatprep.mubr.msk.bf16.mxu0 %vm1005_vm2, %v2945_v11 }
 0x859   : > { %v2843_v33 = vpop.f32.mrf.mxu1  ;;  %v2887_v60 = vpop.f32.mrf.mxu0 }
 0x85a   : > { %v2946_v62 = vpack.c.bf16 %v2843_v33, %v2840_v55 }
 0x85b   : > { %v6988_v46 = vpop.f32.mrf.mxu1  ;;  %v6993_v7 = vpop.f32.mrf.mxu0 }
 0x85c   : > { %7012 = vmatmul.mubr.msk.bf16.gmra.mxu0 %vm1005_vm2, %v2946_v62 }
 0x85d   : > { %v2890_v48 = vpop.f32.mrf.mxu0 }
 0x85e   : > { %v2947_v12 = vpack.c.bf16 %v2890_v48, %v2887_v60 }
 0x85f   : > { %v6994_v30 = vpop.f32.mrf.mxu0 }
 0x860   : > { %7015 = vmatprep.mubr.msk.bf16.mxu0 %vm1005_vm2, %v2947_v12 }
 0x895   : > { %v2934_v63 = vpop.f32.mrf.mxu1 }
 0x897   : > { %v6999_v56 = vpop.f32.mrf.mxu1 }
 0x899   : > { %v2937_v36 = vpop.f32.mrf.mxu1 }
 0x89a   : > { %v2948_v23 = vpack.c.bf16 %v2937_v36, %v2934_v63 }
 0x89b   : > { %v7000_v34 = vpop.f32.mrf.mxu1 }
 0x89c   : > { %7016 = vmatmul.mubr.msk.bf16.gmra.mxu0 %vm1005_vm2, %v2948_v23 }
 0x89d   : > { %v9262_v16 = vpop.f32.mrf.mxu1  ;;  %7039 = vmatprep.mubr.msk.bf16.mxu0 %vm7980_vm1, %v10562_v4 }
 0x89f   : > { %v9266_v17 = vpop.f32.mrf.mxu1 }
 0x8a1   : > { %v9268_v24 = vpop.f32.mrf.mxu1 }
 0x8a3   : > { %v9270_v35 = vpop.f32.mrf.mxu1 }
 0x8a4   : > { %10590 = vst [vmem:[#allocation21_spill] sm:$0xff] %v9270_v35  ;;  %7040 = vmatmul.mubr.msk.bf16.vlgmr.msra.gmra.mxu0 %vm1005_vm2, %v9214_v15 }
 0x8a5   : > { %7050 = vmatpush3.bf16.xpose.msra.mxu0 %v3309_v31  ;;  %v9276_v47 = vpop.f32.mrf.mxu1  ;;  %7051 = vmatprep.mubr.msk.bf16.mxu0 %vm7980_vm1, %v10562_v4 }
 0x8a6   : > { %7061 = vmatprep.subr.bf16.mxu0 %v10562_v4 }
 0x8a7   : > { %v9281_v43 = vpop.f32.mrf.mxu1 }
 0x8a9   : > { %v9283_v5 = vpop.f32.mrf.mxu1 }
 0x8ab   : > { %v9285_v52 = vpop.f32.mrf.mxu1 }
 0x8ac   : > { %10591 = vst [vmem:[#allocation22_spill] sm:$0xff] %v9285_v52  ;;  %7052 = vmatmul.mubr.msk.bf16.vlgmr.msra.gmra.mxu0 %vm1005_vm2, %v9228_v39 }
 0x8ad   : > { %7062 = vmatpush3.bf16.xpose.msra.mxu0 %v3411_v19  ;;  %v9291_v15 = vpop.f32.mrf.mxu1  ;;  %7063 = vmatprep.mubr.msk.bf16.mxu0 %vm7980_vm1, %v10562_v4 }
 0x8ae   : > { %7073 = vmatprep.subr.bf16.mxu0 %v10562_v4 }
 0x8af   : > { %v9296_v54 = vpop.f32.mrf.mxu1 }
 0x8b1   : > { %v9298_v22 = vpop.f32.mrf.mxu1 }
 0x8b3   : > { %v9300_v26 = vpop.f32.mrf.mxu1 }
 0x8b4   : > { %7064 = vmatmul.mubr.msk.bf16.vlgmr.msra.gmra.mxu0 %vm1005_vm2, %v9239_v44 }
 0x8b5   : > { %7074 = vmatpush3.bf16.xpose.msra.mxu0 %v3513_v20  ;;  %v9306_v39 = vpop.f32.mrf.mxu1  ;;  %7075 = vmatprep.mubr.msk.bf16.mxu0 %vm7980_vm1, %v10562_v4 }
 0x8b6   : > { %10592 = vst [vmem:[#allocation23_spill] sm:$0xff] %v9306_v39  ;;  %7085 = vmatprep.subr.bf16.mxu0 %v10562_v4 }
 0x8b7   : > { %v9311_v40 = vpop.f32.mrf.mxu1 }
 0x8b8   : > { %10593 = vst [vmem:[#allocation24_spill] sm:$0xff] %v9311_v40 }
 0x8b9   : > { %v9316_v53 = vpop.f32.mrf.mxu1 }
 0x8ba   : > { %10594 = vst [vmem:[#allocation25_spill] sm:$0xff] %v9316_v53 }
 0x8bb   : > { %v9320_v44 = vpop.f32.mrf.mxu1 }
 0x8bc   : > { %10595 = vst [vmem:[#allocation26_spill] sm:$0xff] %v9320_v44  ;;  %7076 = vmatmul.mubr.msk.bf16.vlgmr.msra.gmra.mxu0 %vm1005_vm2, %v3506_v42 }
 0x8bd   : > { %v3294_v8 = vpop.f32.mrf.mxu1  ;;  %7087 = vmatprep.mubr.msk.bf16.mxu0 %vm7980_vm1, %v10562_v4 }
 0x8be   : > { %v3295_v59 = vadd.f32 %v9318_v32, %v3294_v8 }
 0x8bf   : > { %v7047_v6 = vpop.f32.mrf.mxu1 }
 0x8c0   : > { %v3613_v18 = vsel %vm1403_vm3, %v3295_v59, -inf }
 0x8c1   : > { %3614 = vmax.xlane.f32.xlu0 %v3613_v18  ;;  %v3297_v21 = vpop.f32.mrf.mxu1 }
 0x8c2   : > { %v3298_v61 = vadd.f32 %v9326_v3, %v3297_v21 }
 0x8c3   : > { %v7048_v2 = vpop.f32.mrf.mxu1 }
 0x8c4   : > { %v3616_v58 = vsel %vm1403_vm3, %v3298_v61, -inf }
 0x8c5   : > { %3617 = vmax.xlane.f32.xlu0 %v3616_v58  ;;  %v3396_v29 = vpop.f32.mrf.mxu1 }
 0x8c6   : > { %v3397_v37 = vadd.f32 %v9318_v32, %v3396_v29 }
 0x8c7   : > { %v7059_v25 = vpop.f32.mrf.mxu1 }
 0x8c8   : > { %v3625_v28 = vsel %vm1403_vm3, %v3397_v37, -inf }
 0x8c9   : > { %3626 = vmax.xlane.f32.xlu0 %v3625_v28  ;;  %v3399_v14 = vpop.f32.mrf.mxu1 }
 0x8ca   : > { %v3400_v38 = vadd.f32 %v9326_v3, %v3399_v14 }
 0x8cb   : > { %v7060_v9 = vpop.f32.mrf.mxu1 }
 0x8cc   : > { %v3628_v55 = vsel %vm1403_vm3, %v3400_v38, -inf }
 0x8cd   : > { %3629 = vmax.xlane.f32.xlu1 %v3628_v55  ;;  %v3498_v11 = vpop.f32.mrf.mxu1 }
 0x8ce   : > { %v3499_v57 = vadd.f32 %v9318_v32, %v3498_v11 }
 0x8cf   : > { %v7071_v10 = vpop.f32.mrf.mxu1 }
 0x8d0   : > { %v3637_v33 = vsel %vm1403_vm3, %v3499_v57, -inf }
 0x8d1   : > { %3638 = vmax.xlane.f32.xlu0 %v3637_v33  ;;  %v3501_v60 = vpop.f32.mrf.mxu1 }
 0x8d2   : > { %v3502_v62 = vadd.f32 %v9326_v3, %v3501_v60 }
 0x8d3   : > { %v7072_v46 = vpop.f32.mrf.mxu1 }
 0x8d4   : > { %v3640_v7 = vsel %vm1403_vm3, %v3502_v62, -inf }
 0x8d5   : > { %3641 = vmax.xlane.f32.xlu1 %v3640_v7  ;;  %v3600_v48 = vpop.f32.mrf.mxu1 }
 0x8d6   : > { %v3601_v12 = vadd.f32 %v9318_v32, %v3600_v48 }
 0x8d7   : > { %v7083_v30 = vpop.f32.mrf.mxu1 }
 0x8d8   : > { %v3649_v63 = vsel %vm1403_vm3, %v3601_v12, -inf }
 0x8d9   : > { %3650 = vmax.xlane.f32.xlu0 %v3649_v63  ;;  %v3603_v56 = vpop.f32.mrf.mxu1 }
 0x8da   : > { %v9342_v36 = vadd.f32 %v9326_v3, %v3603_v56 }
 0x8db   : > { %v7084_v23 = vpop.f32.mrf.mxu1 }
 0x8dc   : > { %v3652_v34 = vsel %vm1403_vm3, %v9342_v36, -inf }
 0x8dd   : > { %3653 = vmax.xlane.f32.xlu1 %v3652_v34 }
 0x90b   : > { %v9346_v31 = vpop.f32.mrf.mxu0 }
 0x90d   : > { %v9348_v19 = vpop.f32.mrf.mxu0 }
 0x90f   : > { %v9350_v20 = vpop.f32.mrf.mxu0 }
 0x911   : > { %v9352_v50 = vpop.f32.mrf.mxu0 }
 0x912   : > { %10596 = vst [vmem:[#allocation27_spill] sm:$0xff] %v9352_v50 }
 0x914   : > { %v9354_v42 = vpop.f32.mrf.mxu0 }
 0x916   : > { %v9356_v8 = vpop.f32.mrf.mxu0 }
 0x918   : > { %v9358_v6 = vpop.f32.mrf.mxu0 }
 0x91a   : > { %v9360_v18 = vpop.f32.mrf.mxu0 }
 0x91b   : > { %10597 = vst [vmem:[#allocation28_spill] sm:$0xff] %v9360_v18 }
 0x91c   : > { %v9362_v29 = vpop.f32.mrf.mxu0 }
 0x91e   : > { %v9364_v9 = vpop.f32.mrf.mxu0 }
 0x920   : > { %v9366_v33 = vpop.f32.mrf.mxu0 }
 0x94a   : > { %v3615_v21 = vpop.xlane.xlu0 %3614 }
 0x94b   : > { %v3657_v2 = vsub.f32 %v3295_v59, %v3615_v21  ;;  %v9368_v59 = vpop.f32.mrf.mxu0 }
 0x94d   : > { %v3675_v58 = vmul.f32 1.442695, %v3657_v2 }
 0x94e   : > { %v3618_v25 = vpop.xlane.xlu0 %3617 }
 0x94f   : > { %7586 = vpow2.f32 %v3675_v58  ;;  %v3658_v28 = vsub.f32 %v3298_v61, %v3618_v25 }
 0x951   : > { %v3677_v14 = vmul.f32 1.442695, %v3658_v28 }
 0x952   : > { %v3627_v55 = vpop.xlane.xlu0 %3626 }
 0x953   : > { %7588 = vpow2.f32 %v3677_v14  ;;  %v3661_v11 = vsub.f32 %v3397_v37, %v3627_v55 }
 0x955   : > { %v3683_v10 = vmul.f32 1.442695, %v3661_v11 }
 0x956   : > { %v3630_v60 = vpop.xlane.xlu1 %3629 }
 0x957   : > { %7590 = vpow2.f32 %v3683_v10  ;;  %v3662_v46 = vsub.f32 %v3400_v38, %v3630_v60 }
 0x959   : > { %v3685_v7 = vmul.f32 1.442695, %v3662_v46 }
 0x95a   : > { %v3639_v48 = vpop.xlane.xlu0 %3638 }
 0x95b   : > { %7592 = vpow2.f32 %v3685_v7  ;;  %v3665_v30 = vsub.f32 %v3499_v57, %v3639_v48 }
 0x95c   : > { %v9370_v63 = vpop.eup %7586  ;;  %v9372_v61 = vpop.f32.mrf.mxu0 }
 0x95d   : > { %10598 = vst [vmem:[#allocation29_spill] sm:$0xff] %v9372_v61  ;;  %v3691_v56 = vmul.f32 1.442695, %v3665_v30  ;;  %v3709_v37 = vsel %vm1403_vm3, %v9370_v63, 0.0  ;;  %v10602_v61 = vmov 0.0  }
 0x95e   : > { %v9376_v23 = vpop.f32.mrf.mxu0  ;;  %v3642_v34 = vpop.xlane.xlu1 %3641  ;;  %3710 = vadd.xlane.f32.xlu0 %v3709_v37 }
 0x95f   : > { %10599 = vst [vmem:[#allocation30_spill] sm:$0xff] %v9376_v23  ;;  %7594 = vpow2.f32 %v3691_v56  ;;  %v3666_v38 = vsub.f32 %v3502_v62, %v3642_v34 }
 0x960   : > { %v9378_v21 = vpop.eup %7588  ;;  %v9380_v2 = vpop.f32.mrf.mxu0 }
 0x961   : > { %10600 = vst [vmem:[#allocation31_spill] sm:$0xff] %v9380_v2  ;;  %v3693_v58 = vmul.f32 1.442695, %v3666_v38  ;;  %v3712_v57 = vsel %vm1403_vm3, %v9378_v21, 0.0 }
 0x962   : > { %v9384_v25 = vpop.f32.mrf.mxu0  ;;  %3713 = vadd.xlane.f32.xlu1 %v3712_v57  ;;  %v3651_v28 = vpop.xlane.xlu0 %3650 }
 0x963   : > { %10601 = vst [vmem:[#allocation32_spill] sm:$0xff] %v9384_v25  ;;  %7596 = vpow2.f32 %v3693_v58  ;;  %v3669_v14 = vsub.f32 %v3601_v12, %v3651_v28 }
 0x964   : > { %v9386_v55 = vpop.eup %7590  ;;  %v3243_v11 = vpop.f32.mrf.mxu0 }
 0x965   : > { %v3699_v10 = vmul.f32 1.442695, %v3669_v14  ;;  %v9389_v62 = vadd.f32 %v9318_v32, %v3243_v11  ;;  %v3721_v60 = vsel %vm1403_vm3, %v9386_v55, 0.0 }
 0x966   : > { %v7041_v46 = vpop.f32.mrf.mxu0  ;;  %v3654_v7 = vpop.xlane.xlu1 %3653  ;;  %3722 = vadd.xlane.f32.xlu0 %v3721_v60 }
 0x967   : > { %7598 = vpow2.f32 %v3699_v10  ;;  %v3670_v48 = vsub.f32 %v9342_v36, %v3654_v7  ;;  %v3607_v38 = vsel %vm1403_vm3, %v9389_v62, -inf }
 0x968   : > { %v9394_v30 = vpop.eup %7592  ;;  %v3246_v56 = vpop.f32.mrf.mxu0 }
 0x969   : > { %v3701_v12 = vmul.f32 1.442695, %v3670_v48  ;;  %v9397_v37 = vadd.f32 %v9326_v3, %v3246_v56  ;;  %v3724_v34 = vsel %vm1403_vm3, %v9394_v30, 0.0 }
 0x96a   : > { %v7042_v58 = vpop.f32.mrf.mxu0  ;;  %3725 = vadd.xlane.f32.xlu1 %v3724_v34  ;;  %3608 = vmax.xlane.f32.xlu0 %v3607_v38 }
 0x96b   : > { %7600 = vpow2.f32 %v3701_v12  ;;  %v3610_v14 = vsel %vm1403_vm3, %v9397_v37, -inf }
 0x96c   : > { %v9403_v57 = vpop.eup %7594  ;;  %v3345_v36 = vpop.f32.mrf.mxu0 }
 0x96d   : > { %v9406_v28 = vadd.f32 %v9318_v32, %v3345_v36  ;;  %v3733_v11 = vsel %vm1403_vm3, %v9403_v57, 0.0 }
 0x96e   : > { %v7053_v10 = vpop.f32.mrf.mxu0  ;;  %3611 = vmax.xlane.f32.xlu1 %v3610_v14  ;;  %3734 = vadd.xlane.f32.xlu0 %v3733_v11 }
 0x96f   : > { %v3619_v56 = vsel %vm1403_vm3, %v9406_v28, -inf }
 0x970   : > { %v9412_v60 = vpop.eup %7596  ;;  %v3348_v46 = vpop.f32.mrf.mxu0 }
 0x971   : > { %v9415_v7 = vadd.f32 %v9326_v3, %v3348_v46  ;;  %v3736_v48 = vsel %vm1403_vm3, %v9412_v60, 0.0 }
 0x972   : > { %v7054_v12 = vpop.f32.mrf.mxu0  ;;  %3737 = vadd.xlane.f32.xlu1 %v3736_v48  ;;  %3620 = vmax.xlane.f32.xlu0 %v3619_v56 }
 0x973   : > { %v3622_v36 = vsel %vm1403_vm3, %v9415_v7, -inf }
 0x974   : > { %v9421_v34 = vpop.eup %7598  ;;  %v3447_v38 = vpop.f32.mrf.mxu0 }
 0x975   : > { %v9424_v58 = vadd.f32 %v9318_v32, %v3447_v38  ;;  %v3745_v14 = vsel %vm1403_vm3, %v9421_v34, 0.0 }
 0x976   : > { %v7065_v11 = vpop.f32.mrf.mxu0  ;;  %3623 = vmax.xlane.f32.xlu1 %v3622_v36  ;;  %3746 = vadd.xlane.f32.xlu0 %v3745_v14 }
 0x977   : > { %v3631_v12 = vsel %vm1403_vm3, %v9424_v58, -inf }
 0x978   : > { %v9430_v10 = vpop.eup %7600  ;;  %v3450_v46 = vpop.f32.mrf.mxu0 }
 0x979   : > { %v9433_v48 = vadd.f32 %v9326_v3, %v3450_v46  ;;  %v3748_v56 = vsel %vm1403_vm3, %v9430_v10, 0.0 }
 0x97a   : > { %v7066_v38 = vpop.f32.mrf.mxu0  ;;  %3749 = vadd.xlane.f32.xlu1 %v3748_v56  ;;  %3632 = vmax.xlane.f32.xlu0 %v3631_v12 }
 0x97b   : > { %v3634_v36 = vsel %vm1403_vm3, %v9433_v48, -inf }
 0x97c   : > { %v3549_v4 = vpop.f32.mrf.mxu0 }
 0x97d   : > { %v9440_v11 = vadd.f32 %v9318_v32, %v3549_v4 }
 0x97e   : > { %v7077_v14 = vpop.f32.mrf.mxu0  ;;  %3635 = vmax.xlane.f32.xlu1 %v3634_v36 }
 0x97f   : > { %v3643_v46 = vsel %vm1403_vm3, %v9440_v11, -inf }
 0x980   : > { %v3552_v52 = vpop.f32.mrf.mxu0  ;;  %3644 = vmax.xlane.f32.xlu0 %v3643_v46 }
 0x981   : > { %v9453_v4 = vadd.f32 %v9326_v3, %v3552_v52 }
 0x982   : > { %v7078_v18 = vpop.f32.mrf.mxu0 }
 0x983   : > { %v3646_v32 = vsel %vm1403_vm3, %v9453_v4, -inf }
 0x98f   : > { %3838 = vrot.lane.b32.xlu1 %v8465_v45, %s7988_s17 }
 0x993   : > { %3885 = vrot.lane.b32.xlu1 %v8473_v27, %s7988_s17 }
 0x996   : > { %3791 = vrot.lane.b32.xlu0 %v8467_v13, %s7988_s17 }
 0x9b7   : > { %3647 = vmax.xlane.f32.xlu1 %v3646_v32 }
 0x9c8   : > { %3932 = vrot.lane.b32.xlu1 %v8477_v0, %s7988_s17 }
 0x9e7   : > { %v3711_v18 = vpop.xlane.xlu0 %3710 }
 0x9eb   : > { %v3714_v56 = vpop.xlane.xlu1 %3713 }
 0x9ef   : > { %v3723_v12 = vpop.xlane.xlu0 %3722 }
 0x9f3   : > { %v3726_v38 = vpop.xlane.xlu1 %3725  ;;  %v3609_v36 = vpop.xlane.xlu0 %3608 }
 0x9f4   : > { %v3655_v14 = vsub.f32 %v9389_v62, %v3609_v36 }
 0x9f6   : > { %v3671_v46 = vmul.f32 1.442695, %v3655_v14 }
 0x9f7   : > { %v3612_v35 = vpop.xlane.xlu1 %3611  ;;  %v9460_v50 = vpop.xlane.xlu0 %3734 }
 0x9f8   : > { %7602 = vpow2.f32 %v3671_v46  ;;  %v3656_v52 = vsub.f32 %v9397_v37, %v3612_v35 }
 0x9f9   : > { %7604 = vrcp.f32 %v3714_v56 }
 0x9fa   : > { %v3673_v3 = vmul.f32 1.442695, %v3656_v52  ;;  %7606 = vrcp.f32 %v3711_v18 }
 0x9fb   : > { %v9463_v32 = vpop.xlane.xlu1 %3737  ;;  %v3621_v44 = vpop.xlane.xlu0 %3620 }
 0x9fc   : > { %7608 = vpow2.f32 %v3673_v3  ;;  %v3659_v25 = vsub.f32 %v9406_v28, %v3621_v44 }
 0x9fe   : > { %v3679_v53 = vmul.f32 1.442695, %v3659_v25 }
 0x9ff   : > { %v3624_v2 = vpop.xlane.xlu1 %3623  ;;  %v9466_v40 = vpop.xlane.xlu0 %3746 }
 0xa00   : > { %7610 = vpow2.f32 %v3679_v53 }
 0xa03   : > { %v9468_v62 = vpop.xlane.xlu1 %3749  ;;  %v3633_v14 = vpop.xlane.xlu0 %3632 }
 0xa05   : > { %v9470_v36 = vpop.eup %7602 }
 0xa06   : > { %v7605_v35 = vpop.eup %7604  ;;  %v3703_v37 = vsel %vm1403_vm3, %v9470_v36, 0.0 }
 0xa07   : > { %v3636_v18 = vpop.xlane.xlu1 %3635  ;;  %3704 = vadd.xlane.f32.xlu0 %v3703_v37  ;;  %v7607_v56 = vpop.eup %7606  ;;  %v3770_v44 = vmul.f32 %v7605_v35, %v9378_v21 }
 0xa08   : > { %v3769_v28 = vmul.f32 %v7607_v56, %v9370_v63  ;;  %v3660_v63 = vsub.f32 %v9415_v7, %v3624_v2  ;;  %v3664_v35 = vsub.f32 %v9433_v48, %v3636_v18 }
 0xa09   : > { %v9474_v46 = vpop.eup %7608  ;;  %v3645_v25 = vpop.xlane.xlu0 %3644 }
 0xa0a   : > { %v3706_v53 = vsel %vm1403_vm3, %v9474_v46, 0.0  ;;  %v3784_v39 = vpack.c.bf16 %v3770_v44, %v3769_v28  ;;  %v3681_v21 = vmul.f32 1.442695, %v3660_v63  ;;  %v3689_v56 = vmul.f32 1.442695, %v3664_v35 }
 0xa0b   : > { %3707 = vadd.xlane.f32.xlu1 %v3706_v53  ;;  %v3839_v52 = vpop.permute.xlu1 %3838  ;;  %v3667_v44 = vsub.f32 %v9440_v11, %v3645_v25 }
 0xa0c   : > { %7092 = vmatpush3.bf16.msra.mxu1 %v3839_v52  ;;  %7612 = vpow2.f32 %v3681_v21 }
 0xa0d   : > { %v9480_v3 = vpop.eup %7610  ;;  %v3792_v23 = vpop.permute.xlu0 %3791  ;;  %7103 = vmatprep.subr.bf16.mxu1 %v10602_v61  ;;  %7614 = vrcp.f32 %v3726_v38  ;;  %v3695_v53 = vmul.f32 1.442695, %v3667_v44 }
 0xa0e   : > { %7086 = vmatpush3.bf16.msra.mxu0 %v3792_v23  ;;  %v3715_v37 = vsel %vm1403_vm3, %v9480_v3, 0.0  ;;  %v3663_v23 = vsub.f32 %v9424_v58, %v3633_v14 }
 0xa0f   : > { %7094 = vmatmul.mubr.msk.bf16.vlgmr.msra.gmra.mxu1 %vm1403_vm3, %v3784_v39  ;;  %3716 = vadd.xlane.f32.xlu0 %v3715_v37  ;;  %v9499_v52 = vpop.permute.xlu1 %3885 }
 0xa10   : > { %7105 = vmatprep.mubr.msk.bf16.mxu1 %vm7980_vm1, %v10602_v61  ;;  %7097 = vmatprep.subr.bf16.mxu0 %v10602_v61  ;;  %v3687_v39 = vmul.f32 1.442695, %v3663_v23 }
 0xa12   : > { %7616 = vpow2.f32 %v3687_v39 }
 0xa13   : > { %7618 = vpow2.f32 %v3689_v56 }
 0xa14   : > { %7620 = vrcp.f32 %v3723_v12 }
 0xa15   : > { %7622 = vpow2.f32 %v3695_v53 }
 0xa19   : > { %v9497_v28 = vpop.eup %7612 }
 0xa1a   : > { %v7615_v2 = vpop.eup %7614  ;;  %v3718_v58 = vsel %vm1403_vm3, %v9497_v28, 0.0 }
 0xa1b   : > { %v3774_v12 = vmul.f32 %v7615_v2, %v9394_v30 }
 0xa1c   : > { %4026 = vrot.lane.b32.xlu1 %v8483_v41, %s7988_s17 }
 0xa1f   : > { %v9501_v7 = vpop.eup %7616 }
 0xa20   : > { %v9505_v48 = vpop.eup %7618  ;;  %v3727_v37 = vsel %vm1403_vm3, %v9501_v7, 0.0 }
 0xa21   : > { %v7621_v38 = vpop.eup %7620  ;;  %v3730_v25 = vsel %vm1403_vm3, %v9505_v48, 0.0 }
 0xa22   : > { %v9513_v63 = vpop.eup %7622  ;;  %v3773_v23 = vmul.f32 %v7621_v38, %v9386_v55 }
 0xa23   : > { %v3739_v30 = vsel %vm1403_vm3, %v9513_v63, 0.0 }
 0xa24   : > { %v3786_v35 = vpack.c.bf16 %v3774_v12, %v3773_v23 }
 0xa25   : > { %3979 = vrot.lane.b32.xlu0 %v8481_v1, %s7988_s17 }
 0xa40   : > { %3719 = vadd.xlane.f32.xlu1 %v3718_v58  ;;  %v3648_v11 = vpop.xlane.xlu1 %3647 }
 0xa41   : > { %v3668_v14 = vsub.f32 %v9453_v4, %v3648_v11 }
 0xa43   : > { %v3697_v18 = vmul.f32 1.442695, %v3668_v14 }
 0xa44   : > { %3731 = vadd.xlane.f32.xlu1 %v3730_v25  ;;  %v3933_v21 = vpop.permute.xlu1 %3932  ;;  %3728 = vadd.xlane.f32.xlu0 %v3727_v37 }
 0xa45   : > { %7624 = vpow2.f32 %v3697_v18  ;;  %7104 = vmatpush3.bf16.msra.mxu1 %v3933_v21 }
 0xa46   : > { %7115 = vmatprep.subr.bf16.mxu1 %v10602_v61  ;;  %7626 = vrcp.f32 %v9463_v32 }
 0xa47   : > { %7628 = vrcp.f32 %v9460_v50 }
 0xa48   : > { %7106 = vmatmul.mubr.msk.bf16.vlgmr.msra.gmra.mxu1 %vm1403_vm3, %v3786_v35  ;;  %3740 = vadd.xlane.f32.xlu0 %v3739_v30 }
 0xa49   : > { %7117 = vmatprep.mubr.msk.bf16.mxu1 %vm7980_vm1, %v10602_v61 }
 0xa52   : > { %v9522_v4 = vpop.eup %7624 }
 0xa53   : > { %v3742_v55 = vsel %vm1403_vm3, %v9522_v4, 0.0  ;;  %v7627_v56 = vpop.eup %7626 }
 0xa54   : > { %3743 = vadd.xlane.f32.xlu1 %v3742_v55  ;;  %v7629_v53 = vpop.eup %7628  ;;  %v3778_v2 = vmul.f32 %v7627_v56, %v9412_v60 }
 0xa55   : > { %v3777_v58 = vmul.f32 %v7629_v53, %v9403_v57 }
 0xa57   : > { %v3788_v38 = vpack.c.bf16 %v3778_v2, %v3777_v58 }
 0xa5e   : > { %4073 = vrot.lane.b32.xlu0 %v8491_v51, %s7988_s17 }
 0xa62   : > { %4318 = vrot.lane.b32.xlu0 %v8467_v13, %s7989_s30 }
 0xa65   : > { %4120 = vrot.lane.b32.xlu1 %v8489_v49, %s7988_s17  ;;  %s6266_s17 = sshll.u32 %s10355_s29, 4  ;;  %s10461_s17 = int_to_ptr.vmem [resolvable:$true] %s6266_s17 }
 0xa66   : > { %4369 = vrot.lane.b32.xlu0 %v8465_v45, %s7989_s30 }
 0xa69   : > { %4316 = vrot.lane.b32.xlu1 %v8467_v13, %s7990_s26 }
 0xa6a   : > { %4420 = vrot.lane.b32.xlu0 %v8473_v27, %s7989_s30 }
 0xa6d   : > { %4367 = vrot.lane.b32.xlu1 %v8465_v45, %s7990_s26 }
 0xa6e   : > { %4471 = vrot.lane.b32.xlu0 %v8477_v0, %s7989_s30 }
 0xa71   : > { %4418 = vrot.lane.b32.xlu1 %v8473_v27, %s7990_s26 }
 0xa72   : > { %4469 = vrot.lane.b32.xlu0 %v8477_v0, %s7990_s26 }
 0xa75   : > { %4522 = vrot.lane.b32.xlu1 %v8481_v1, %s7989_s30 }
 0xa76   : > { %4520 = vrot.lane.b32.xlu0 %v8481_v1, %s7990_s26 }
 0xa79   : > { %4573 = vrot.lane.b32.xlu1 %v8483_v41, %s7989_s30 }
 0xa7a   : > { %4571 = vrot.lane.b32.xlu0 %v8483_v41, %s7990_s26 }
 0xa7d   : > { %4624 = vrot.lane.b32.xlu1 %v8491_v51, %s7989_s30 }
 0xa7e   : > { %4622 = vrot.lane.b32.xlu0 %v8491_v51, %s7990_s26 }
 0xa81   : > { %4675 = vrot.lane.b32.xlu1 %v8489_v49, %s7989_s30  ;;  %s10615_s30 = sld [smem:[#allocation19_spill]] }
 0xa85   : > { %4673 = vrot.lane.b32.xlu1 %v8489_v49, %s7990_s26  ;;  %s7992_s26 = smov [#allocation9]  }
 0xa86   : > { %s7878_s0 = sshll.u32 %s7992_s26, 4  ;;  %s7879_s0 = int_to_ptr.vmem [resolvable:$false] %s7878_s0 }
 0xa87   : > { %p10618_p4 = scmp.ne.s32.totalorder %s10615_s30, 0  ;;  %s7880_s1 = scalar_lea.vmem %s7879_s0, 4096 }
 0xa90   : > { %v3705_v39 = vpop.xlane.xlu0 %3704 }
 0xa91   : > { %7630 = vrcp.f32 %v3705_v39 }
 0xa94   : > { %v3708_v44 = vpop.xlane.xlu1 %3707 }
 0xa95   : > { %7632 = vrcp.f32 %v3708_v44 }
 0xa98   : > { %v4027_v11 = vpop.permute.xlu1 %4026  ;;  %v3717_v57 = vpop.xlane.xlu0 %3716 }
 0xa99   : > { %7116 = vmatpush3.bf16.msra.mxu1 %v4027_v11  ;;  %7634 = vrcp.f32 %v3717_v57 }
 0xa9a   : > { %7127 = vmatprep.subr.bf16.mxu1 %v10602_v61 }
 0xa9c   : > { %7118 = vmatmul.mubr.msk.bf16.vlgmr.msra.gmra.mxu1 %vm1403_vm3, %v3788_v38  ;;  %v3980_v60 = vpop.permute.xlu0 %3979 }
 0xa9d   : > { %7129 = vmatprep.mubr.msk.bf16.mxu1 %vm7980_vm1, %v10602_v61 }
 0xa9e   : > { %v7631_v50 = vpop.eup %7630 }
 0xa9f   : > { %v3767_v14 = vmul.f32 %v7631_v50, %v9470_v36 }
 0xaa2   : > { %v7633_v32 = vpop.eup %7632 }
 0xaa3   : > { %v3768_v12 = vmul.f32 %v7633_v32, %v9474_v46 }
 0xaa5   : > { %v3783_v18 = vpack.c.bf16 %v3768_v12, %v3767_v14 }
 0xaa6   : > { %v7635_v35 = vpop.eup %7634 }
 0xaa7   : > { %7088 = vmatmul.mubr.msk.bf16.vlgmr.msra.gmra.mxu0 %vm1403_vm3, %v3783_v18 }
 0xaa8   : > { %7098 = vmatpush3.bf16.msra.mxu0 %v9499_v52  ;;  %7099 = vmatprep.mubr.msk.bf16.mxu0 %vm7980_vm1, %v10602_v61 }
 0xaa9   : > { %7109 = vmatprep.subr.bf16.mxu0 %v10602_v61 }
 0xac9   : > { %v3720_v25 = vpop.xlane.xlu1 %3719 }
 0xaca   : > { %7636 = vrcp.f32 %v3720_v25 }
 0xacb   : > { %7638 = vrcp.f32 %v9468_v62  ;;  %v3771_v62 = vmul.f32 %v7635_v35, %v9480_v3 }
 0xacd   : > { %v3732_v36 = vpop.xlane.xlu1 %3731  ;;  %v3729_v37 = vpop.xlane.xlu0 %3728 }
 0xace   : > { %7640 = vrcp.f32 %v3732_v36 }
 0xacf   : > { %7642 = vrcp.f32 %v3729_v37  ;;  %v9562_v46 = vpop.f32.mrf.mxu1 }
 0xad0   : > { %7644 = vrcp.f32 %v9466_v40 }
 0xad1   : > { %v7095_v52 = vpop.f32.mrf.mxu1  ;;  %v3741_v55 = vpop.xlane.xlu0 %3740 }
 0xad2   : > { %7646 = vrcp.f32 %v3741_v55 }
 0xad3   : > { %v9565_v23 = vpop.f32.mrf.mxu1 }
 0xad4   : > { %v4168_v21 = vpack.c.bf16 %v9565_v23, %v9562_v46  ;;  %v6588_v46 = vld [vmem:[%s10538_s5 + $0x18] sm:$0xff]  }
 0xad5   : > { %v7096_v30 = vpop.f32.mrf.mxu1  ;;  %v4074_v40 = vpop.permute.xlu0 %4073 }
 0xad7   : > { %v7637_v39 = vpop.eup %7636 }
 0xad8   : > { %v3772_v56 = vmul.f32 %v7637_v39, %v9497_v28  ;;  %v7639_v44 = vpop.eup %7638 }
 0xad9   : > { %v3782_v50 = vmul.f32 %v7639_v44, %v9430_v10  ;;  %v4319_v12 = vpop.permute.xlu0 %4318  ;;  %v4175_v10 = vld [vmem:[%s10539_s6 + $0x8] sm:$0xf] }
 0xada   : > { %v3785_v53 = vpack.c.bf16 %v3772_v56, %v3771_v62  ;;  %v4201_v55 = vsel %vm2974_vm4, %v4175_v10, 0 }
 0xadb   : > { %v7641_v2 = vpop.eup %7640 }
 0xadc   : > { %v7643_v58 = vpop.eup %7642  ;;  %7100 = vmatmul.mubr.msk.bf16.vlgmr.msra.gmra.mxu0 %vm1403_vm3, %v3785_v53  ;;  %v3776_v28 = vmul.f32 %v7641_v2, %v9505_v48 }
 0xadd   : > { %7110 = vmatpush3.bf16.msra.mxu0 %v3980_v60  ;;  %v3744_v11 = vpop.xlane.xlu1 %3743  ;;  %7111 = vmatprep.mubr.msk.bf16.mxu0 %vm7980_vm1, %v10602_v61  ;;  %v7645_v38 = vpop.eup %7644  ;;  %v3775_v3 = vmul.f32 %v7643_v58, %v9501_v7  ;;  %v4324_v60 = vsel %vm1005_vm2, %v4319_v12, 0 }
 0xade   : > { %7648 = vrcp.f32 %v3744_v11  ;;  %7121 = vmatprep.subr.bf16.mxu0 %v10602_v61  ;;  %v3781_v32 = vmul.f32 %v7645_v38, %v9421_v34  ;;  %v4370_v48 = vpop.permute.xlu0 %4369 }
 0xadf   : > { %v3787_v18 = vpack.c.bf16 %v3776_v28, %v3775_v3  ;;  %v7647_v34 = vpop.eup %7646  ;;  %v4375_v35 = vsel %vm1005_vm2, %v4370_v48, 0 }
 0xae0   : > { %v3790_v57 = vpack.c.bf16 %v3782_v50, %v3781_v32  ;;  %v3779_v37 = vmul.f32 %v7647_v34, %v9513_v63 }
 0xae1   : > { %v4121_v14 = vpop.permute.xlu1 %4120 }
 0xae2   : > { %7128 = vmatpush3.bf16.msra.mxu1 %v4121_v14  ;;  %v4421_v39 = vpop.permute.xlu0 %4420 }
 0xae3   : > { %7151 = vmatprep.subr.bf16.mxu1 %v10602_v61 }
 0xae4   : > { %7112 = vmatmul.mubr.msk.bf16.vlgmr.msra.gmra.mxu0 %vm1403_vm3, %v3787_v18 }
 0xae5   : > { %7122 = vmatpush3.bf16.msra.mxu0 %v4074_v40  ;;  %7130 = vmatmul.mubr.msk.bf16.vlgmr.msra.gmra.mxu1 %vm1403_vm3, %v3790_v57  ;;  %v4317_v7 = vpop.permute.xlu1 %4316 }
 0xae6   : > { %7152 = vmatpush3.bf16.xpose.msra.mxu1 %v4324_v60  ;;  %7153 = vmatprep.mubr.msk.bf16.mxu1 %vm7980_vm1, %v10602_v61  ;;  %v4472_v56 = vpop.permute.xlu0 %4471 }
 0xae7   : > { %7157 = vmatprep.subr.bf16.mxu1 %v10602_v61  ;;  %7123 = vmatprep.mubr.msk.bf16.mxu0 %vm7980_vm1, %v10602_v61  ;;  %v4477_v44 = vsel %vm1005_vm2, %v4472_v56, 0 }
 0xae8   : > { %7323 = vmatprep.subr.msk.bf16.mxu0 %vm2974_vm4, %v4175_v10 }
 0xae9   : > { %v4368_v36 = vpop.permute.xlu1 %4367 }
 0xaea   : > { %v4470_v2 = vpop.permute.xlu0 %4469 }
 0xaeb   : > { %v7649_v25 = vpop.eup %7648 }
 0xaec   : > { %v3780_v52 = vmul.f32 %v7649_v25, %v9522_v4  ;;  %v4426_v4 = vsel %vm1005_vm2, %v4421_v39, 0 }
 0xaed   : > { %7154 = vmatmul.mubr.msk.bf16.vlgmr.msra.gmra.mxu1 %vm1005_vm2, %v4317_v7  ;;  %v4419_v63 = vpop.permute.xlu1 %4418 }
 0xaee   : > { %7158 = vmatpush3.bf16.xpose.msra.mxu1 %v4375_v35  ;;  %v3789_v30 = vpack.c.bf16 %v3780_v52, %v3779_v37  ;;  %7159 = vmatprep.mubr.msk.bf16.mxu1 %vm7980_vm1, %v10602_v61  ;;  %v9616_v11 = vpop.permute.xlu0 %4520 }
 0xaef   : > { %7163 = vmatprep.subr.bf16.mxu1 %v10602_v61 }
 0xaf0   : > { %7124 = vmatmul.mubr.msk.bf16.vlgmr.msra.gmra.mxu0 %vm1403_vm3, %v3789_v30 }
 0xaf1   : > { %7134 = vmatpush3.bf16.msra.mxu0 %v4201_v55  ;;  %v4523_v62 = vpop.permute.xlu1 %4522 }
 0xaf2   : > { %7175 = vmatprep.subr.bf16.mxu0 %v10602_v61  ;;  %v4572_v50 = vpop.permute.xlu0 %4571  ;;  %v4528_v30 = vsel %vm1005_vm2, %v4523_v62, 0 }
 0xaf5   : > { %7160 = vmatmul.mubr.msk.bf16.vlgmr.msra.gmra.mxu1 %vm1005_vm2, %v4368_v36  ;;  %v4574_v53 = vpop.permute.xlu1 %4573 }
 0xaf6   : > { %7164 = vmatpush3.bf16.xpose.msra.mxu1 %v4426_v4  ;;  %7165 = vmatprep.mubr.msk.bf16.mxu1 %vm7980_vm1, %v10602_v61  ;;  %v4579_v40 = vsel %vm1005_vm2, %v4574_v53, 0 }
 0xaf7   : > { %7169 = vmatprep.subr.bf16.mxu1 %v10602_v61 }
 0xaf9   : > { %v9612_v58 = vpop.permute.xlu1 %4624 }
 0xafd   : > { %7166 = vmatmul.mubr.msk.bf16.vlgmr.msra.gmra.mxu1 %vm1005_vm2, %v4419_v63  ;;  %v4676_v3 = vpop.permute.xlu1 %4675 }
 0xafe   : > { %7170 = vmatpush3.bf16.xpose.msra.mxu1 %v4477_v44  ;;  %7171 = vmatprep.mubr.msk.bf16.mxu1 %vm7980_vm1, %v10602_v61  ;;  %v4681_v14 = vsel %vm1005_vm2, %v4676_v3, 0  ;;  %v9641_v3 = vunpack.c.l.bf16 %v6588_v46 }
 0xaff   : > { %7181 = vmatprep.subr.bf16.mxu1 %v10602_v61 }
 0xb01   : > { %v4674_v57 = vpop.permute.xlu1 %4673 }
 0xb05   : > { %7172 = vmatmul.mubr.msk.bf16.vlgmr.msra.gmra.mxu1 %vm1005_vm2, %v4470_v2 }
 0xb06   : > { %7182 = vmatpush3.bf16.xpose.msra.mxu1 %v4579_v40  ;;  %7183 = vmatprep.mubr.msk.bf16.mxu1 %vm7980_vm1, %v10602_v61 }
 0xb07   : > { %7193 = vmatprep.subr.bf16.mxu1 %v10602_v61 }
 0xb08   : > { %v3972_v38 = vpop.f32.mrf.mxu1 }
 0xb0a   : > { %v7107_v28 = vpop.f32.mrf.mxu1 }
 0xb0c   : > { %v3975_v32 = vpop.f32.mrf.mxu1 }
 0xb0d   : > { %v4170_v12 = vpack.c.bf16 %v3975_v32, %v3972_v38  ;;  %7184 = vmatmul.mubr.msk.bf16.vlgmr.msra.gmra.mxu1 %vm1005_vm2, %v4572_v50 }
 0xb0e   : > { %v7108_v18 = vpop.f32.mrf.mxu1  ;;  %7194 = vmatpush3.bf16.xpose.msra.mxu1 %v4681_v14  ;;  %7195 = vmatprep.mubr.msk.bf16.mxu1 %vm7980_vm1, %v10602_v61  ;;  %v9648_v14 = vunpack.c.h.bf16 %v6588_v46  ;;  %v4630_v46 = vsel %vm1005_vm2, %v9612_v58, 0 }
 0xb0f   : > { %7205 = vmatprep.subr.bf16.mxu1 %v10602_v61 }
 0xb15   : > { %7196 = vmatmul.mubr.msk.bf16.vlgmr.msra.gmra.mxu1 %vm1005_vm2, %v4674_v57 }
 0xb16   : > { %7207 = vmatprep.mubr.msk.bf16.mxu1 %vm7980_vm1, %v10602_v61 }
 0xb5c   : > { %v4066_v60 = vpop.f32.mrf.mxu1 }
 0xb5e   : > { %v7119_v7 = vpop.f32.mrf.mxu1 }
 0xb60   : > { %v4069_v34 = vpop.f32.mrf.mxu1 }
 0xb61   : > { %v4172_v10 = vpack.c.bf16 %v4069_v34, %v4066_v60 }
 0xb62   : > { %v7120_v48 = vpop.f32.mrf.mxu1 }
 0xb67   : > { %v3831_v25 = vpop.f32.mrf.mxu0 }
 0xb69   : > { %v7089_v36 = vpop.f32.mrf.mxu0 }
 0xb6b   : > { %v3834_v37 = vpop.f32.mrf.mxu0 }
 0xb6c   : > { %v4167_v52 = vpack.c.bf16 %v3834_v37, %v3831_v25 }
 0xb6d   : > { %v7090_v35 = vpop.f32.mrf.mxu0 }
 0xb6e   : > { %7135 = vmatprep.mubr.msk.bf16.mxu0 %vm1005_vm2, %v4167_v52 }
 0xb6f   : > { %7136 = vmatmul.mubr.msk.bf16.vlgmr.msra.gmra.mxu0 %vm1005_vm2, %v4168_v21 }
 0xb70   : > { %7176 = vmatpush3.bf16.xpose.msra.mxu0 %v4528_v30 }
 0xb71   : > { %7187 = vmatprep.subr.bf16.mxu0 %v10602_v61 }
 0xb9c   : > { %v3925_v55 = vpop.f32.mrf.mxu0 }
 0xb9e   : > { %v7101_v39 = vpop.f32.mrf.mxu0 }
 0xba0   : > { %v3928_v63 = vpop.f32.mrf.mxu0 }
 0xba1   : > { %v4169_v4 = vpack.c.bf16 %v3928_v63, %v3925_v55 }
 0xba2   : > { %v7102_v56 = vpop.f32.mrf.mxu0 }
 0xba3   : > { %7139 = vmatprep.mubr.msk.bf16.mxu0 %vm1005_vm2, %v4169_v4 }
 0xba4   : > { %v4019_v44 = vpop.f32.mrf.mxu0  ;;  %7140 = vmatmul.mubr.msk.bf16.gmra.mxu0 %vm1005_vm2, %v4170_v12 }
 0xba5   : > { %v4160_v53 = vpop.f32.mrf.mxu1 }
 0xba6   : > { %v7113_v62 = vpop.f32.mrf.mxu0 }
 0xba7   : > { %v7131_v2 = vpop.f32.mrf.mxu1 }
 0xba8   : > { %v4022_v23 = vpop.f32.mrf.mxu0 }
 0xba9   : > { %v4171_v21 = vpack.c.bf16 %v4022_v23, %v4019_v44  ;;  %v4163_v40 = vpop.f32.mrf.mxu1 }
 0xbaa   : > { %v7114_v38 = vpop.f32.mrf.mxu0  ;;  %v4174_v52 = vpack.c.bf16 %v4163_v40, %v4160_v53 }
 0xbab   : > { %v7132_v28 = vpop.f32.mrf.mxu1  ;;  %7143 = vmatprep.mubr.msk.bf16.mxu0 %vm1005_vm2, %v4171_v21 }
 0xbac   : > { %7144 = vmatmul.mubr.msk.bf16.gmra.mxu0 %vm1005_vm2, %v4172_v10 }
 0xbad   : > { %v4360_v50 = vpop.f32.mrf.mxu1 }
 0xbae   : > { %v9646_v32 = vadd.f32 %v9641_v3, %v4360_v50  ;;  %v4623_v50 = vpop.permute.xlu0 %4622 }
 0xbaf   : > { %v7155_v12 = vpop.f32.mrf.mxu1 }
 0xbb0   : > { %v4113_v18 = vpop.f32.mrf.mxu0  ;;  %v4724_v57 = vsel %vm1403_vm3, %v9646_v32, -inf }
 0xbb1   : > { %4725 = vmax.xlane.f32.xlu0 %v4724_v57  ;;  %v4363_v60 = vpop.f32.mrf.mxu1 }
 0xbb2   : > { %v9653_v7 = vadd.f32 %v9648_v14, %v4363_v60  ;;  %v7125_v34 = vpop.f32.mrf.mxu0 }
 0xbb3   : > { %v7156_v48 = vpop.f32.mrf.mxu1 }
 0xbb4   : > { %v4116_v25 = vpop.f32.mrf.mxu0  ;;  %v4727_v10 = vsel %vm1403_vm3, %v9653_v7, -inf }
 0xbb5   : > { %v4173_v36 = vpack.c.bf16 %v4116_v25, %v4113_v18  ;;  %4728 = vmax.xlane.f32.xlu1 %v4727_v10  ;;  %v4411_v37 = vpop.f32.mrf.mxu1 }
 0xbb6   : > { %v9658_v35 = vadd.f32 %v9641_v3, %v4411_v37  ;;  %v7126_v30 = vpop.f32.mrf.mxu0 }
 0xbb7   : > { %7147 = vmatprep.mubr.msk.bf16.mxu0 %vm1005_vm2, %v4173_v36  ;;  %v7161_v55 = vpop.f32.mrf.mxu1 }
 0xbb8   : > { %7148 = vmatmul.mubr.msk.bf16.gmra.mxu0 %vm1005_vm2, %v4174_v52  ;;  %v4730_v39 = vsel %vm1403_vm3, %v9658_v35, -inf }
 0xbb9   : > { %4731 = vmax.xlane.f32.xlu0 %v4730_v39  ;;  %v4414_v63 = vpop.f32.mrf.mxu1  ;;  %7177 = vmatprep.mubr.msk.bf16.mxu0 %vm7980_vm1, %v10602_v61 }
 0xbba   : > { %v9667_v4 = vadd.f32 %v9648_v14, %v4414_v63 }
 0xbbb   : > { %v7162_v56 = vpop.f32.mrf.mxu1 }
 0xbbc   : > { %v4733_v44 = vsel %vm1403_vm3, %v9667_v4, -inf }
 0xbbd   : > { %4734 = vmax.xlane.f32.xlu0 %v4733_v44  ;;  %v4462_v53 = vpop.f32.mrf.mxu1 }
 0xbbe   : > { %v9672_v62 = vadd.f32 %v9641_v3, %v4462_v53 }
 0xbbf   : > { %v7167_v2 = vpop.f32.mrf.mxu1 }
 0xbc0   : > { %7178 = vmatmul.mubr.msk.bf16.vlgmr.msra.gmra.mxu0 %vm1005_vm2, %v9616_v11  ;;  %v4736_v23 = vsel %vm1403_vm3, %v9672_v62, -inf }
 0xbc1   : > { %7188 = vmatpush3.bf16.xpose.msra.mxu0 %v4630_v46  ;;  %4737 = vmax.xlane.f32.xlu0 %v4736_v23  ;;  %v4465_v21 = vpop.f32.mrf.mxu1  ;;  %v3145_v23 = vadd.f32 %v9262_v16, %v9346_v31  ;;  %v3161_v16 = vadd.f32 %v9276_v47, %v9354_v42  ;;  %v3177_v47 = vadd.f32 %v9291_v15, %v9362_v29 }
 0xbc2   : > { %v9681_v40 = vadd.f32 %v9648_v14, %v4465_v21  ;;  %7189 = vmatprep.mubr.msk.bf16.mxu0 %vm7980_vm1, %v10602_v61  ;;  %7199 = vmatprep.subr.bf16.mxu0 %v10602_v61 }
 0xbc3   : > { %v7168_v38 = vpop.f32.mrf.mxu1 }
 0xbc4   : > { %v4739_v58 = vsel %vm1403_vm3, %v9681_v40, -inf  ;;  %v3137_v38 = vadd.f32 %v9266_v17, %v9348_v19  ;;  %v3153_v17 = vadd.f32 %v9281_v43, %v9356_v8  ;;  %v3169_v43 = vadd.f32 %v9296_v54, %v9364_v9 }
 0xbc5   : > { %4740 = vmax.xlane.f32.xlu1 %v4739_v58  ;;  %v4513_v11 = vpop.f32.mrf.mxu1 }
 0xbc6   : > { %v9689_v28 = vadd.f32 %v9641_v3, %v4513_v11 }
 0xbc7   : > { %v7173_v12 = vpop.f32.mrf.mxu1 }
 0xbc8   : > { %7190 = vmatmul.mubr.msk.bf16.vlgmr.msra.gmra.mxu0 %vm1005_vm2, %v4623_v50  ;;  %v4742_v18 = vsel %vm1403_vm3, %v9689_v28, -inf  ;;  %v3148_v50 = vadd.f32 %v9268_v24, %v9350_v20  ;;  %v3164_v24 = vadd.f32 %v9283_v5, %v9358_v6  ;;  %v3180_v5 = vadd.f32 %v9298_v22, %v9366_v33  ;;  %v10604_v22 = vld [vmem:[#allocation23_spill] sm:$0xff] }
 0xbc9   : > { %4743 = vmax.xlane.f32.xlu0 %v4742_v18  ;;  %v4516_v57 = vpop.f32.mrf.mxu1  ;;  %7201 = vmatprep.mubr.msk.bf16.mxu0 %vm7980_vm1, %v10602_v61 }
 0xbca   : > { %v9697_v60 = vadd.f32 %v9648_v14, %v4516_v57 }
 0xbcb   : > { %v7174_v34 = vpop.f32.mrf.mxu1 }
 0xbcc   : > { %v4745_v48 = vsel %vm1403_vm3, %v9697_v60, -inf }
 0xbcd   : > { %4746 = vmax.xlane.f32.xlu1 %v4745_v48  ;;  %v4615_v25 = vpop.f32.mrf.mxu1 }
 0xbce   : > { %v9702_v10 = vadd.f32 %v9641_v3, %v4615_v25 }
 0xbcf   : > { %v7185_v36 = vpop.f32.mrf.mxu1 }
 0xbd0   : > { %v4754_v37 = vsel %vm1403_vm3, %v9702_v10, -inf }
 0xbd1   : > { %4755 = vmax.xlane.f32.xlu0 %v4754_v37  ;;  %v4618_v52 = vpop.f32.mrf.mxu1 }
 0xbd2   : > { %v9707_v30 = vadd.f32 %v9648_v14, %v4618_v52 }
 0xbd3   : > { %v7186_v55 = vpop.f32.mrf.mxu1 }
 0xbd4   : > { %v4757_v39 = vsel %vm1403_vm3, %v9707_v30, -inf }
 0xbd5   : > { %4758 = vmax.xlane.f32.xlu1 %v4757_v39  ;;  %v9711_v63 = vpop.f32.mrf.mxu1 }
 0xbd7   : > { %v7197_v56 = vpop.f32.mrf.mxu1 }
 0xbd9   : > { %v4720_v44 = vpop.f32.mrf.mxu1 }
 0xbda   : > { %v9714_v53 = vadd.f32 %v9648_v14, %v4720_v44 }
 0xbdb   : > { %v7198_v2 = vpop.f32.mrf.mxu1 }
 0xbdc   : > { %v4769_v46 = vsel %vm1403_vm3, %v9714_v53, -inf  ;;  %v3172_v2 = vadd.f32 %v9300_v26, %v9368_v59  ;;  %v10606_v26 = vld [vmem:[#allocation24_spill] sm:$0xff] }
 0xbdd   : > { %4770 = vmax.xlane.f32.xlu1 %v4769_v46 }
 0xc2f   : > { %v7137_v21 = vpop.f32.mrf.mxu0 }
 0xc30   : > { %v9722_v58 = vadd.f32 %v7137_v21, %v3145_v23 }
 0xc31   : > { %v4237_v11 = vpop.f32.mrf.mxu0 }
 0xc32   : > { %v9726_v12 = vadd.f32 %v4237_v11, %v3137_v38  ;;  %v10603_v38 = vld [vmem:[#allocation29_spill] sm:$0xff] }
 0xc33   : > { %v7138_v18 = vpop.f32.mrf.mxu0  ;;  %v3193_v33 = vadd.f32 %v10604_v22, %v10603_v38  ;;  %v9789_v38 = vadd.f32 %v9641_v3, %v9711_v63 }
 0xc34   : > { %v9728_v57 = vadd.f32 %v7138_v18, %v3148_v50 }
 0xc35   : > { %v9730_v34 = vpop.f32.mrf.mxu0 }
 0xc3a   : > { %v4726_v37 = vpop.xlane.xlu0 %4725 }
 0xc3b   : > { %v4772_v23 = vsub.f32 %v9646_v32, %v4726_v37  ;;  %v10608_v32 = vld [vmem:[#allocation25_spill] sm:$0xff] }
 0xc3e   : > { %v4729_v6 = vpop.xlane.xlu1 %4728 }
 0xc3f   : > { %v4773_v15 = vsub.f32 %v9653_v7, %v4729_v6  ;;  %v4788_v7 = vmul.f32 1.442695, %v4772_v23 }
 0xc41   : > { %v4790_v21 = vmul.f32 1.442695, %v4773_v15 }
 0xc42   : > { %v4732_v55 = vpop.xlane.xlu0 %4731 }
 0xc43   : > { %7650 = vpow2.f32 %v4790_v21 }
 0xc44   : > { %7652 = vpow2.f32 %v4788_v7 }
 0xc46   : > { %v4735_v9 = vpop.xlane.xlu0 %4734 }
 0xc47   : > { %v4775_v11 = vsub.f32 %v9667_v4, %v4735_v9 }
 0xc49   : > { %v4794_v37 = vmul.f32 1.442695, %v4775_v11 }
 0xc4b   : > { %7654 = vpow2.f32 %v4794_v37 }
 0xc4e   : > { %v4741_v50 = vpop.xlane.xlu1 %4740 }
 0xc56   : > { %v4747_v23 = vpop.xlane.xlu1 %4746 }
 0xc64   : > { %v7141_v31 = vpop.f32.mrf.mxu0 }
 0xc65   : > { %v9736_v19 = vadd.f32 %v7141_v31, %v3161_v16  ;;  %v10605_v16 = vld [vmem:[#allocation30_spill] sm:$0xff] }
 0xc66   : > { %v4253_v48 = vpop.f32.mrf.mxu0  ;;  %v3185_v59 = vadd.f32 %v10606_v26, %v10605_v16  ;;  %v4759_v16 = vpop.xlane.xlu1 %4758 }
 0xc67   : > { %v9740_v20 = vadd.f32 %v4253_v48, %v3153_v17  ;;  %v4774_v17 = vsub.f32 %v9658_v35, %v4732_v55 }
 0xc68   : > { %v7142_v25 = vpop.f32.mrf.mxu0 }
 0xc69   : > { %v9742_v36 = vadd.f32 %v7142_v25, %v3164_v24  ;;  %v10607_v24 = vld [vmem:[#allocation31_spill] sm:$0xff] }
 0xc6a   : > { %v9744_v52 = vpop.f32.mrf.mxu0  ;;  %v3196_v25 = vadd.f32 %v10608_v32, %v10607_v24  ;;  %v4783_v24 = vsub.f32 %v9707_v30, %v4759_v16 }
 0xc6c   : > { %v7145_v42 = vpop.f32.mrf.mxu0  ;;  %v4810_v30 = vmul.f32 1.442695, %v4783_v24 }
 0xc6d   : > { %v9750_v8 = vadd.f32 %v7145_v42, %v3177_v47  ;;  %v4738_v47 = vpop.xlane.xlu0 %4737  ;;  %v4777_v42 = vsub.f32 %v9681_v40, %v4741_v50 }
 0xc6e   : > { %v4269_v39 = vpop.f32.mrf.mxu0  ;;  %v4776_v35 = vsub.f32 %v9672_v62, %v4738_v47  ;;  %v4779_v62 = vsub.f32 %v9697_v60, %v4747_v23 }
 0xc6f   : > { %v9754_v56 = vadd.f32 %v4269_v39, %v3169_v43  ;;  %v10609_v39 = vld [vmem:[#allocation32_spill] sm:$0xff]  ;;  %v4798_v55 = vmul.f32 1.442695, %v4777_v42 }
 0xc70   : > { %v7146_v44 = vpop.f32.mrf.mxu0  ;;  %v4796_v11 = vmul.f32 1.442695, %v4776_v35  ;;  %v4802_v60 = vmul.f32 1.442695, %v4779_v62 }
 0xc71   : > { %v9758_v46 = vadd.f32 %v7146_v44, %v3180_v5  ;;  %v10610_v5 = vld [vmem:[#allocation26_spill] sm:$0xff] }
 0xc72   : > { %v4272_v29 = vpop.f32.mrf.mxu0  ;;  %v3188_v6 = vadd.f32 %v10610_v5, %v10609_v39 }
 0xc73   : > { %v9761_v54 = vadd.f32 %v4272_v29, %v3172_v2  ;;  %v4792_v2 = vmul.f32 1.442695, %v4774_v17  ;;  %v4744_v29 = vpop.xlane.xlu0 %4743 }
 0xc74   : > { %v4778_v22 = vsub.f32 %v9689_v28, %v4744_v29  ;;  %v4766_v28 = vsel %vm1403_vm3, %v9789_v38, -inf }
 0xc75   : > { %7656 = vpow2.f32 %v4792_v2 }
 0xc76   : > { %7658 = vpow2.f32 %v4798_v55  ;;  %v4800_v63 = vmul.f32 1.442695, %v4778_v22 }
 0xc77   : > { %v4756_v50 = vpop.xlane.xlu0 %4755  ;;  %7660 = vpow2.f32 %v4796_v11 }
 0xc78   : > { %v7149_v18 = vpop.f32.mrf.mxu0  ;;  %v4782_v7 = vsub.f32 %v9702_v10, %v4756_v50  ;;  %7662 = vpow2.f32 %v4800_v63 }
 0xc79   : > { %v9769_v31 = vadd.f32 %v7149_v18, %v3193_v33  ;;  %7664 = vpow2.f32 %v4802_v60 }
 0xc7a   : > { %v4285_v48 = vpop.f32.mrf.mxu0  ;;  %v4808_v10 = vmul.f32 1.442695, %v4782_v7 }
 0xc7b   : > { %v9775_v4 = vadd.f32 %v4285_v48, %v3185_v59  ;;  %v9801_v48 = vpop.eup %7650 }
 0xc7c   : > { %v7150_v43 = vpop.f32.mrf.mxu0  ;;  %v9811_v39 = vpop.eup %7652  ;;  %7666 = vpow2.f32 %v4808_v10 }
 0xc7d   : > { %v9779_v44 = vadd.f32 %v7150_v43, %v3196_v25  ;;  %v4771_v25 = vpop.xlane.xlu1 %4770  ;;  %v4823_v43 = vsel %vm1403_vm3, %v9801_v48, 0.0  ;;  %v9816_v2 = vpop.eup %7654  ;;  %7668 = vpow2.f32 %v4810_v30  ;;  %v4820_v29 = vsel %vm1403_vm3, %v9811_v39, 0.0 }
 0xc7e   : > { %v4288_v15 = vpop.f32.mrf.mxu0  ;;  %v4787_v5 = vsub.f32 %v9714_v53, %v4771_v25  ;;  %v4829_v53 = vsel %vm1403_vm3, %v9816_v2, 0.0 }
 0xc7f   : > { %v9782_v9 = vadd.f32 %v4288_v15, %v3188_v6 }
 0xc80   : > { %v4564_v40 = vpop.f32.mrf.mxu0  ;;  %v4818_v55 = vmul.f32 1.442695, %v4787_v5 }
 0xc81   : > { %v9785_v21 = vadd.f32 %v9641_v3, %v4564_v40 }
 0xc82   : > { %v7179_v33 = vpop.f32.mrf.mxu0  ;;  %v9818_v35 = vpop.eup %7656  ;;  %7670 = vpow2.f32 %v4818_v55 }
 0xc83   : > { %v4748_v18 = vsel %vm1403_vm3, %v9785_v21, -inf  ;;  %v9824_v23 = vpop.eup %7658  ;;  %v4826_v22 = vsel %vm1403_vm3, %v9818_v35, 0.0 }
 0xc84   : > { %v4567_v26 = vpop.f32.mrf.mxu0  ;;  %4749 = vmax.xlane.f32.xlu0 %v4748_v18  ;;  %v4835_v33 = vsel %vm1403_vm3, %v9824_v23, 0.0  ;;  %v9831_v11 = vpop.eup %7660 }
 0xc85   : > { %v9796_v59 = vadd.f32 %v9648_v14, %v4567_v26  ;;  %v9833_v62 = vpop.eup %7662  ;;  %v4832_v18 = vsel %vm1403_vm3, %v9831_v11, 0.0 }
 0xc86   : > { %v7180_v17 = vpop.f32.mrf.mxu0  ;;  %v9838_v16 = vpop.eup %7664  ;;  %v4838_v63 = vsel %vm1403_vm3, %v9833_v62, 0.0 }
 0xc87   : > { %v4751_v32 = vsel %vm1403_vm3, %v9796_v59, -inf  ;;  %v4841_v26 = vsel %vm1403_vm3, %v9838_v16, 0.0 }
 0xc88   : > { %4767 = vmax.xlane.f32.xlu0 %v4766_v28  ;;  %4752 = vmax.xlane.f32.xlu1 %v4751_v32  ;;  %v4666_v37 = vpop.f32.mrf.mxu0 }
 0xc89   : > { %v9807_v47 = vadd.f32 %v9641_v3, %v4666_v37 }
 0xc8a   : > { %v7191_v42 = vpop.f32.mrf.mxu0 }
 0xc8b   : > { %v4760_v6 = vsel %vm1403_vm3, %v9807_v47, -inf }
 0xc8c   : > { %4824 = vadd.xlane.f32.xlu1 %v4823_v43  ;;  %4761 = vmax.xlane.f32.xlu0 %v4760_v6  ;;  %v4669_v3 = vpop.f32.mrf.mxu0 }
 0xc8d   : > { %v4670_v40 = vadd.f32 %v9648_v14, %v4669_v3  ;;  %v9840_v14 = vpop.eup %7666 }
 0xc8e   : > { %v7192_v15 = vpop.f32.mrf.mxu0  ;;  %v9846_v7 = vpop.eup %7668  ;;  %v4850_v28 = vsel %vm1403_vm3, %v9840_v14, 0.0 }
 0xc8f   : > { %v4763_v50 = vsel %vm1403_vm3, %v4670_v40, -inf  ;;  %v4853_v17 = vsel %vm1403_vm3, %v9846_v7, 0.0  ;;  %v9852_v60 = vpop.eup %7670 }
 0xc90   : > { %4821 = vadd.xlane.f32.xlu0 %v4820_v29  ;;  %4830 = vadd.xlane.f32.xlu1 %v4829_v53  ;;  %v4865_v24 = vsel %vm1403_vm3, %v9852_v60, 0.0 }
 0xc94   : > { %4827 = vadd.xlane.f32.xlu0 %v4826_v22  ;;  %4836 = vadd.xlane.f32.xlu1 %v4835_v33 }
 0xc98   : > { %4764 = vmax.xlane.f32.xlu1 %v4763_v50  ;;  %4833 = vadd.xlane.f32.xlu0 %v4832_v18 }
 0xc9c   : > { %4842 = vadd.xlane.f32.xlu1 %v4841_v26  ;;  %4839 = vadd.xlane.f32.xlu0 %v4838_v63 }
 0xca0   : > { %4854 = vadd.xlane.f32.xlu1 %v4853_v17  ;;  %4851 = vadd.xlane.f32.xlu0 %v4850_v28 }
 0xca4   : > { %4866 = vadd.xlane.f32.xlu1 %v4865_v24 }
 0xcb5   : > { %4955 = vrot.lane.b32.xlu1 %v8465_v45, %s7991_s14 }
 0xcb9   : > { %5002 = vrot.lane.b32.xlu1 %v8473_v27, %s7991_s14 }
 0xcbd   : > { %5049 = vrot.lane.b32.xlu1 %v8477_v0, %s7991_s14 }
 0xcc1   : > { %5143 = vrot.lane.b32.xlu1 %v8483_v41, %s7991_s14 }
 0xd0d   : > { %v9864_v32 = vpop.xlane.xlu0 %4749 }
 0xd11   : > { %v4753_v25 = vpop.xlane.xlu1 %4752  ;;  %v4768_v37 = vpop.xlane.xlu0 %4767 }
 0xd12   : > { %v4781_v10 = vsub.f32 %v9796_v59, %v4753_v25  ;;  %v4786_v42 = vsub.f32 %v9789_v38, %v4768_v37 }
 0xd14   : > { %v4806_v43 = vmul.f32 1.442695, %v4781_v10  ;;  %v4816_v30 = vmul.f32 1.442695, %v4786_v42 }
 0xd15   : > { %v4825_v45 = vpop.xlane.xlu1 %4824  ;;  %v9868_v5 = vpop.xlane.xlu0 %4761 }
 0xd16   : > { %7672 = vpow2.f32 %v4806_v43 }
 0xd17   : > { %7674 = vpow2.f32 %v4816_v30 }
 0xd18   : > { %7676 = vrcp.f32 %v4825_v45 }
 0xd19   : > { %v4831_v27 = vpop.xlane.xlu1 %4830  ;;  %v4822_v0 = vpop.xlane.xlu0 %4821 }
 0xd1a   : > { %7678 = vrcp.f32 %v4822_v0 }
 0xd1d   : > { %v4837_v41 = vpop.xlane.xlu1 %4836  ;;  %v4828_v6 = vpop.xlane.xlu0 %4827 }
 0xd1e   : > { %7680 = vrcp.f32 %v4828_v6 }
 0xd1f   : > { %7682 = vrcp.f32 %v4837_v41 }
 0xd20   : > { %7684 = vrcp.f32 %v4831_v27 }
 0xd21   : > { %v4765_v3 = vpop.xlane.xlu1 %4764  ;;  %v4834_v59 = vpop.xlane.xlu0 %4833 }
 0xd22   : > { %v4785_v15 = vsub.f32 %v4670_v40, %v4765_v3  ;;  %7686 = vrcp.f32 %v4834_v59 }
 0xd23   : > { %v9870_v38 = vpop.eup %7672 }
 0xd24   : > { %v9872_v55 = vpop.eup %7674  ;;  %v4814_v29 = vmul.f32 1.442695, %v4785_v15  ;;  %v4847_v53 = vsel %vm1403_vm3, %v9870_v38, 0.0 }
 0xd25   : > { %4848 = vadd.xlane.f32.xlu1 %v4847_v53  ;;  %v4843_v22 = vpop.xlane.xlu1 %4842  ;;  %v4862_v33 = vsel %vm1403_vm3, %v9872_v55, 0.0  ;;  %v4840_v50 = vpop.xlane.xlu0 %4839 }
 0xd26   : > { %7688 = vpow2.f32 %v4814_v29  ;;  %4863 = vadd.xlane.f32.xlu0 %v4862_v33  ;;  %v7677_v18 = vpop.eup %7676 }
 0xd27   : > { %7690 = vrcp.f32 %v4843_v22  ;;  %v7679_v40 = vpop.eup %7678  ;;  %v9879_v63 = vmul.f32 %v7677_v18, %v9801_v48 }
 0xd28   : > { %7692 = vrcp.f32 %v4840_v50  ;;  %v9882_v17 = vmul.f32 %v7679_v40, %v9811_v39 }
 0xd29   : > { %v4855_v26 = vpop.xlane.xlu1 %4854  ;;  %v4852_v25 = vpop.xlane.xlu0 %4851 }
 0xd2a   : > { %v4900_v24 = vpack.c.bf16 %v9879_v63, %v9882_v17  ;;  %7694 = vrcp.f32 %v4855_v26 }
 0xd2b   : > { %v7681_v28 = vpop.eup %7680  ;;  %7696 = vrcp.f32 %v4852_v25 }
 0xd2c   : > { %v7683_v37 = vpop.eup %7682  ;;  %v4886_v30 = vmul.f32 %v7681_v28, %v9818_v35 }
 0xd2d   : > { %v4867_v10 = vpop.xlane.xlu1 %4866  ;;  %v7685_v42 = vpop.eup %7684  ;;  %v9888_v45 = vmul.f32 %v7683_v37, %v9824_v23 }
 0xd2e   : > { %v4887_v39 = vmul.f32 %v7685_v42, %v9816_v2 }
 0xd2f   : > { %v7687_v43 = vpop.eup %7686 }
 0xd30   : > { %v9891_v48 = vmul.f32 %v7687_v43, %v9831_v11  ;;  %v4901_v6 = vpack.c.bf16 %v4887_v39, %v4886_v30 }
 0xd31   : > { %v4956_v27 = vpop.permute.xlu1 %4955 }
 0xd32   : > { %v4902_v0 = vpack.c.bf16 %v9888_v45, %v9891_v48  ;;  %7206 = vmatpush3.bf16.msra.mxu1 %v4956_v27 }
 0xd33   : > { %v9896_v41 = vpop.eup %7688  ;;  %7217 = vmatprep.subr.bf16.mxu1 %v10602_v61 }
 0xd34   : > { %v7691_v35 = vpop.eup %7690  ;;  %v4859_v23 = vsel %vm1403_vm3, %v9896_v41, 0.0 }
 0xd35   : > { %v7693_v3 = vpop.eup %7692  ;;  %4860 = vadd.xlane.f32.xlu1 %v4859_v23  ;;  %v5003_v11 = vpop.permute.xlu1 %5002  ;;  %7208 = vmatmul.mubr.msk.bf16.vlgmr.msra.gmra.mxu1 %vm1403_vm3, %v4901_v6  ;;  %v4891_v2 = vmul.f32 %v7691_v35, %v9838_v16 }
 0xd36   : > { %7219 = vmatprep.mubr.msk.bf16.mxu1 %vm7980_vm1, %v10602_v61  ;;  %v4890_v59 = vmul.f32 %v7693_v3, %v9833_v62  ;;  %v5292_v3 = vld [vmem:[%s10539_s6 + $0xc] sm:$0xf] }
 0xd37   : > { %v7695_v29 = vpop.eup %7694 }
 0xd38   : > { %v4903_v53 = vpack.c.bf16 %v4891_v2, %v4890_v59  ;;  %v7697_v22 = vpop.eup %7696  ;;  %v4895_v16 = vmul.f32 %v7695_v29, %v9846_v7 }
 0xd39   : > { %v5050_v15 = vpop.permute.xlu1 %5049  ;;  %v4894_v62 = vmul.f32 %v7697_v22, %v9840_v14  ;;  %v4784_v14 = vsub.f32 %v9807_v47, %v9868_v5  ;;  %v5318_v22 = vsel %vm2974_vm4, %v5292_v3, 0 }
 0xd3a   : > { %7218 = vmatpush3.bf16.msra.mxu1 %v5050_v15 }
 0xd3b   : > { %7229 = vmatprep.subr.bf16.mxu1 %v10602_v61  ;;  %v4905_v50 = vpack.c.bf16 %v4895_v16, %v4894_v62  ;;  %v4812_v18 = vmul.f32 1.442695, %v4784_v14 }
 0xd3c   : > { %4908 = vrot.lane.b32.xlu0 %v8467_v13, %s7991_s14  ;;  %v4780_v13 = vsub.f32 %v9785_v21, %v9864_v32 }
 0xd3d   : > { %v5144_v33 = vpop.permute.xlu1 %5143  ;;  %7220 = vmatmul.mubr.msk.bf16.vlgmr.msra.gmra.mxu1 %vm1403_vm3, %v4903_v53 }
 0xd3e   : > { %7230 = vmatpush3.bf16.msra.mxu1 %v5144_v33  ;;  %7231 = vmatprep.mubr.msk.bf16.mxu1 %vm7980_vm1, %v10602_v61  ;;  %v4804_v7 = vmul.f32 1.442695, %v4780_v13 }
 0xd3f   : > { %7241 = vmatprep.subr.bf16.mxu1 %v10602_v61 }
 0xd40   : > { %5096 = vrot.lane.b32.xlu0 %v8481_v1, %s7991_s14  ;;  %7698 = vpow2.f32 %v4804_v7 }
 0xd41   : > { %7700 = vpow2.f32 %v4812_v18 }
 0xd45   : > { %7232 = vmatmul.mubr.msk.bf16.vlgmr.msra.gmra.mxu1 %vm1403_vm3, %v4905_v50 }
 0xd46   : > { %5237 = vrot.lane.b32.xlu1 %v8489_v49, %s7991_s14  ;;  %7243 = vmatprep.mubr.msk.bf16.mxu1 %vm7980_vm1, %v10602_v61 }
 0xd4d   : > { %v7699_v1 = vpop.eup %7698 }
 0xd4e   : > { %v4844_v40 = vsel %vm1403_vm3, %v7699_v1, 0.0  ;;  %v7701_v26 = vpop.eup %7700 }
 0xd4f   : > { %v4856_v21 = vsel %vm1403_vm3, %v7701_v26, 0.0 }
 0xd5f   : > { %4845 = vadd.xlane.f32.xlu0 %v4844_v40 }
 0xd63   : > { %4857 = vadd.xlane.f32.xlu0 %v4856_v21 }
 0xd79   : > { %5190 = vrot.lane.b32.xlu0 %v8491_v51, %s7991_s14  ;;  %s10617_s14 = sld [smem:[#allocation36_spill]] }
 0xd7f   : > { %s10459_s28 = scalar_lea.hbm %s10617_s14, %s6567_s25 }
 0xdae   : > { %v4849_v47 = vpop.xlane.xlu1 %4848 }
 0xdaf   : > { %v4864_v49 = vpop.xlane.xlu0 %4863 }
 0xdb0   : > { %7702 = vrcp.f32 %v4864_v49 }
 0xdb1   : > { %7704 = vrcp.f32 %v4867_v10 }
 0xdb2   : > { %7706 = vrcp.f32 %v4849_v47 }
 0xdb3   : > { %v4909_v32 = vpop.permute.xlu0 %4908 }
 0xdb4   : > { %7200 = vmatpush3.bf16.msra.mxu0 %v4909_v32 }
 0xdb5   : > { %7211 = vmatprep.subr.bf16.mxu0 %v10602_v61 }
 0xdb7   : > { %7202 = vmatmul.mubr.msk.bf16.vlgmr.msra.gmra.mxu0 %vm1403_vm3, %v4900_v24  ;;  %v5097_v25 = vpop.permute.xlu0 %5096 }
 0xdb8   : > { %7212 = vmatpush3.bf16.msra.mxu0 %v5003_v11  ;;  %7213 = vmatprep.mubr.msk.bf16.mxu0 %vm7980_vm1, %v10602_v61 }
 0xdb9   : > { %7223 = vmatprep.subr.bf16.mxu0 %v10602_v61 }
 0xdbd   : > { %v7703_v51 = vpop.eup %7702 }
 0xdbe   : > { %v4861_v5 = vpop.xlane.xlu1 %4860  ;;  %v7705_v28 = vpop.eup %7704  ;;  %v4898_v37 = vmul.f32 %v7703_v51, %v9872_v55 }
 0xdbf   : > { %7214 = vmatmul.mubr.msk.bf16.vlgmr.msra.gmra.mxu0 %vm1403_vm3, %v4902_v0  ;;  %v4899_v63 = vmul.f32 %v7705_v28, %v9852_v60  ;;  %v7707_v55 = vpop.eup %7706 }
 0xdc0   : > { %7224 = vmatpush3.bf16.msra.mxu0 %v5097_v25  ;;  %7225 = vmatprep.mubr.msk.bf16.mxu0 %vm7980_vm1, %v10602_v61  ;;  %v4893_v45 = vmul.f32 %v7707_v55, %v9870_v38 }
 0xdc1   : > { %7235 = vmatprep.subr.bf16.mxu0 %v10602_v61  ;;  %v4907_v24 = vpack.c.bf16 %v4899_v63, %v4898_v37 }
 0xdc2   : > { %v5238_v17 = vpop.permute.xlu1 %5237 }
 0xdc3   : > { %7242 = vmatpush3.bf16.msra.mxu1 %v5238_v17 }
 0xdc6   : > { %7244 = vmatmul.mubr.msk.bf16.vlgmr.msra.gmra.mxu1 %vm1403_vm3, %v4907_v24 }
 0xde8   : > { %v4846_v10 = vpop.xlane.xlu0 %4845 }
 0xde9   : > { %7708 = vrcp.f32 %v4846_v10 }
 0xdec   : > { %v4858_v42 = vpop.xlane.xlu0 %4857 }
 0xded   : > { %7710 = vrcp.f32 %v4858_v42 }
 0xdee   : > { %7712 = vrcp.f32 %v4861_v5 }
 0xdf0   : > { %v5191_v35 = vpop.permute.xlu0 %5190 }
 0xdf5   : > { %v4995_v43 = vpop.f32.mrf.mxu1 }
 0xdf6   : > { %v7709_v30 = vpop.eup %7708 }
 0xdf7   : > { %v4892_v48 = vmul.f32 %v7709_v30, %v7699_v1  ;;  %v7209_v39 = vpop.f32.mrf.mxu1 }
 0xdf9   : > { %v4904_v27 = vpack.c.bf16 %v4893_v45, %v4892_v48  ;;  %v4998_v60 = vpop.f32.mrf.mxu1 }
 0xdfa   : > { %v7711_v0 = vpop.eup %7710  ;;  %v5285_v6 = vpack.c.bf16 %v4998_v60, %v4995_v43  ;;  %v9968_v60 = vld [vmem:[%s10540_s7] ss:$0 sm:$0xff] }
 0xdfb   : > { %7226 = vmatmul.mubr.msk.bf16.vlgmr.msra.gmra.mxu0 %vm1403_vm3, %v4904_v27  ;;  %v7210_v23 = vpop.f32.mrf.mxu1  ;;  %v7713_v11 = vpop.eup %7712  ;;  %v4896_v38 = vmul.f32 %v7711_v0, %v7701_v26 }
 0xdfc   : > { %7236 = vmatpush3.bf16.msra.mxu0 %v5191_v35  ;;  %7237 = vmatprep.mubr.msk.bf16.mxu0 %vm7980_vm1, %v10602_v61  ;;  %v4897_v59 = vmul.f32 %v7713_v11, %v9896_v41  ;;  %v10612_v35 = vld [vmem:[#allocation21_spill] sm:$0xff] }
 0xdfd   : > { %v5089_v2 = vpop.f32.mrf.mxu1  ;;  %7324 = vmatprep.subr.msk.bf16.mxu0 %vm2974_vm4, %v5292_v3 }
 0xdfe   : > { %v4906_v29 = vpack.c.bf16 %v4897_v59, %v4896_v38 }
 0xdff   : > { %v7221_v15 = vpop.f32.mrf.mxu1 }
 0xe01   : > { %v5092_v53 = vpop.f32.mrf.mxu1 }
 0xe02   : > { %v5287_v33 = vpack.c.bf16 %v5092_v53, %v5089_v2 }
 0xe03   : > { %7238 = vmatmul.mubr.msk.bf16.vlgmr.msra.gmra.mxu0 %vm1403_vm3, %v4906_v29  ;;  %v7222_v16 = vpop.f32.mrf.mxu1  ;;  %v7778_v29 = vld [vmem:[%s8214_s24] sm:$0xff] }
 0xe04   : > { %7248 = vmatpush3.bf16.msra.mxu0 %v5318_v22 }
 0xe05   : > { %v5183_v62 = vpop.f32.mrf.mxu1 }
 0xe07   : > { %v7233_v50 = vpop.f32.mrf.mxu1 }
 0xe09   : > { %v5186_v13 = vpop.f32.mrf.mxu1 }
 0xe0a   : > { %v5289_v61 = vpack.c.bf16 %v5186_v13, %v5183_v62  ;;  %v10613_v13 = vld [vmem:[#allocation28_spill] sm:$0xff] }
 0xe0b   : > { %v7234_v7 = vpop.f32.mrf.mxu1 }
 0xe77   : > { %v4948_v14 = vpop.f32.mrf.mxu0 }
 0xe79   : > { %v7203_v18 = vpop.f32.mrf.mxu0 }
 0xe7b   : > { %v4951_v1 = vpop.f32.mrf.mxu0 }
 0xe7c   : > { %v5284_v40 = vpack.c.bf16 %v4951_v1, %v4948_v14  ;;  %v7780_v14 = vld [vmem:[%s8214_s24 + $0x8] sm:$0xff] }
 0xe7d   : > { %v7204_v41 = vpop.f32.mrf.mxu0 }
 0xe7e   : > { %7249 = vmatprep.mubr.msk.bf16.mxu0 %vm1005_vm2, %v5284_v40 }
 0xe7f   : > { %v5042_v26 = vpop.f32.mrf.mxu0  ;;  %7250 = vmatmul.mubr.msk.bf16.vlgmr.msra.gmra.mxu0 %vm1005_vm2, %v5285_v6  ;;  %v10611_v6 = vld [vmem:[#allocation27_spill] sm:$0xff] }
 0xe80   : > { %v3140_v23 = vadd.f32 %v10612_v35, %v10611_v6 }
 0xe81   : > { %v7215_v21 = vpop.f32.mrf.mxu0 }
 0xe82   : > { %v4301_v2 = vadd.f32 %v9730_v34, %v3140_v23 }
 0xe83   : > { %v5045_v49 = vpop.f32.mrf.mxu0 }
 0xe84   : > { %v5286_v32 = vpack.c.bf16 %v5045_v49, %v5042_v26  ;;  %v7781_v49 = vld [vmem:[%s8214_s24 + $0x18] sm:$0xff] }
 0xe85   : > { %v7216_v47 = vpop.f32.mrf.mxu0 }
 0xe86   : > { %7253 = vmatprep.mubr.msk.bf16.mxu0 %vm1005_vm2, %v5286_v32  ;;  %v5277_v51 = vpop.f32.mrf.mxu1 }
 0xe87   : > { %7254 = vmatmul.mubr.msk.bf16.gmra.mxu0 %vm1005_vm2, %v5287_v33  ;;  %v7779_v33 = vld [vmem:[%s8214_s24 + $0x10] sm:$0xff] }
 0xe88   : > { %v7245_v5 = vpop.f32.mrf.mxu1 }
 0xe8a   : > { %v5280_v28 = vpop.f32.mrf.mxu1 }
 0xe8b   : > { %v5291_v45 = vpack.c.bf16 %v5280_v28, %v5277_v51  ;;  %v7782_v28 = vld [vmem:[%s8214_s24 + $0x20] sm:$0xff] }
 0xe8c   : > { %v7246_v25 = vpop.f32.mrf.mxu1 }
 0xebb   : > { %v5136_v37 = vpop.f32.mrf.mxu0 }
 0xebd   : > { %v7227_v63 = vpop.f32.mrf.mxu0 }
 0xebf   : > { %v5139_v17 = vpop.f32.mrf.mxu0 }
 0xec0   : > { %v5288_v24 = vpack.c.bf16 %v5139_v17, %v5136_v37  ;;  %v7783_v17 = vld [vmem:[%s8214_s24 + $0x28] sm:$0xff] }
 0xec1   : > { %v7228_v10 = vpop.f32.mrf.mxu0 }
 0xec2   : > { %7257 = vmatprep.mubr.msk.bf16.mxu0 %vm1005_vm2, %v5288_v24  ;;  %v7784_v10 = vld [vmem:[%s8214_s24 + $0x30] sm:$0xff] }
 0xec3   : > { %v5230_v42 = vpop.f32.mrf.mxu0  ;;  %7258 = vmatmul.mubr.msk.bf16.gmra.mxu0 %vm1005_vm2, %v5289_v61  ;;  %v10614_v61 = vld [vmem:[#allocation22_spill] sm:$0xff] }
 0xec5   : > { %v7239_v55 = vpop.f32.mrf.mxu0 }
 0xec6   : > { %v7785_v55 = vld [vmem:[%s8214_s24 + $0x38] sm:$0xff] }
 0xec7   : > { %v5233_v43 = vpop.f32.mrf.mxu0 }
 0xec8   : > { %v5290_v30 = vpack.c.bf16 %v5233_v43, %v5230_v42 }
 0xec9   : > { %v7240_v48 = vpop.f32.mrf.mxu0 }
 0xeca   : > { %7261 = vmatprep.mubr.msk.bf16.mxu0 %vm1005_vm2, %v5290_v30 }
 0xecb   : > { %7262 = vmatmul.mubr.msk.bf16.gmra.mxu0 %vm1005_vm2, %v5291_v45 }
 0xf3f   : > { %v7251_v39 = vpop.f32.mrf.mxu0 }
 0xf40   : > { %v5419_v27 = vadd.f32 %v7251_v39, %v9722_v58 }
 0xf41   : > { %v5354_v0 = vpop.f32.mrf.mxu0 }
 0xf42   : > { %v5417_v3 = vadd.f32 %v5354_v0, %v9726_v12  ;;  %v5442_v11 = vadd.f32 %v9968_v60, %v5419_v27 }
 0xf43   : > { %v7252_v38 = vpop.f32.mrf.mxu0 }
 0xf44   : > { %v5440_v59 = vadd.f32 %v9968_v60, %v5417_v3  ;;  %v5420_v58 = vadd.f32 %v7252_v38, %v9728_v57  ;;  %v9981_v16 = vadd.f32 %v7779_v33, %v5442_v11  ;;  %v3156_v57 = vadd.f32 %v10614_v61, %v10613_v13  ;;  %v7789_v13 = vld [vmem:[%s8214_s24 + $0x58] sm:$0xff] }
 0xf45   : > { %v5357_v15 = vpop.f32.mrf.mxu0 }
 0xf46   : > { %v9978_v53 = vadd.f32 %v7778_v29, %v5440_v59  ;;  %v5418_v22 = vadd.f32 %v5357_v15, %v4301_v2  ;;  %v5443_v62 = vadd.f32 %v9968_v60, %v5420_v58  ;;  %v4305_v40 = vadd.f32 %v9744_v52, %v3156_v57  ;;  %v7786_v59 = vld [vmem:[%s8214_s24 + $0x40] sm:$0xff]  ;;  %v7787_v29 = vld [vmem:[%s8214_s24 + $0x50] sm:$0xff] }
 0xf47   : > { %v7255_v12 = vpop.f32.mrf.mxu0  ;;  %v5480_v21 = vsel %vm572_vm0, %v9981_v16, 0.0 }
 0xf48   : > { %v5441_v50 = vadd.f32 %v9968_v60, %v5418_v22  ;;  %v5474_v34 = vsel %vm572_vm0, %v9978_v53, 0.0  ;;  %v5423_v41 = vadd.f32 %v7255_v12, %v9736_v19  ;;  %v9998_v32 = vadd.f32 %v7781_v49, %v5443_v62 }
 0xf49   : > { %5475 = vadd.xlane.f32.xlu0 %v5474_v34  ;;  %v5370_v7 = vpop.f32.mrf.mxu0 }
 0xf4a   : > { %v9990_v18 = vadd.f32 %v7780_v14, %v5441_v50  ;;  %v5421_v1 = vadd.f32 %v5370_v7, %v9740_v20  ;;  %v5446_v5 = vadd.f32 %v9968_v60, %v5423_v41  ;;  %v7788_v50 = vld [vmem:[%s8214_s24 + $0x48] sm:$0xff]  ;;  %v7790_v41 = vld [vmem:[%s8214_s24 + $0x60] sm:$0xff] }
 0xf4b   : > { %v7256_v26 = vpop.f32.mrf.mxu0 }
 0xf4c   : > { %v5444_v47 = vadd.f32 %v9968_v60, %v5421_v1  ;;  %v5424_v51 = vadd.f32 %v7256_v26, %v9742_v36  ;;  %v5477_v20 = vsel %vm572_vm0, %v9990_v18, 0.0  ;;  %v5483_v36 = vsel %vm572_vm0, %v9998_v32, 0.0 }
 0xf4d   : > { %5481 = vadd.xlane.f32.xlu0 %v5480_v21  ;;  %5478 = vadd.xlane.f32.xlu1 %v5477_v20  ;;  %v5373_v19 = vpop.f32.mrf.mxu0  ;;  %v10016_v42 = vadd.f32 %v7784_v10, %v5446_v5 }
 0xf4e   : > { %v5422_v52 = vadd.f32 %v5373_v19, %v4305_v40  ;;  %v10006_v25 = vadd.f32 %v7782_v28, %v5444_v47  ;;  %v5447_v37 = vadd.f32 %v9968_v60, %v5424_v51  ;;  %v7791_v47 = vld [vmem:[%s8214_s24 + $0x70] sm:$0xff]  ;;  %v7793_v28 = vld [vmem:[%s8214_s24 + $0x78] sm:$0xff] }
 0xf4f   : > { %v5492_v48 = vsel %vm572_vm0, %v10016_v42, 0.0 }
 0xf50   : > { %v5445_v63 = vadd.f32 %v9968_v60, %v5422_v52  ;;  %v10019_v43 = vadd.f32 %v7785_v55, %v5447_v37  ;;  %v5486_v30 = vsel %vm572_vm0, %v10006_v25, 0.0  ;;  %v7792_v52 = vld [vmem:[%s8214_s24 + $0x68] sm:$0xff]  ;;  %s6283_s24 = sshll.u32 %s10349_s27, 4  ;;  %s10449_s24 = int_to_ptr.vmem [resolvable:$true] %s6283_s24 }
 0xf51   : > { %5484 = vadd.xlane.f32.xlu0 %v5483_v36  ;;  %s7874_s22 = scalar_lea.vmem %s10449_s24, 2048  ;;  %p7881_p10 = scmp.lt.s32.totalorder %s10449_s24, %s7879_s0 }
 0xf52   : > { %v10013_v24 = vadd.f32 %v7783_v17, %v5445_v63  ;;  %v5495_v39 = vsel %vm572_vm0, %v10019_v43, 0.0  ;;  %p7875_p0 = scmp.ne.s32.totalorder %s10449_s24, %s7874_s22  ;;  %p7882_p1 = scmp.lt.s32.totalorder %s7880_s1, %s7874_s22 }
 0xf54   : > { %v5489_v45 = vsel %vm572_vm0, %v10013_v24, 0.0  ;;  %p7876_p5 = pnand %p7875_p0, %p10618_p4  ;;  %p7883_p12 = por %p7882_p1, %p7881_p10 }
 0xf55   : > { %5487 = vadd.xlane.f32.xlu0 %v5486_v30  ;;  %5490 = vadd.xlane.f32.xlu1 %v5489_v45 }
 0xf56   : > { %p7877_p9 = pneg %p7876_p5 }
 0xf58   : > { %p7884_p11 = pnand %p7883_p12, %p7877_p9 }
 0xf59   : > { %5493 = vadd.xlane.f32.xlu0 %v5492_v48  ;;  %5496 = vadd.xlane.f32.xlu1 %v5495_v39 }
 0xf83   : > { %v7259_v27 = vpop.f32.mrf.mxu0 }
 0xf84   : > { %v5427_v0 = vadd.f32 %v7259_v27, %v9750_v8 }
 0xf85   : > { %v5386_v6 = vpop.f32.mrf.mxu0 }
 0xf86   : > { %v5425_v35 = vadd.f32 %v5386_v6, %v9754_v56  ;;  %v5450_v23 = vadd.f32 %v9968_v60, %v5427_v0 }
 0xf87   : > { %v7260_v3 = vpop.f32.mrf.mxu0 }
 0xf88   : > { %v5448_v11 = vadd.f32 %v9968_v60, %v5425_v35  ;;  %v5428_v38 = vadd.f32 %v7260_v3, %v9758_v46  ;;  %v10039_v8 = vadd.f32 %v7787_v29, %v5450_v23 }
 0xf89   : > { %v5389_v2 = vpop.f32.mrf.mxu0 }
 0xf8a   : > { %v10035_v58 = vadd.f32 %v7786_v59, %v5448_v11  ;;  %v5426_v15 = vadd.f32 %v5389_v2, %v9761_v54  ;;  %v5451_v56 = vadd.f32 %v9968_v60, %v5428_v38  ;;  %v5504_v7 = vsel %vm572_vm0, %v10039_v8, 0.0 }
 0xf8b   : > { %v7263_v22 = vpop.f32.mrf.mxu0 }
 0xf8c   : > { %v5449_v33 = vadd.f32 %v9968_v60, %v5426_v15  ;;  %v5431_v12 = vadd.f32 %v7263_v22, %v9769_v31  ;;  %v5498_v46 = vsel %vm572_vm0, %v10035_v58, 0.0  ;;  %v10051_v61 = vadd.f32 %v7789_v13, %v5451_v56 }
 0xf8d   : > { %5499 = vadd.xlane.f32.xlu0 %v5498_v46  ;;  %v5402_v62 = vpop.f32.mrf.mxu0 }
 0xf8e   : > { %v10047_v34 = vadd.f32 %v7788_v50, %v5449_v33  ;;  %v5429_v54 = vadd.f32 %v5402_v62, %v9775_v4  ;;  %v5454_v31 = vadd.f32 %v9968_v60, %v5431_v12  ;;  %v5507_v49 = vsel %vm572_vm0, %v10051_v61, 0.0 }
 0xf8f   : > { %v7264_v57 = vpop.f32.mrf.mxu0 }
 0xf90   : > { %v5452_v14 = vadd.f32 %v9968_v60, %v5429_v54  ;;  %v5432_v1 = vadd.f32 %v7264_v57, %v9779_v44  ;;  %v5501_v40 = vsel %vm572_vm0, %v10047_v34, 0.0  ;;  %v10067_v51 = vadd.f32 %v7791_v47, %v5454_v31 }
 0xf91   : > { %5505 = vadd.xlane.f32.xlu0 %v5504_v7  ;;  %5502 = vadd.xlane.f32.xlu1 %v5501_v40  ;;  %v5405_v4 = vpop.f32.mrf.mxu0 }
 0xf92   : > { %v10061_v26 = vadd.f32 %v7790_v41, %v5452_v14  ;;  %v5430_v21 = vadd.f32 %v5405_v4, %v9782_v9  ;;  %v5455_v44 = vadd.f32 %v9968_v60, %v5432_v1  ;;  %v5516_v37 = vsel %vm572_vm0, %v10067_v51, 0.0 }
 0xf94   : > { %v5453_v20 = vadd.f32 %v9968_v60, %v5430_v21  ;;  %v5510_v19 = vsel %vm572_vm0, %v10061_v26, 0.0  ;;  %v10077_v9 = vadd.f32 %v7793_v28, %v5455_v44  ;;  %v7416_v44 = vld [vmem:[%s10543_s10 + $0x8] sm:$0xff]  }
 0xf95   : > { %5508 = vadd.xlane.f32.xlu1 %v5507_v49  ;;  %5511 = vadd.xlane.f32.xlu0 %v5510_v19 }
 0xf96   : > { %v10074_v5 = vadd.f32 %v7792_v52, %v5453_v20  ;;  %v5519_v60 = vsel %vm572_vm0, %v10077_v9, 0.0  ;;  %7265 = vmatprep.subr.bf16.mxu1 %v7416_v44  ;;  %v7417_v20 = vld [vmem:[%s10543_s10] sm:$0xff]  }
 0xf97   : > { %7266 = vmatpush3.bf16.msra.mxu1 %v7416_v44 }
 0xf98   : > { %v5513_v63 = vsel %vm572_vm0, %v10074_v5, 0.0  ;;  %7267 = vmatprep.subr.bf16.mxu1 %v7417_v20 }
 0xf99   : > { %5517 = vadd.xlane.f32.xlu0 %v5516_v37  ;;  %5514 = vadd.xlane.f32.xlu1 %v5513_v63 }
 0xf9b   : > { %7268 = vmatpush3.bf16.msra.mxu1 %v7417_v20 }
 0xf9d   : > { %5520 = vadd.xlane.f32.xlu1 %v5519_v60 }
 0xfd2   : > { %v5476_v36 = vpop.xlane.xlu0 %5475 }
 0xfd3   : > { %v5522_v17 = vmul.f32 0.03125, %v5476_v36 }
 0xfd5   : > { %v10086_v10 = vsub.f32 %v9978_v53, %v5522_v17 }
 0xfd6   : > { %v5482_v55 = vpop.xlane.xlu0 %5481  ;;  %v5479_v30 = vpop.xlane.xlu1 %5478 }
 0xfd7   : > { %v5524_v45 = vmul.f32 0.03125, %v5482_v55  ;;  %v5523_v48 = vmul.f32 0.03125, %v5479_v30  ;;  %v5554_v39 = vmul.f32 %v10086_v10, %v10086_v10 }
 0xfd9   : > { %v10091_v27 = vsub.f32 %v9981_v16, %v5524_v45  ;;  %v10094_v0 = vsub.f32 %v9990_v18, %v5523_v48  ;;  %v5570_v6 = vsel %vm572_vm0, %v5554_v39, 0.0 }
 0xfda   : > { %v5485_v35 = vpop.xlane.xlu0 %5484  ;;  %5571 = vadd.xlane.f32.xlu0 %v5570_v6 }
 0xfdb   : > { %v5525_v23 = vmul.f32 0.03125, %v5485_v35  ;;  %v5556_v3 = vmul.f32 %v10091_v27, %v10091_v27  ;;  %v5555_v11 = vmul.f32 %v10094_v0, %v10094_v0 }
 0xfdd   : > { %v10102_v38 = vsub.f32 %v9998_v32, %v5525_v23  ;;  %v5576_v2 = vsel %vm572_vm0, %v5556_v3, 0.0  ;;  %v5573_v59 = vsel %vm572_vm0, %v5555_v11, 0.0 }
 0xfde   : > { %v5488_v15 = vpop.xlane.xlu0 %5487  ;;  %v5491_v29 = vpop.xlane.xlu1 %5490  ;;  %5577 = vadd.xlane.f32.xlu0 %v5576_v2  ;;  %5574 = vadd.xlane.f32.xlu1 %v5573_v59 }
 0xfdf   : > { %v5526_v56 = vmul.f32 0.03125, %v5488_v15  ;;  %v5527_v22 = vmul.f32 0.03125, %v5491_v29  ;;  %v5557_v33 = vmul.f32 %v10102_v38, %v10102_v38 }
 0xfe1   : > { %v10109_v12 = vsub.f32 %v10006_v25, %v5526_v56  ;;  %v10112_v46 = vsub.f32 %v10013_v24, %v5527_v22  ;;  %v5579_v62 = vsel %vm572_vm0, %v5557_v33, 0.0 }
 0xfe2   : > { %v5494_v50 = vpop.xlane.xlu0 %5493  ;;  %v5497_v54 = vpop.xlane.xlu1 %5496  ;;  %5580 = vadd.xlane.f32.xlu1 %v5579_v62 }
 0xfe3   : > { %v5528_v13 = vmul.f32 0.03125, %v5494_v50  ;;  %v5529_v57 = vmul.f32 0.03125, %v5497_v54  ;;  %v5558_v7 = vmul.f32 %v10109_v12, %v10109_v12  ;;  %v5559_v31 = vmul.f32 %v10112_v46, %v10112_v46 }
 0xfe5   : > { %v10120_v14 = vsub.f32 %v10016_v42, %v5528_v13  ;;  %v10123_v1 = vsub.f32 %v10019_v43, %v5529_v57  ;;  %v5582_v40 = vsel %vm572_vm0, %v5558_v7, 0.0  ;;  %v5585_v4 = vsel %vm572_vm0, %v5559_v31, 0.0 }
 0xfe6   : > { %5583 = vadd.xlane.f32.xlu0 %v5582_v40  ;;  %5586 = vadd.xlane.f32.xlu1 %v5585_v4 }
 0xfe7   : > { %v5560_v41 = vmul.f32 %v10120_v14, %v10120_v14  ;;  %v5561_v21 = vmul.f32 %v10123_v1, %v10123_v1 }
 0xfe9   : > { %v5588_v49 = vsel %vm572_vm0, %v5560_v41, 0.0  ;;  %v5591_v47 = vsel %vm572_vm0, %v5561_v21, 0.0 }
 0xfea   : > { %5589 = vadd.xlane.f32.xlu0 %v5588_v49  ;;  %5592 = vadd.xlane.f32.xlu1 %v5591_v47 }
0x1016   : > { %v5500_v19 = vpop.xlane.xlu0 %5499 }
0x1017   : > { %v5530_v52 = vmul.f32 0.03125, %v5500_v19 }
0x1019   : > { %v10140_v28 = vsub.f32 %v10035_v58, %v5530_v52 }
0x101a   : > { %v5506_v37 = vpop.xlane.xlu0 %5505  ;;  %v5503_v63 = vpop.xlane.xlu1 %5502 }
0x101b   : > { %v5532_v60 = vmul.f32 0.03125, %v5506_v37  ;;  %v5531_v36 = vmul.f32 0.03125, %v5503_v63  ;;  %v5562_v17 = vmul.f32 %v10140_v28, %v10140_v28 }
0x101d   : > { %v10145_v55 = vsub.f32 %v10039_v8, %v5532_v60  ;;  %v10148_v30 = vsub.f32 %v10047_v34, %v5531_v36  ;;  %v5594_v45 = vsel %vm572_vm0, %v5562_v17, 0.0 }
0x101e   : > { %v5509_v48 = vpop.xlane.xlu1 %5508  ;;  %5595 = vadd.xlane.f32.xlu0 %v5594_v45  ;;  %v5512_v39 = vpop.xlane.xlu0 %5511 }
0x101f   : > { %v5533_v6 = vmul.f32 0.03125, %v5509_v48  ;;  %v5534_v35 = vmul.f32 0.03125, %v5512_v39  ;;  %v5564_v23 = vmul.f32 %v10145_v55, %v10145_v55  ;;  %v5563_v3 = vmul.f32 %v10148_v30, %v10148_v30 }
0x1021   : > { %v10156_v11 = vsub.f32 %v10051_v61, %v5533_v6  ;;  %v10159_v2 = vsub.f32 %v10061_v26, %v5534_v35  ;;  %v5600_v59 = vsel %vm572_vm0, %v5564_v23, 0.0  ;;  %v5597_v15 = vsel %vm572_vm0, %v5563_v3, 0.0 }
0x1022   : > { %5601 = vadd.xlane.f32.xlu0 %v5600_v59  ;;  %v5518_v29 = vpop.xlane.xlu0 %5517  ;;  %5598 = vadd.xlane.f32.xlu1 %v5597_v15  ;;  %v5515_v56 = vpop.xlane.xlu1 %5514 }
0x1023   : > { %v5536_v22 = vmul.f32 0.03125, %v5518_v29  ;;  %v5535_v33 = vmul.f32 0.03125, %v5515_v56  ;;  %v5566_v62 = vmul.f32 %v10159_v2, %v10159_v2  ;;  %v5565_v50 = vmul.f32 %v10156_v11, %v10156_v11 }
0x1025   : > { %v10168_v54 = vsub.f32 %v10067_v51, %v5536_v22  ;;  %v10171_v13 = vsub.f32 %v10074_v5, %v5535_v33  ;;  %v5606_v57 = vsel %vm572_vm0, %v5566_v62, 0.0  ;;  %v5603_v7 = vsel %vm572_vm0, %v5565_v50, 0.0 }
0x1026   : > { %5607 = vadd.xlane.f32.xlu0 %v5606_v57  ;;  %5604 = vadd.xlane.f32.xlu1 %v5603_v7  ;;  %v5521_v31 = vpop.xlane.xlu1 %5520 }
0x1027   : > { %v5537_v40 = vmul.f32 0.03125, %v5521_v31  ;;  %v5568_v4 = vmul.f32 %v10168_v54, %v10168_v54  ;;  %v5567_v41 = vmul.f32 %v10171_v13, %v10171_v13 }
0x1029   : > { %v10180_v21 = vsub.f32 %v10077_v9, %v5537_v40  ;;  %v5612_v49 = vsel %vm572_vm0, %v5568_v4, 0.0  ;;  %v5609_v47 = vsel %vm572_vm0, %v5567_v41, 0.0  ;;  %v10191_v4 = vld [vmem:[%s10541_s8] ss:$0 sm:$0xff] }
0x102a   : > { %5613 = vadd.xlane.f32.xlu0 %v5612_v49  ;;  %5610 = vadd.xlane.f32.xlu1 %v5609_v47 }
0x102b   : > { %v5569_v44 = vmul.f32 %v10180_v21, %v10180_v21 }
0x102d   : > { %v5615_v20 = vsel %vm572_vm0, %v5569_v44, 0.0 }
0x102e   : > { %5616 = vadd.xlane.f32.xlu1 %v5615_v20 }
0x1063   : > { %v5572_v19 = vpop.xlane.xlu0 %5571 }
0x1064   : > { %v5618_v52 = vmul.f32 0.03125, %v5572_v19  ;;  %v10196_v19 = vld [vmem:[#allocation5] ss:$0 sm:$0xff] }
0x1066   : > { %v5634_v37 = vadd.f32 1e-05, %v5618_v52 }
0x1067   : > { %v5578_v63 = vpop.xlane.xlu0 %5577  ;;  %v5575_v60 = vpop.xlane.xlu1 %5574 }
0x1068   : > { %7714 = vrsqrt.f32 %v5634_v37  ;;  %v5620_v36 = vmul.f32 0.03125, %v5578_v63  ;;  %v5619_v17 = vmul.f32 0.03125, %v5575_v60 }
0x106a   : > { %v5636_v45 = vadd.f32 1e-05, %v5620_v36  ;;  %v5635_v48 = vadd.f32 1e-05, %v5619_v17 }
0x106b   : > { %v5581_v39 = vpop.xlane.xlu1 %5580 }
0x106c   : > { %7716 = vrsqrt.f32 %v5636_v45  ;;  %v5621_v6 = vmul.f32 0.03125, %v5581_v39 }
0x106d   : > { %7718 = vrsqrt.f32 %v5635_v48 }
0x106e   : > { %v5637_v35 = vadd.f32 1e-05, %v5621_v6 }
0x106f   : > { %v5584_v23 = vpop.xlane.xlu0 %5583  ;;  %v5587_v3 = vpop.xlane.xlu1 %5586 }
0x1070   : > { %7720 = vrsqrt.f32 %v5637_v35  ;;  %v5622_v59 = vmul.f32 0.03125, %v5584_v23  ;;  %v5623_v15 = vmul.f32 0.03125, %v5587_v3 }
0x1072   : > { %v5638_v29 = vadd.f32 1e-05, %v5622_v59  ;;  %v5639_v56 = vadd.f32 1e-05, %v5623_v15 }
0x1073   : > { %v5590_v22 = vpop.xlane.xlu0 %5589  ;;  %v5593_v33 = vpop.xlane.xlu1 %5592 }
0x1074   : > { %7722 = vrsqrt.f32 %v5638_v29  ;;  %v5624_v62 = vmul.f32 0.03125, %v5590_v22  ;;  %v5625_v50 = vmul.f32 0.03125, %v5593_v33 }
0x1075   : > { %v7715_v57 = vpop.eup %7714  ;;  %7724 = vrsqrt.f32 %v5639_v56 }
0x1076   : > { %v5640_v7 = vadd.f32 1e-05, %v5624_v62  ;;  %v5641_v31 = vadd.f32 1e-05, %v5625_v50  ;;  %v5666_v40 = vmul.f32 %v7715_v57, %v10086_v10 }
0x1078   : > { %7726 = vrsqrt.f32 %v5640_v7  ;;  %v5688_v20 = vmul.f32 %v10191_v4, %v5666_v40 }
0x1079   : > { %v7717_v41 = vpop.eup %7716  ;;  %7728 = vrsqrt.f32 %v5641_v31 }
0x107a   : > { %v7719_v49 = vpop.eup %7718  ;;  %v5668_v47 = vmul.f32 %v7717_v41, %v10091_v27  ;;  %v5710_v60 = vadd.f32 %v10196_v19, %v5688_v20 }
0x107b   : > { %v5667_v44 = vmul.f32 %v7719_v49, %v10094_v0 }
0x107c   : > { %v5690_v37 = vmul.f32 %v10191_v4, %v5668_v47 }
0x107d   : > { %v7721_v52 = vpop.eup %7720  ;;  %v5689_v10 = vmul.f32 %v10191_v4, %v5667_v44 }
0x107e   : > { %v5669_v63 = vmul.f32 %v7721_v52, %v10102_v38  ;;  %v5712_v48 = vadd.f32 %v10196_v19, %v5690_v37 }
0x107f   : > { %v5711_v36 = vadd.f32 %v10196_v19, %v5689_v10 }
0x1080   : > { %v5691_v17 = vmul.f32 %v10191_v4, %v5669_v63 }
0x1081   : > { %v7723_v27 = vpop.eup %7722  ;;  %v5726_v45 = vpack.c.bf16 %v5711_v36, %v5710_v60 }
0x1082   : > { %v7725_v0 = vpop.eup %7724  ;;  %v5713_v39 = vadd.f32 %v10196_v19, %v5691_v17  ;;  %v5670_v6 = vmul.f32 %v7723_v27, %v10109_v12 }
0x1083   : > { %7269 = vmatprep.mubr.msk.bf16.mxu1 %vm572_vm0, %v5726_v45  ;;  %v5671_v35 = vmul.f32 %v7725_v0, %v10112_v46 }
0x1084   : > { %v5727_v38 = vpack.c.bf16 %v5713_v39, %v5712_v48  ;;  %v5692_v23 = vmul.f32 %v10191_v4, %v5670_v6 }
0x1085   : > { %v7727_v3 = vpop.eup %7726  ;;  %v5693_v59 = vmul.f32 %v10191_v4, %v5671_v35 }
0x1086   : > { %v7729_v15 = vpop.eup %7728  ;;  %v5672_v29 = vmul.f32 %v7727_v3, %v10120_v14  ;;  %7270 = vmatmul.mubr.msk.bf16.vlgmr.msra.gmra.mxu1 %vm572_vm0, %v5727_v38  ;;  %v5714_v56 = vadd.f32 %v10196_v19, %v5692_v23 }
0x1087   : > { %v5673_v22 = vmul.f32 %v7729_v15, %v10123_v1  ;;  %v5715_v12 = vadd.f32 %v10196_v19, %v5693_v59 }
0x1088   : > { %v5694_v33 = vmul.f32 %v10191_v4, %v5672_v29 }
0x1089   : > { %v5728_v46 = vpack.c.bf16 %v5715_v12, %v5714_v56  ;;  %v5695_v62 = vmul.f32 %v10191_v4, %v5673_v22 }
0x108a   : > { %v5716_v50 = vadd.f32 %v10196_v19, %v5694_v33 }
0x108b   : > { %7273 = vmatprep.mubr.msk.bf16.mxu1 %vm572_vm0, %v5728_v46  ;;  %v5717_v57 = vadd.f32 %v10196_v19, %v5695_v62 }
0x108d   : > { %v5729_v14 = vpack.c.bf16 %v5717_v57, %v5716_v50 }
0x108f   : > { %7274 = vmatmul.mubr.msk.bf16.gmra.mxu1 %vm572_vm0, %v5729_v14 }
0x10a7   : > { %v5596_v7 = vpop.xlane.xlu0 %5595 }
0x10a8   : > { %v5626_v31 = vmul.f32 0.03125, %v5596_v7 }
0x10aa   : > { %v5642_v40 = vadd.f32 1e-05, %v5626_v31 }
0x10ab   : > { %v5602_v1 = vpop.xlane.xlu0 %5601  ;;  %v5599_v41 = vpop.xlane.xlu1 %5598 }
0x10ac   : > { %7730 = vrsqrt.f32 %v5642_v40  ;;  %v5628_v49 = vmul.f32 0.03125, %v5602_v1  ;;  %v5627_v47 = vmul.f32 0.03125, %v5599_v41 }
0x10ae   : > { %v5644_v44 = vadd.f32 1e-05, %v5628_v49  ;;  %v5643_v20 = vadd.f32 1e-05, %v5627_v47 }
0x10af   : > { %v5608_v52 = vpop.xlane.xlu0 %5607  ;;  %v5605_v10 = vpop.xlane.xlu1 %5604 }
0x10b0   : > { %7732 = vrsqrt.f32 %v5644_v44  ;;  %v5630_v37 = vmul.f32 0.03125, %v5608_v52  ;;  %v5629_v63 = vmul.f32 0.03125, %v5605_v10 }
0x10b1   : > { %7734 = vrsqrt.f32 %v5643_v20 }
0x10b2   : > { %v5646_v60 = vadd.f32 1e-05, %v5630_v37  ;;  %v5645_v36 = vadd.f32 1e-05, %v5629_v63 }
0x10b3   : > { %v5614_v17 = vpop.xlane.xlu0 %5613  ;;  %v5611_v27 = vpop.xlane.xlu1 %5610 }
0x10b4   : > { %7736 = vrsqrt.f32 %v5646_v60  ;;  %v5632_v45 = vmul.f32 0.03125, %v5614_v17  ;;  %v5631_v0 = vmul.f32 0.03125, %v5611_v27  ;;  %v7419_v17 = vld [vmem:[%s10545_s12 + $0x30] sm:$0xff]   ;;  %v7422_v27 = vld [vmem:[%s10545_s12 + $0x18] sm:$0xff]  }
0x10b5   : > { %7738 = vrsqrt.f32 %v5645_v36 }
0x10b6   : > { %v5648_v48 = vadd.f32 1e-05, %v5632_v45  ;;  %v5647_v39 = vadd.f32 1e-05, %v5631_v0  ;;  %v7423_v45 = vld [vmem:[%s10545_s12 + $0x10] sm:$0xff]   ;;  %v7424_v0 = vld [vmem:[%s10545_s12 + $0x8] sm:$0xff]  }
0x10b7   : > { %v5617_v6 = vpop.xlane.xlu1 %5616 }
0x10b8   : > { %7740 = vrsqrt.f32 %v5648_v48  ;;  %v5633_v35 = vmul.f32 0.03125, %v5617_v6  ;;  %v7425_v48 = vld [vmem:[%s10545_s12] sm:$0xff]  }
0x10b9   : > { %v7731_v38 = vpop.eup %7730  ;;  %7742 = vrsqrt.f32 %v5647_v39  ;;  %v10274_v39 = vld [vmem:[#allocation7] ss:$0 sm:$0xff] }
0x10ba   : > { %v5649_v23 = vadd.f32 1e-05, %v5633_v35  ;;  %v5674_v3 = vmul.f32 %v7731_v38, %v10140_v28 }
0x10bc   : > { %7744 = vrsqrt.f32 %v5649_v23  ;;  %v5696_v29 = vmul.f32 %v10191_v4, %v5674_v3 }
0x10bd   : > { %v7733_v59 = vpop.eup %7732 }
0x10be   : > { %v7735_v15 = vpop.eup %7734  ;;  %v5676_v56 = vmul.f32 %v7733_v59, %v10145_v55  ;;  %v5718_v62 = vadd.f32 %v10196_v19, %v5696_v29 }
0x10bf   : > { %v5675_v22 = vmul.f32 %v7735_v15, %v10148_v30 }
0x10c0   : > { %v5698_v28 = vmul.f32 %v10191_v4, %v5676_v56 }
0x10c1   : > { %v7737_v12 = vpop.eup %7736  ;;  %v5697_v33 = vmul.f32 %v10191_v4, %v5675_v22 }
0x10c2   : > { %v7739_v46 = vpop.eup %7738  ;;  %v5678_v14 = vmul.f32 %v7737_v12, %v10159_v2  ;;  %v5720_v1 = vadd.f32 %v10196_v19, %v5698_v28 }
0x10c3   : > { %v5677_v50 = vmul.f32 %v7739_v46, %v10156_v11  ;;  %v5719_v57 = vadd.f32 %v10196_v19, %v5697_v33 }
0x10c4   : > { %v5700_v49 = vmul.f32 %v10191_v4, %v5678_v14 }
0x10c5   : > { %v7741_v7 = vpop.eup %7740  ;;  %v5730_v31 = vpack.c.bf16 %v5719_v57, %v5718_v62  ;;  %v5699_v55 = vmul.f32 %v10191_v4, %v5677_v50 }
0x10c6   : > { %v7743_v40 = vpop.eup %7742  ;;  %v5680_v30 = vmul.f32 %v7741_v7, %v10168_v54  ;;  %v5722_v54 = vadd.f32 %v10196_v19, %v5700_v49 }
0x10c7   : > { %7277 = vmatprep.mubr.msk.bf16.mxu1 %vm572_vm0, %v5730_v31  ;;  %v5721_v41 = vadd.f32 %v10196_v19, %v5699_v55  ;;  %v5679_v11 = vmul.f32 %v7743_v40, %v10171_v13  ;;  %v7418_v13 = vld [vmem:[%s10545_s12 + $0x38] sm:$0xff]  }
0x10c8   : > { %v5702_v52 = vmul.f32 %v10191_v4, %v5680_v30  ;;  %7285 = vmatprep.subr.bf16.mxu0 %v7418_v13 }
0x10c9   : > { %v7745_v47 = vpop.eup %7744  ;;  %v5731_v44 = vpack.c.bf16 %v5721_v41, %v5720_v1  ;;  %v5701_v2 = vmul.f32 %v10191_v4, %v5679_v11  ;;  %7286 = vmatpush3.bf16.msra.mxu0 %v7418_v13 }
0x10ca   : > { %v5681_v20 = vmul.f32 %v7745_v47, %v10180_v21  ;;  %v5724_v60 = vadd.f32 %v10196_v19, %v5702_v52  ;;  %7287 = vmatprep.subr.bf16.mxu0 %v7419_v17 }
0x10cb   : > { %7278 = vmatmul.mubr.msk.bf16.gmra.mxu1 %vm572_vm0, %v5731_v44  ;;  %v5723_v10 = vadd.f32 %v10196_v19, %v5701_v2 }
0x10cc   : > { %v5703_v37 = vmul.f32 %v10191_v4, %v5681_v20  ;;  %v7420_v4 = vld [vmem:[%s10545_s12 + $0x28] sm:$0xff]  }
0x10cd   : > { %v5732_v63 = vpack.c.bf16 %v5723_v10, %v5722_v54  ;;  %7288 = vmatpush3.bf16.msra.mxu0 %v7419_v17 }
0x10ce   : > { %v5725_v36 = vadd.f32 %v10196_v19, %v5703_v37  ;;  %7289 = vmatprep.subr.bf16.mxu0 %v7420_v4  ;;  %v7421_v19 = vld [vmem:[%s10545_s12 + $0x20] sm:$0xff]  }
0x10cf   : > { %7281 = vmatprep.mubr.msk.bf16.mxu1 %vm572_vm0, %v5732_v63 }
0x10d0   : > { %v5733_v21 = vpack.c.bf16 %v5725_v36, %v5724_v60 }
0x10d1   : > { %7290 = vmatpush3.bf16.msra.mxu0 %v7420_v4 }
0x10d2   : > { %7291 = vmatprep.subr.bf16.mxu0 %v7421_v19 }
0x10d3   : > { %7282 = vmatmul.mubr.msk.bf16.gmra.mxu1 %vm572_vm0, %v5733_v21 }
0x10d5   : > { %7292 = vmatpush3.bf16.msra.mxu0 %v7421_v19 }
0x10d6   : > { %7293 = vmatprep.subr.bf16.mxu0 %v7422_v27 }
0x10d9   : > { %7294 = vmatpush3.bf16.msra.mxu0 %v7422_v27 }
0x10da   : > { %7295 = vmatprep.subr.bf16.mxu0 %v7423_v45 }
0x10dd   : > { %7296 = vmatpush3.bf16.msra.mxu0 %v7423_v45 }
0x10de   : > { %7297 = vmatprep.subr.bf16.mxu0 %v7424_v0 }
0x10e1   : > { %7298 = vmatpush3.bf16.msra.mxu0 %v7424_v0 }
0x10e2   : > { %7299 = vmatprep.subr.bf16.mxu0 %v7425_v48 }
0x10e5   : > { %7300 = vmatpush3.bf16.msra.mxu0 %v7425_v48 }
0x1146   : > { %v7271_v6 = vpop.f32.mrf.mxu1 }
0x1147   : > { %v10277_v35 = vadd.f32 %v7271_v6, %v10274_v39 }
0x1148   : > { %v5815_v38 = vpop.f32.mrf.mxu1 }
0x1149   : > { %v5896_v23 = vmul.f32 0.044715, %v10277_v35  ;;  %v10281_v3 = vadd.f32 %v10274_v39, %v5815_v38 }
0x114a   : > { %v7272_v59 = vpop.f32.mrf.mxu1 }
0x114b   : > { %v5912_v15 = vmul.f32 %v5896_v23, %v10277_v35  ;;  %v5894_v29 = vmul.f32 0.044715, %v10281_v3  ;;  %v5827_v56 = vadd.f32 %v7272_v59, %v10274_v39 }
0x114c   : > { %v5818_v22 = vpop.f32.mrf.mxu1 }
0x114d   : > { %v5928_v12 = vmul.f32 %v5912_v15, %v10277_v35  ;;  %v5910_v33 = vmul.f32 %v5894_v29, %v10281_v3  ;;  %v5897_v46 = vmul.f32 0.044715, %v5827_v56  ;;  %v5819_v62 = vadd.f32 %v10274_v39, %v5818_v22 }
0x114f   : > { %v5944_v50 = vadd.f32 %v5928_v12, %v10277_v35  ;;  %v5926_v57 = vmul.f32 %v5910_v33, %v10281_v3  ;;  %v5913_v28 = vmul.f32 %v5897_v46, %v5827_v56  ;;  %v7275_v14 = vpop.f32.mrf.mxu1  ;;  %v5895_v7 = vmul.f32 0.044715, %v5819_v62 }
0x1150   : > { %v10292_v31 = vadd.f32 %v7275_v14, %v10274_v39 }
0x1151   : > { %v5960_v55 = vmul.f32 0.7978846, %v5944_v50  ;;  %v5929_v40 = vmul.f32 %v5913_v28, %v5827_v56  ;;  %v5831_v30 = vpop.f32.mrf.mxu1  ;;  %v5942_v1 = vadd.f32 %v5926_v57, %v10281_v3  ;;  %v5911_v41 = vmul.f32 %v5895_v7, %v5819_v62 }
0x1152   : > { %v5900_v11 = vmul.f32 0.044715, %v10292_v31  ;;  %v5832_v49 = vadd.f32 %v10274_v39, %v5831_v30  ;;  %v5878_v30 = vmul.f32 0.5, %v10281_v3 }
0x1153   : > { %7746 = vtanh.f32 %v5960_v55  ;;  %v5945_v47 = vadd.f32 %v5929_v40, %v5827_v56  ;;  %v7276_v44 = vpop.f32.mrf.mxu1  ;;  %v5958_v2 = vmul.f32 0.7978846, %v5942_v1  ;;  %v5927_v20 = vmul.f32 %v5911_v41, %v5819_v62 }
0x1154   : > { %v5916_v52 = vmul.f32 %v5900_v11, %v10292_v31  ;;  %v5898_v54 = vmul.f32 0.044715, %v5832_v49  ;;  %v5843_v10 = vadd.f32 %v7276_v44, %v10274_v39  ;;  %v5881_v40 = vmul.f32 0.5, %v5827_v56 }
0x1155   : > { %v5961_v37 = vmul.f32 0.7978846, %v5945_v47  ;;  %v5834_v63 = vpop.f32.mrf.mxu1  ;;  %7748 = vtanh.f32 %v5958_v2  ;;  %v5943_v17 = vadd.f32 %v5927_v20, %v5819_v62  ;;  %v5879_v1 = vmul.f32 0.5, %v5819_v62 }
0x1156   : > { %v5932_v13 = vmul.f32 %v5916_v52, %v10292_v31  ;;  %v5914_v60 = vmul.f32 %v5898_v54, %v5832_v49  ;;  %v5901_v36 = vmul.f32 0.044715, %v5843_v10  ;;  %v5835_v21 = vadd.f32 %v10274_v39, %v5834_v63 }
0x1157   : > { %7750 = vtanh.f32 %v5961_v37  ;;  %v5959_v0 = vmul.f32 0.7978846, %v5943_v17  ;;  %v5880_v11 = vmul.f32 0.5, %v10277_v35  ;;  %v5882_v56 = vmul.f32 0.5, %v5832_v49 }
0x1158   : > { %v5948_v4 = vadd.f32 %v5932_v13, %v10292_v31  ;;  %v5930_v19 = vmul.f32 %v5914_v60, %v5832_v49  ;;  %v5917_v27 = vmul.f32 %v5901_v36, %v5843_v10  ;;  %v5899_v45 = vmul.f32 0.044715, %v5835_v21 }
0x1159   : > { %7752 = vtanh.f32 %v5959_v0  ;;  %v5883_v3 = vmul.f32 0.5, %v5835_v21 }
0x115a   : > { %v5933_v48 = vmul.f32 %v5917_v27, %v5843_v10  ;;  %v5915_v6 = vmul.f32 %v5899_v45, %v5835_v21  ;;  %v5946_v38 = vadd.f32 %v5930_v19, %v5832_v49  ;;  %v5964_v23 = vmul.f32 0.7978846, %v5948_v4 }
0x115b   : > { %v5885_v4 = vmul.f32 0.5, %v5843_v10  ;;  %v5884_v45 = vmul.f32 0.5, %v10292_v31 }
0x115c   : > { %v5949_v59 = vadd.f32 %v5933_v48, %v5843_v10  ;;  %v5931_v15 = vmul.f32 %v5915_v6, %v5835_v21  ;;  %v5962_v29 = vmul.f32 0.7978846, %v5946_v38 }
0x115e   : > { %v5965_v22 = vmul.f32 0.7978846, %v5949_v59  ;;  %v5947_v12 = vadd.f32 %v5931_v15, %v5835_v21  ;;  %7754 = vtanh.f32 %v5962_v29 }
0x115f   : > { %7756 = vtanh.f32 %v5964_v23 }
0x1160   : > { %v7747_v33 = vpop.eup %7746  ;;  %7758 = vtanh.f32 %v5965_v22  ;;  %v5963_v46 = vmul.f32 0.7978846, %v5947_v12 }
0x1161   : > { %v5992_v55 = vadd.f32 1.0, %v7747_v33 }
0x1162   : > { %v7749_v50 = vpop.eup %7748  ;;  %7760 = vtanh.f32 %v5963_v46 }
0x1163   : > { %v5990_v14 = vadd.f32 1.0, %v7749_v50  ;;  %v6008_v54 = vmul.f32 %v5992_v55, %v5880_v11 }
0x1164   : > { %v7751_v57 = vpop.eup %7750 }
0x1165   : > { %v5993_v28 = vadd.f32 1.0, %v7751_v57  ;;  %v6006_v2 = vmul.f32 %v5990_v14, %v5878_v30 }
0x1166   : > { %v7753_v7 = vpop.eup %7752 }
0x1167   : > { %v5991_v41 = vadd.f32 1.0, %v7753_v7  ;;  %v6009_v47 = vmul.f32 %v5993_v28, %v5881_v40 }
0x1169   : > { %v6007_v20 = vmul.f32 %v5991_v41, %v5879_v1  ;;  %v6023_v13 = vpack.c.bf16 %v6009_v47, %v6008_v54 }
0x116b   : > { %v7755_v44 = vpop.eup %7754  ;;  %v6022_v63 = vpack.c.bf16 %v6007_v20, %v6006_v2 }
0x116c   : > { %v7757_v52 = vpop.eup %7756  ;;  %v5994_v60 = vadd.f32 1.0, %v7755_v44 }
0x116d   : > { %v7759_v37 = vpop.eup %7758  ;;  %7301 = vmatprep.mubr.bf16.mxu0 %v6022_v63  ;;  %v5996_v19 = vadd.f32 1.0, %v7757_v52 }
0x116e   : > { %v5997_v36 = vadd.f32 1.0, %v7759_v37  ;;  %7302 = vmatmul.mubr.bf16.vlgmr.msra.gmra.mxu0 %v6023_v13  ;;  %v6010_v35 = vmul.f32 %v5994_v60, %v5882_v56 }
0x116f   : > { %v7761_v17 = vpop.eup %7760  ;;  %v6012_v6 = vmul.f32 %v5996_v19, %v5884_v45 }
0x1170   : > { %v5995_v62 = vadd.f32 1.0, %v7761_v17  ;;  %v6013_v0 = vmul.f32 %v5997_v36, %v5885_v4 }
0x1172   : > { %v6011_v27 = vmul.f32 %v5995_v62, %v5883_v3  ;;  %v6025_v38 = vpack.c.bf16 %v6013_v0, %v6012_v6 }
0x1174   : > { %v6024_v48 = vpack.c.bf16 %v6011_v27, %v6010_v35 }
0x1176   : > { %7305 = vmatprep.mubr.bf16.mxu0 %v6024_v48 }
0x1177   : > { %7306 = vmatmul.mubr.bf16.gmra.mxu0 %v6025_v38 }
0x118b   : > { %v7279_v23 = vpop.f32.mrf.mxu1 }
0x118c   : > { %v10306_v59 = vadd.f32 %v7279_v23, %v10274_v39 }
0x118d   : > { %v5847_v49 = vpop.f32.mrf.mxu1 }
0x118e   : > { %v5904_v21 = vmul.f32 0.044715, %v10306_v59  ;;  %v10310_v10 = vadd.f32 %v10274_v39, %v5847_v49 }
0x118f   : > { %v7280_v15 = vpop.f32.mrf.mxu1 }
0x1190   : > { %v5920_v29 = vmul.f32 %v5904_v21, %v10306_v59  ;;  %v5902_v31 = vmul.f32 0.044715, %v10310_v10  ;;  %v5859_v22 = vadd.f32 %v7280_v15, %v10274_v39 }
0x1191   : > { %v5850_v12 = vpop.f32.mrf.mxu1 }
0x1192   : > { %v5936_v33 = vmul.f32 %v5920_v29, %v10306_v59  ;;  %v5918_v46 = vmul.f32 %v5902_v31, %v10310_v10  ;;  %v5905_v50 = vmul.f32 0.044715, %v5859_v22  ;;  %v5851_v57 = vadd.f32 %v10274_v39, %v5850_v12 }
0x1193   : > { %v7283_v28 = vpop.f32.mrf.mxu1 }
0x1194   : > { %v5952_v14 = vadd.f32 %v5936_v33, %v10306_v59  ;;  %v5934_v7 = vmul.f32 %v5918_v46, %v10310_v10  ;;  %v5921_v55 = vmul.f32 %v5905_v50, %v5859_v22  ;;  %v5903_v40 = vmul.f32 0.044715, %v5851_v57 }
0x1195   : > { %v10321_v30 = vadd.f32 %v7283_v28, %v10274_v39  ;;  %v5863_v1 = vpop.f32.mrf.mxu1 }
0x1196   : > { %v5968_v41 = vmul.f32 0.7978846, %v5952_v14  ;;  %v5937_v11 = vmul.f32 %v5921_v55, %v5859_v22  ;;  %v5919_v47 = vmul.f32 %v5903_v40, %v5851_v57  ;;  %v10324_v44 = vadd.f32 %v10274_v39, %v5863_v1 }
0x1197   : > { %v5908_v2 = vmul.f32 0.044715, %v10321_v30  ;;  %v7284_v20 = vpop.f32.mrf.mxu1  ;;  %v5950_v52 = vadd.f32 %v5934_v7, %v10310_v10  ;;  %v5889_v40 = vmul.f32 0.5, %v5859_v22 }
0x1198   : > { %v5953_v54 = vadd.f32 %v5937_v11, %v5859_v22  ;;  %v5935_v37 = vmul.f32 %v5919_v47, %v5851_v57  ;;  %v5906_v63 = vmul.f32 0.044715, %v10324_v44  ;;  %7762 = vtanh.f32 %v5968_v41 }
0x1199   : > { %v5924_v13 = vmul.f32 %v5908_v2, %v10321_v30  ;;  %v5875_v60 = vadd.f32 %v7284_v20, %v10274_v39  ;;  %v5866_v36 = vpop.f32.mrf.mxu1  ;;  %v5966_v17 = vmul.f32 0.7978846, %v5950_v52  ;;  %v5886_v41 = vmul.f32 0.5, %v10310_v10 }
0x119a   : > { %v5969_v56 = vmul.f32 0.7978846, %v5953_v54  ;;  %v5922_v3 = vmul.f32 %v5906_v63, %v10324_v44  ;;  %v5867_v62 = vadd.f32 %v10274_v39, %v5866_v36  ;;  %v5951_v4 = vadd.f32 %v5935_v37, %v5851_v57 }
0x119b   : > { %v5940_v19 = vmul.f32 %v5924_v13, %v10321_v30  ;;  %v5909_v35 = vmul.f32 0.044715, %v5875_v60  ;;  %7764 = vtanh.f32 %v5966_v17  ;;  %v5887_v11 = vmul.f32 0.5, %v5851_v57 }
0x119c   : > { %7766 = vtanh.f32 %v5969_v56  ;;  %v5938_v27 = vmul.f32 %v5922_v3, %v10324_v44  ;;  %v5907_v45 = vmul.f32 0.044715, %v5867_v62  ;;  %v5967_v0 = vmul.f32 0.7978846, %v5951_v4 }
0x119d   : > { %v5956_v48 = vadd.f32 %v5940_v19, %v10321_v30  ;;  %v5925_v6 = vmul.f32 %v5909_v35, %v5875_v60  ;;  %v5888_v2 = vmul.f32 0.5, %v10306_v59  ;;  %v5893_v22 = vmul.f32 0.5, %v5875_v60 }
0x119e   : > { %v5923_v38 = vmul.f32 %v5907_v45, %v5867_v62  ;;  %7768 = vtanh.f32 %v5967_v0  ;;  %v5954_v23 = vadd.f32 %v5938_v27, %v10324_v44  ;;  %v5890_v57 = vmul.f32 0.5, %v10324_v44 }
0x119f   : > { %v5972_v49 = vmul.f32 0.7978846, %v5956_v48  ;;  %v5941_v21 = vmul.f32 %v5925_v6, %v5875_v60  ;;  %v5891_v35 = vmul.f32 0.5, %v5867_v62  ;;  %v5892_v27 = vmul.f32 0.5, %v10321_v30 }
0x11a0   : > { %v5939_v39 = vmul.f32 %v5923_v38, %v5867_v62  ;;  %v5970_v15 = vmul.f32 0.7978846, %v5954_v23 }
0x11a1   : > { %v5957_v29 = vadd.f32 %v5941_v21, %v5875_v60  ;;  %v10344_v60 = vld [vmem:[%s10546_s13] ss:$0 sm:$0xff] }
0x11a2   : > { %v5955_v31 = vadd.f32 %v5939_v39, %v5867_v62  ;;  %7770 = vtanh.f32 %v5970_v15 }
0x11a3   : > { %7772 = vtanh.f32 %v5972_v49  ;;  %v5973_v12 = vmul.f32 0.7978846, %v5957_v29 }
0x11a4   : > { %v5971_v33 = vmul.f32 0.7978846, %v5955_v31 }
0x11a5   : > { %7774 = vtanh.f32 %v5973_v12  ;;  %v7763_v46 = vpop.eup %7762 }
0x11a6   : > { %7776 = vtanh.f32 %v5971_v33  ;;  %v6000_v1 = vadd.f32 1.0, %v7763_v46 }
0x11a8   : > { %v7765_v50 = vpop.eup %7764  ;;  %v6016_v63 = vmul.f32 %v6000_v1, %v5888_v2 }
0x11a9   : > { %v7767_v28 = vpop.eup %7766  ;;  %v5998_v14 = vadd.f32 1.0, %v7765_v50 }
0x11aa   : > { %v6001_v7 = vadd.f32 1.0, %v7767_v28 }
0x11ab   : > { %v7769_v55 = vpop.eup %7768  ;;  %v6014_v52 = vmul.f32 %v5998_v14, %v5886_v41 }
0x11ac   : > { %v5999_v47 = vadd.f32 1.0, %v7769_v55  ;;  %v6017_v20 = vmul.f32 %v6001_v7, %v5889_v40 }
0x11ae   : > { %v6015_v54 = vmul.f32 %v5999_v47, %v5887_v11  ;;  %v6027_v17 = vpack.c.bf16 %v6017_v20, %v6016_v63 }
0x11af   : > { %v7771_v37 = vpop.eup %7770 }
0x11b0   : > { %v7773_v13 = vpop.eup %7772  ;;  %v6026_v36 = vpack.c.bf16 %v6015_v54, %v6014_v52  ;;  %v6002_v3 = vadd.f32 1.0, %v7771_v37 }
0x11b1   : > { %v6004_v19 = vadd.f32 1.0, %v7773_v13 }
0x11b2   : > { %v7775_v56 = vpop.eup %7774  ;;  %7309 = vmatprep.mubr.bf16.mxu0 %v6026_v36  ;;  %v6018_v0 = vmul.f32 %v6002_v3, %v5890_v57 }
0x11b3   : > { %v7777_v4 = vpop.eup %7776  ;;  %7310 = vmatmul.mubr.bf16.gmra.mxu0 %v6027_v17  ;;  %v6005_v10 = vadd.f32 1.0, %v7775_v56  ;;  %v6020_v6 = vmul.f32 %v6004_v19, %v5892_v27 }
0x11b4   : > { %v6003_v59 = vadd.f32 1.0, %v7777_v4 }
0x11b5   : > { %v6021_v45 = vmul.f32 %v6005_v10, %v5893_v22 }
0x11b6   : > { %v6019_v48 = vmul.f32 %v6003_v59, %v5891_v35 }
0x11b7   : > { %v6029_v23 = vpack.c.bf16 %v6021_v45, %v6020_v6 }
0x11b8   : > { %v6028_v38 = vpack.c.bf16 %v6019_v48, %v6018_v0 }
0x11ba   : > { %7313 = vmatprep.mubr.bf16.mxu0 %v6028_v38 }
0x11bb   : > { %7314 = vmatmul.mubr.bf16.gmra.mxu0 %v6029_v23 }
0x122e   : > { %v7303_v44 = vpop.f32.mrf.mxu0 }
0x122f   : > { %v6144_v62 = vadd.f32 %v7303_v44, %v10344_v60 }
0x1230   : > { %v6135_v49 = vpop.f32.mrf.mxu0 }
0x1231   : > { %v6200_v30 = vadd.f32 %v6144_v62, %v9981_v16  ;;  %6232 = vst.msk [vmem:[%s10349_s27 + $0x10] sm:$0xff] %vm572_vm0, %v6144_v62  ;;  %v6136_v21 = vadd.f32 %v10344_v60, %v6135_v49 }
0x1232   : > { %v7304_v39 = vpop.f32.mrf.mxu0 }
0x1233   : > { %6216 = vst.msk [vmem:[%s10355_s29 + $0x10] sm:$0xff] %vm572_vm0, %v6200_v30  ;;  %v6198_v16 = vadd.f32 %v6136_v21, %v9978_v53  ;;  %6230 = vst.msk [vmem:[%s10349_s27] sm:$0xff] %vm572_vm0, %v6136_v21  ;;  %v6147_v15 = vadd.f32 %v7304_v39, %v10344_v60 }
0x1234   : > { %v6138_v29 = vpop.f32.mrf.mxu0 }
0x1235   : > { %6214 = vst.msk [vmem:[%s10355_s29] sm:$0xff] %vm572_vm0, %v6198_v16  ;;  %v6201_v31 = vadd.f32 %v6147_v15, %v9998_v32  ;;  %6233 = vst.msk [vmem:[%s10349_s27 + $0x18] sm:$0xff] %vm572_vm0, %v6147_v15  ;;  %v6139_v12 = vadd.f32 %v10344_v60, %v6138_v29 }
0x1237   : > { %v7307_v33 = vpop.f32.mrf.mxu0  ;;  %6217 = vst.msk [vmem:[%s10355_s29 + $0x18] sm:$0xff] %vm572_vm0, %v6201_v31  ;;  %v6199_v53 = vadd.f32 %v6139_v12, %v9990_v18  ;;  %6231 = vst.msk [vmem:[%s10349_s27 + $0x8] sm:$0xff] %vm572_vm0, %v6139_v12 }
0x1238   : > { %v6160_v46 = vadd.f32 %v7307_v33, %v10344_v60 }
0x1239   : > { %v6151_v50 = vpop.f32.mrf.mxu0  ;;  %6215 = vst.msk [vmem:[%s10355_s29 + $0x8] sm:$0xff] %vm572_vm0, %v6199_v53 }
0x123a   : > { %v6204_v32 = vadd.f32 %v6160_v46, %v10016_v42  ;;  %6236 = vst.msk [vmem:[%s10349_s27 + $0x30] sm:$0xff] %vm572_vm0, %v6160_v46  ;;  %v6152_v28 = vadd.f32 %v10344_v60, %v6151_v50 }
0x123b   : > { %v7308_v14 = vpop.f32.mrf.mxu0 }
0x123c   : > { %6220 = vst.msk [vmem:[%s10355_s29 + $0x30] sm:$0xff] %vm572_vm0, %v6204_v32  ;;  %v6202_v18 = vadd.f32 %v6152_v28, %v10006_v25  ;;  %6234 = vst.msk [vmem:[%s10349_s27 + $0x20] sm:$0xff] %vm572_vm0, %v6152_v28  ;;  %v6163_v7 = vadd.f32 %v7308_v14, %v10344_v60 }
0x123d   : > { %v6154_v55 = vpop.f32.mrf.mxu0 }
0x123e   : > { %6218 = vst.msk [vmem:[%s10355_s29 + $0x20] sm:$0xff] %vm572_vm0, %v6202_v18  ;;  %v6205_v42 = vadd.f32 %v6163_v7, %v10019_v43  ;;  %6237 = vst.msk [vmem:[%s10349_s27 + $0x38] sm:$0xff] %vm572_vm0, %v6163_v7  ;;  %v6155_v40 = vadd.f32 %v10344_v60, %v6154_v55 }
0x1240   : > { %6221 = vst.msk [vmem:[%s10355_s29 + $0x38] sm:$0xff] %vm572_vm0, %v6205_v42  ;;  %v6203_v25 = vadd.f32 %v6155_v40, %v10013_v24  ;;  %6235 = vst.msk [vmem:[%s10349_s27 + $0x28] sm:$0xff] %vm572_vm0, %v6155_v40 }
0x1242   : > { %6219 = vst.msk [vmem:[%s10355_s29 + $0x28] sm:$0xff] %vm572_vm0, %v6203_v25 }
0x1273   : > { %v7311_v1 = vpop.f32.mrf.mxu0 }
0x1274   : > { %v6176_v41 = vadd.f32 %v7311_v1, %v10344_v60 }
0x1275   : > { %v6167_v43 = vpop.f32.mrf.mxu0 }
0x1276   : > { %v6208_v11 = vadd.f32 %v6176_v41, %v10039_v8  ;;  %6240 = vst.msk [vmem:[%s10349_s27 + $0x50] sm:$0xff] %vm572_vm0, %v6176_v41  ;;  %v6168_v47 = vadd.f32 %v10344_v60, %v6167_v43 }
0x1277   : > { %v7312_v2 = vpop.f32.mrf.mxu0 }
0x1278   : > { %6224 = vst.msk [vmem:[%s10355_s29 + $0x50] sm:$0xff] %vm572_vm0, %v6208_v11  ;;  %v6206_v24 = vadd.f32 %v6168_v47, %v10035_v58  ;;  %6238 = vst.msk [vmem:[%s10349_s27 + $0x40] sm:$0xff] %vm572_vm0, %v6168_v47  ;;  %v6179_v20 = vadd.f32 %v7312_v2, %v10344_v60 }
0x1279   : > { %v6170_v52 = vpop.f32.mrf.mxu0 }
0x127a   : > { %6222 = vst.msk [vmem:[%s10355_s29 + $0x40] sm:$0xff] %vm572_vm0, %v6206_v24  ;;  %v6209_v8 = vadd.f32 %v6179_v20, %v10051_v61  ;;  %6241 = vst.msk [vmem:[%s10349_s27 + $0x58] sm:$0xff] %vm572_vm0, %v6179_v20  ;;  %v6171_v54 = vadd.f32 %v10344_v60, %v6170_v52 }
0x127b   : > { %v7315_v37 = vpop.f32.mrf.mxu0 }
0x127c   : > { %6225 = vst.msk [vmem:[%s10355_s29 + $0x58] sm:$0xff] %vm572_vm0, %v6209_v8  ;;  %v6207_v58 = vadd.f32 %v6171_v54, %v10047_v34  ;;  %6239 = vst.msk [vmem:[%s10349_s27 + $0x48] sm:$0xff] %vm572_vm0, %v6171_v54  ;;  %v6192_v63 = vadd.f32 %v7315_v37, %v10344_v60 }
0x127d   : > { %v6183_v13 = vpop.f32.mrf.mxu0 }
0x127e   : > { %6223 = vst.msk [vmem:[%s10355_s29 + $0x48] sm:$0xff] %vm572_vm0, %v6207_v58  ;;  %v6212_v61 = vadd.f32 %v6192_v63, %v10067_v51  ;;  %6244 = vst.msk [vmem:[%s10349_s27 + $0x70] sm:$0xff] %vm572_vm0, %v6192_v63  ;;  %v6184_v36 = vadd.f32 %v10344_v60, %v6183_v13 }
0x127f   : > { %v7316_v17 = vpop.f32.mrf.mxu0 }
0x1280   : > { %6228 = vst.msk [vmem:[%s10355_s29 + $0x70] sm:$0xff] %vm572_vm0, %v6212_v61  ;;  %v6210_v34 = vadd.f32 %v6184_v36, %v10061_v26  ;;  %6242 = vst.msk [vmem:[%s10349_s27 + $0x60] sm:$0xff] %vm572_vm0, %v6184_v36  ;;  %v6195_v56 = vadd.f32 %v7316_v17, %v10344_v60 }
0x1281   : > { %v6186_v51 = vpop.f32.mrf.mxu0 }
0x1282   : > { %6226 = vst.msk [vmem:[%s10355_s29 + $0x60] sm:$0xff] %vm572_vm0, %v6210_v34  ;;  %v6213_v3 = vadd.f32 %v6195_v56, %v10077_v9  ;;  %6245 = vst.msk [vmem:[%s10349_s27 + $0x78] sm:$0xff] %vm572_vm0, %v6195_v56  ;;  %v6187_v4 = vadd.f32 %v10344_v60, %v6186_v51 }
0x1284   : > { %6229 = vst.msk [vmem:[%s10355_s29 + $0x78] sm:$0xff] %vm572_vm0, %v6213_v3  ;;  %v6211_v26 = vadd.f32 %v6187_v4, %v10074_v5  ;;  %6243 = vst.msk [vmem:[%s10349_s27 + $0x68] sm:$0xff] %vm572_vm0, %v6187_v4 }
0x1285   : > { %7887 = shalt.err (!%p7884_p11)
}
0x1286   : > { %s7888_s27 = scalar_lea.hbm %s10447_s15, 2048  ;;  %s7892_s18 = scalar_lea.hbm %s10616_s23, 4096 }
0x1287   : > { %p7889_p8 = scmp.ne.s32.totalorder %s10447_s15, %s7888_s27  ;;  %p7893_p6 = scmp.lt.s32.totalorder %s10447_s15, %s10616_s23 }
0x1288   : > { %p7894_p13 = scmp.lt.s32.totalorder %s7892_s18, %s7888_s27 }
0x1289   : > { %p7890_p2 = pnand %p7889_p8, %p10618_p4 }
0x128a   : > { %p7895_p3 = por %p7894_p13, %p7893_p6 }
0x128b   : > { %p7891_p7 = pneg %p7890_p2 }
0x128d   : > { %p7896_p0 = pnand %p7895_p3, %p7891_p7 }
0x128f   : > { %7899 = shalt.err (!%p7896_p0)
}
0x1290   : > { %s7993_s0 = smov 128   ;;  %s7994_s1 = smov 8   ;;  %6227 = vst.msk [vmem:[%s10355_s29 + $0x68] sm:$0xff] %vm572_vm0, %v6211_v26 }
0x1291   : > { %s10619_s20 = scalar_lea.sflag [#allocation10], %s8207_s9  ;;  %s6247_s22 = scalar_lea.sflag [#allocation4], %s8207_s9 }
0x1292   : > { %7336 = dma.vmem_to_hbm [thread:$0]  (%p10618_p4), %s10449_s24, 2048, %s10447_s15, %s10619_s20, %s7993_s0, %s7993_s0, %s7994_s1  }
0x1293   : > { %s7900_s27 = scalar_lea.vmem %s10461_s17, 2048  ;;  %s7995_s25 = smov [#allocation8]  }
0x1294   : > { %p7901_p5 = scmp.ne.s32.totalorder %s10461_s17, %s7900_s27  ;;  %s7904_s16 = sshll.u32 %s7995_s25, 4  ;;  %s7905_s16 = int_to_ptr.vmem [resolvable:$false] %s7904_s16 }
0x1295   : > { %s7906_s18 = scalar_lea.vmem %s7905_s16, 4096  ;;  %p7907_p1 = scmp.lt.s32.totalorder %s10461_s17, %s7905_s16 }
0x1296   : > { %p7902_p9 = pnand %p7901_p5, %p10618_p4  ;;  %p7908_p12 = scmp.lt.s32.totalorder %s7906_s18, %s7900_s27 }
0x1298   : > { %p7903_p10 = pneg %p7902_p9  ;;  %p7909_p11 = por %p7908_p12, %p7907_p1 }
0x129a   : > { %p7910_p8 = pnand %p7909_p11, %p7903_p10 }
0x129c   : > { %7913 = shalt.err (!%p7910_p8)
}
0x129d   : > { %s7914_s29 = scalar_lea.hbm %s10459_s28, 2048  ;;  %s7918_s15 = scalar_lea.hbm %s10617_s14, 4096 }
0x129e   : > { %p7915_p2 = scmp.ne.s32.totalorder %s10459_s28, %s7914_s29  ;;  %p7919_p13 = scmp.lt.s32.totalorder %s10459_s28, %s10617_s14 }
0x129f   : > { %p7920_p3 = scmp.lt.s32.totalorder %s7918_s15, %s7914_s29 }
0x12a0   : > { %p7916_p7 = pnand %p7915_p2, %p10618_p4 }
0x12a1   : > { %p7921_p0 = por %p7920_p3, %p7919_p13 }
0x12a2   : > { %p7917_p6 = pneg %p7916_p7 }
0x12a4   : > { %p7922_p5 = pnand %p7921_p0, %p7917_p6 }
0x12a6   : > { %7925 = shalt.err (!%p7922_p5)
}
0x12a7   : > { %7335 = dma.vmem_to_hbm [thread:$0]  (%p10618_p4), %s10461_s17, 2048, %s10459_s28, %s6247_s22, %s7993_s0, %s7993_s0, %s7994_s1  }
0x12a8 PF: > { %s10620_s27 = sld [smem:[#allocation15_spill]]  ;;  %p10623_p10 = scmp.ge.s32.totalorder %s7972_s21, 2 }
0x12a9   : > { %s10621_s25 = sld [smem:[#allocation20_spill]] }
0x12ae   : > { %s6298_s16 = sand.u32 1, %s10620_s27  }
0x12af   : > { %p10622_p9 = scmp.ne.s32.totalorder %s10621_s25, 0  ;;  %s6299_s18 = scalar_lea.sflag [#allocation4], %s6298_s16 }
0x12b1   : > { %p7351_p1 = pnand %p10623_p10, %p10622_p9 }
0x12b3   : > { %p7352_p12 = pneg %p7351_p1 }
0x12b5   : > { %7951 = dma.done.wait (%p7352_p12), %s6299_s18, 2048  }
0x12b6   : > { %7953 = vsyncadd (%p7352_p12), %s6299_s18, 4294965248  ;;  %s6308_s29 = scalar_lea.sflag [#allocation10], %s6298_s16 }
0x12b7   : > { %7955 = dma.done.wait (%p7352_p12), %s6308_s29, 2048  }
0x12b8   : > { %7957 = vsyncadd (%p7352_p12), %s6308_s29, 4294965248  ;;  %s10624_s21 = sld [smem:[#allocation17_spill]]  ;;  %s10627_s18 = smov %s7964_s19 }
0x12b9   : > { %s10625_s30 = sld [smem:[#allocation16_spill]] }
0x12ba   : > { %s10626_s20 = sld [smem:[#allocation18_spill]] }
0x12be   : > { %p33_p4 = scmp.ge.s32.totalorder %s10624_s21, 4  }
0x12bf   : > { %s10628_s19 = smov %s10625_s30 }
0x12c0   :  { %35 = sbr.rel (!%p33_p4) target bundleno = 14 (0xe), region = 146 }
0x12c5   :  { %6313 = vsyncpa [#allocation3], 1 }
0x12c6   :  { %6315 = vsyncpa [#allocation3 + $0x1], 1 }
0x12c7   :  { %6316 = vsyncpa [#allocation6], 1 }
0x12c8   :  { %6317 = vsyncpa [#allocation4], 1 }
0x12c9   :  { %6319 = vsyncpa [#allocation4 + $0x1], 1 }
0x12ca   :  { %6320 = vsyncpa [#allocation10], 1 }
0x12cb   :  { %6322 = vsyncpa [#allocation10 + $0x1], 1 }

</bundles_post_ra>
